<compile_context>
chip_gen: v7x
topology: tpu7x:2x2x1
jax: 0.10.0
libtpu: 0.0.40
codegen_flags: <defaults>
</compile_context>

<pallas_src>
import functools

import jax
import jax.numpy as jnp
from jax import lax
from jax.experimental import pallas as pl
from jax.experimental.pallas import tpu as pltpu


def _cross_attention_kernel(*refs, heads, dim_head, bb, n, m, self_attn):
    """Processes `bb` batch elements per grid step; all layouts channels-major.

    self-attention refs:
      x_ref   : (Cq, bb*N)      bf16  input, N lane-dense
      w_qkv   : (3*inner, Cq)   bf16  fused [q*scale; k; v] projection weight
      w_o     : (Cq, inner)     bf16  output projection weight
      bias    : (Cq, bb*N)      f32   pre-broadcast output bias
      o_ref   : (Cq, bb*N)            output tile (channels-major)
      qkv_sc  : (3*inner, bb*N) bf16  VMEM staging of the fused projection
      out_sc  : (inner, bb*N)   bf16  VMEM staging of all heads' outputs

    cross-attention refs:
      x_ref, ctx_ref, w_q, w_kv, w_o, bias, o_ref, q_sc, kv_sc, out_sc
    """
    inner = heads * dim_head
    if self_attn:
        x_ref, w_qkv_ref, w_o_ref, bo_ref, o_ref, qkv_sc, out_sc = refs
        # One fused QKV projection: amortizes the MXU fill/drain of three tiny
        # K=32 matmuls; result is staged in VMEM so q/k/v never stay live in
        # vregs across the head loop.
        qkv_sc[...] = jnp.dot(w_qkv_ref[...], x_ref[...],
                              preferred_element_type=jnp.float32
                              ).astype(jnp.bfloat16)
        q_sc, kv_sc = qkv_sc, qkv_sc
        k_base, v_base = inner, 2 * inner
    else:
        (x_ref, ctx_ref, w_q_ref, w_kv_ref, w_o_ref, bo_ref, o_ref,
         q_sc, kv_sc, out_sc) = refs
        q_sc[...] = jnp.dot(w_q_ref[...], x_ref[...],
                            preferred_element_type=jnp.float32
                            ).astype(jnp.bfloat16)
        kv_sc[...] = jnp.dot(w_kv_ref[...], ctx_ref[...],
                             preferred_element_type=jnp.float32
                             ).astype(jnp.bfloat16)
        k_base, v_base = 0, inner

    # Per (batch-in-block, head) attention.  All slice offsets are static
    # multiples of (8, 128) -> free sublane/lane views of the staging scratch;
    # the live vreg set per iteration is just sim/p/attn and dies at the store.
    for b_local in range(bb):
        qcol = b_local * n
        kcol = b_local * m
        for h in range(heads):
            lo = h * dim_head
            q_h = q_sc[lo:lo + dim_head, qcol:qcol + n]                      # (d, N) bf16
            k_h = kv_sc[k_base + lo:k_base + lo + dim_head, kcol:kcol + m]   # (d, M) bf16
            # sim[i, j] = sum_d q[d, i] * k[d, j]   (scale already folded into w_q)
            sim = lax.dot_general(q_h, k_h, (((0,), (0,)), ((), ())),
                                  preferred_element_type=jnp.float32)        # (N, M) f32
            mx = jnp.max(sim, axis=-1, keepdims=True)                        # lane (XLU) reduce
            p = jnp.exp(sim - mx)
            attn = p / jnp.sum(p, axis=-1, keepdims=True)                    # exact divide
            v_h = kv_sc[v_base + lo:v_base + lo + dim_head, kcol:kcol + m]   # (d, M) bf16
            # out_h^T[e, i] = sum_j v[e, j] * attn[i, j]
            out_hT = lax.dot_general(v_h, attn.astype(jnp.bfloat16),
                                     (((1,), (1,)), ((), ())),
                                     preferred_element_type=jnp.float32)     # (d, N)
            out_sc[lo:lo + dim_head, qcol:qcol + n] = out_hT.astype(jnp.bfloat16)

    # Output projection: ONE (Cq, inner) @ (inner, bb*N) matmul + pre-broadcast
    # bias; lane-dense unmasked store.
    yT = jnp.dot(w_o_ref[...], out_sc[...], preferred_element_type=jnp.float32)
    o_ref[...] = (yT + bo_ref[...]).astype(o_ref.dtype)


def cross_attention_pallas(x, w_q, w_k, w_v, w_o, b_o, *, heads, dim_head,
                           context=None, block_b=None):
    """x: (B, N, Cq); context: (B, M, Cc) or None (defaults to x).
    Weights use torch nn.Linear layout: w_q/w_k/w_v (inner, C_in), w_o (Cq, inner)."""
    b, n, cq = x.shape
    self_attn = context is None
    if self_attn:
        m, cc = n, cq
    else:
        _, m, cc = context.shape
    inner = heads * dim_head
    scale = float(dim_head) ** -0.5

    # >=2 batch elements per grid step widens the projection / output-projection
    # lanes to bb*N (fills the 256-wide v6e/v7x MXU) and amortizes per-step
    # overhead, while keeping >=2 grid steps so both v7x TensorCores stay busy.
    if block_b is None:
        block_b = 2 if (b % 2 == 0 and b >= 4) else 1
    assert b % block_b == 0, "batch must be divisible by block_b"
    grid = (b // block_b,)
    assert cq % 8 == 0 and cc % 8 == 0 and dim_head % 8 == 0
    assert (block_b * n) % 128 == 0 and (block_b * m) % 128 == 0

    f32, bf16 = jnp.float32, jnp.bfloat16

    # Channels-major, batch-flattened inputs: (C, B*N) with N lane-dense.
    # bf16 at the MXU inputs (accumulation stays fp32 in-kernel).
    xt = jnp.transpose(x, (2, 0, 1)).reshape(cq, b * n).astype(bf16)
    w_o_b = w_o.astype(bf16)
    bias = jnp.broadcast_to(b_o.astype(f32).reshape(cq, 1), (cq, block_b * n))

    kernel = functools.partial(_cross_attention_kernel, heads=heads,
                               dim_head=dim_head, bb=block_b, n=n, m=m,
                               self_attn=self_attn)

    if self_attn:
        # Fused [q*scale; k; v] projection weight: one MXU push instead of three.
        w_qkv = jnp.concatenate([w_q * scale, w_k, w_v], axis=0).astype(bf16)
        args = (xt, w_qkv, w_o_b, bias)
        in_specs = [
            pl.BlockSpec((cq, block_b * n), lambda i: (0, i)),        # x (chan-major)
            pl.BlockSpec((3 * inner, cq), lambda i: (0, 0)),          # fused w_qkv
            pl.BlockSpec((cq, inner), lambda i: (0, 0)),              # w_o
            pl.BlockSpec((cq, block_b * n), lambda i: (0, 0)),        # bias
        ]
        scratch = [pltpu.VMEM((3 * inner, block_b * n), bf16),        # staged q|k|v
                   pltpu.VMEM((inner, block_b * n), bf16)]            # staged head outs
    else:
        ctxt = jnp.transpose(context, (2, 0, 1)).reshape(cc, b * m).astype(bf16)
        w_q_b = (w_q * scale).astype(bf16)
        w_kv = jnp.concatenate([w_k, w_v], axis=0).astype(bf16)       # fused [k; v]
        args = (xt, ctxt, w_q_b, w_kv, w_o_b, bias)
        in_specs = [
            pl.BlockSpec((cq, block_b * n), lambda i: (0, i)),        # x
            pl.BlockSpec((cc, block_b * m), lambda i: (0, i)),        # context
            pl.BlockSpec((inner, cq), lambda i: (0, 0)),              # w_q (scaled)
            pl.BlockSpec((2 * inner, cc), lambda i: (0, 0)),          # fused w_kv
            pl.BlockSpec((cq, inner), lambda i: (0, 0)),              # w_o
            pl.BlockSpec((cq, block_b * n), lambda i: (0, 0)),        # bias
        ]
        scratch = [pltpu.VMEM((inner, block_b * n), bf16),            # staged q
                   pltpu.VMEM((2 * inner, block_b * m), bf16),        # staged k|v
                   pltpu.VMEM((inner, block_b * n), bf16)]            # staged head outs

    out_cn = pl.pallas_call(
        kernel,
        out_shape=jax.ShapeDtypeStruct((cq, b * n), x.dtype),
        grid_spec=pltpu.PrefetchScalarGridSpec(
            num_scalar_prefetch=0,
            grid=grid,
            in_specs=in_specs,
            out_specs=pl.BlockSpec((cq, block_b * n), lambda i: (0, i)),
            scratch_shapes=scratch,
        ),
        compiler_params=pltpu.CompilerParams(
            dimension_semantics=("parallel",)),
    )(*args)                                                          # (Cq, B*N)

    # (Cq, B*N) -> (B, N, Cq): wrapper-side layout plumbing back to the module's
    # output layout (the in-kernel store stays lane-dense / unmasked).
    # TODO(synk): drop this transpose if the consumer accepts channels-major.
    return jnp.transpose(out_cn.reshape(cq, b, n), (1, 2, 0))


def _reference(x, w_q, w_k, w_v, w_o, b_o, *, heads, dim_head, context=None):
    """Plain-JAX replica of the PyTorch CrossAttention forward (mask=None, p=0)."""
    if context is None:
        context = x
    b, n, _ = x.shape
    scale = float(dim_head) ** -0.5
    q = x @ w_q.T
    k = context @ w_k.T
    v = context @ w_v.T

    def split(t):  # 'b n (h d) -> b h n d'
        bb, nn, _ = t.shape
        return t.reshape(bb, nn, heads, dim_head).transpose(0, 2, 1, 3)

    q, k, v = split(q), split(k), split(v)
    sim = jnp.einsum('bhid,bhjd->bhij', q, k) * scale
    attn = jax.nn.softmax(sim, axis=-1)
    out = jnp.einsum('bhij,bhjd->bhid', attn, v)
    out = out.transpose(0, 2, 1, 3).reshape(b, n, heads * dim_head)   # 'b n (h d)'
    return out @ w_o.T + b_o                                          # Dropout(0) = id


if __name__ == "__main__":
    query_dim, heads, dim_head = 32, 4, 32
    inner = heads * dim_head                     # 128

    key = jax.random.PRNGKey(0)
    kx, kq, kk, kv, ko, kb, kc, kk2, kv2 = jax.random.split(key, 9)

    # ---- self-attention (context defaults to x); B=4 -> block_b=2, grid of 2.
    B, N = 4, 128
    x = jax.random.normal(kx, (B, N, query_dim), jnp.float32)
    w_q = jax.random.normal(kq, (inner, query_dim), jnp.float32) / jnp.sqrt(query_dim)
    w_k = jax.random.normal(kk, (inner, query_dim), jnp.float32) / jnp.sqrt(query_dim)
    w_v = jax.random.normal(kv, (inner, query_dim), jnp.float32) / jnp.sqrt(query_dim)
    w_o = jax.random.normal(ko, (query_dim, inner), jnp.float32) / jnp.sqrt(inner)
    b_o = jax.random.normal(kb, (query_dim,), jnp.float32) * 0.1

    y = cross_attention_pallas(x, w_q, w_k, w_v, w_o, b_o,
                               heads=heads, dim_head=dim_head)
    y = jax.block_until_ready(y)
    y_ref = _reference(x, w_q, w_k, w_v, w_o, b_o, heads=heads, dim_head=dim_head)
    assert y.shape == (B, N, query_dim)
    # bf16 MXU operands (fp32 accumulation) -> ~1e-2 level absolute error.
    assert jnp.allclose(y, y_ref, atol=2e-2, rtol=2e-2), "self-attention mismatch"

    # ---- cross-attention (explicit context with a different context_dim).
    B2, N2, M2, context_dim = 2, 128, 128, 64
    x2 = jax.random.normal(kx, (B2, N2, query_dim), jnp.float32)
    ctx = jax.random.normal(kc, (B2, M2, context_dim), jnp.float32)
    w_k2 = jax.random.normal(kk2, (inner, context_dim), jnp.float32) / jnp.sqrt(context_dim)
    w_v2 = jax.random.normal(kv2, (inner, context_dim), jnp.float32) / jnp.sqrt(context_dim)
    y2 = cross_attention_pallas(x2, w_q, w_k2, w_v2, w_o, b_o,
                                heads=heads, dim_head=dim_head, context=ctx)
    y2 = jax.block_until_ready(y2)
    y2_ref = _reference(x2, w_q, w_k2, w_v2, w_o, b_o, heads=heads,
                        dim_head=dim_head, context=ctx)
    assert y2.shape == (B2, N2, query_dim)
    assert jnp.allclose(y2, y2_ref, atol=2e-2, rtol=2e-2), "cross-attention mismatch"

    print("KERNEL_OK")
</pallas_src>

<mosaic_0001>
module attributes {stable_mosaic.version = 11 : i64} {
  func.func @_cross_attention_kernel(%arg0: i32, %arg1: memref<32x256xbf16, #tpu.memory_space<vmem>>, %arg2: memref<384x32xbf16, #tpu.memory_space<vmem>>, %arg3: memref<32x128xbf16, #tpu.memory_space<vmem>>, %arg4: memref<32x256xf32, #tpu.memory_space<vmem>>, %arg5: memref<32x256xf32, #tpu.memory_space<vmem>>, %arg6: memref<384x256xbf16, #tpu.memory_space<vmem>>, %arg7: memref<128x256xbf16, #tpu.memory_space<vmem>>) attributes {dimension_semantics = [#tpu.dimension_semantics<parallel>], iteration_bounds = array<i64: 2>, scalar_prefetch = 0 : i64, scratch_operands = 2 : i64, tpu.core_type = #tpu.core_type<tc>, window_params = [{transform_indices = @transform_0, window_bounds = array<i64: 32, 256>}, {pipeline_mode = #tpu.pipeline_mode<synchronous>, transform_indices = @transform_1, window_bounds = array<i64: 384, 32>}, {pipeline_mode = #tpu.pipeline_mode<synchronous>, transform_indices = @transform_2, window_bounds = array<i64: 32, 128>}, {pipeline_mode = #tpu.pipeline_mode<synchronous>, transform_indices = @transform_3, window_bounds = array<i64: 32, 256>}, {transform_indices = @transform_4, window_bounds = array<i64: 32, 256>}]} {
    %c0 = arith.constant 0 : index
    %c0_0 = arith.constant 0 : index
    %0 = vector.load %arg2[%c0, %c0_0] : memref<384x32xbf16, #tpu.memory_space<vmem>>, vector<384x32xbf16>
    %c0_1 = arith.constant 0 : index
    %c0_2 = arith.constant 0 : index
    %1 = vector.load %arg1[%c0_1, %c0_2] : memref<32x256xbf16, #tpu.memory_space<vmem>>, vector<32x256xbf16>
    %cst = arith.constant dense<0.000000e+00> : vector<384x256xf32>
    %2 = tpu.matmul %0, %1, %cst {dimension_numbers = #tpu.dot_dimension_numbers<[1], [0], [0], [1], [0, 0, 1, 1], [], []>} : vector<384x32xbf16>, vector<32x256xbf16>, vector<384x256xf32> -> vector<384x256xf32>
    %3 = arith.truncf %2 : vector<384x256xf32> to vector<384x256xbf16>
    %c0_3 = arith.constant 0 : index
    %c0_4 = arith.constant 0 : index
    %4 = vector.load %arg6[%c0_3, %c0_4] : memref<384x256xbf16, #tpu.memory_space<vmem>>, vector<384x256xbf16>
    tpu.vector_store %arg6[%c0_3, %c0_4], %3 {strides = array<i32>} : memref<384x256xbf16, #tpu.memory_space<vmem>>, vector<384x256xbf16>,
    %c0_5 = arith.constant 0 : index
    %c0_6 = arith.constant 0 : index
    %5 = vector.load %arg6[%c0_5, %c0_6] : memref<384x256xbf16, #tpu.memory_space<vmem>>, vector<32x128xbf16>
    %c128 = arith.constant 128 : index
    %c0_7 = arith.constant 0 : index
    %6 = vector.load %arg6[%c128, %c0_7] : memref<384x256xbf16, #tpu.memory_space<vmem>>, vector<32x128xbf16>
    %cst_8 = arith.constant dense<0.000000e+00> : vector<128x128xf32>
    %7 = tpu.matmul %5, %6, %cst_8 {dimension_numbers = #tpu.dot_dimension_numbers<[0], [0], [1], [1], [0, 1, 1, 1], [], []>} : vector<32x128xbf16>, vector<32x128xbf16>, vector<128x128xf32> -> vector<128x128xf32>
    %cst_9 = arith.constant dense<0xFF800000> : vector<128xf32>
    %8 = vector.multi_reduction <maximumf>, %7, %cst_9 [1] : vector<128x128xf32> to vector<128xf32>
    %9 = vector.shape_cast %8 : vector<128xf32> to vector<128x1xf32>
    %10 = vector.broadcast %9 : vector<128x1xf32> to vector<128x128xf32>
    %11 = arith.subf %7, %10 : vector<128x128xf32>
    %12 = math.exp %11 : vector<128x128xf32>
    %cst_10 = arith.constant dense<0.000000e+00> : vector<128xf32>
    %13 = vector.multi_reduction <add>, %12, %cst_10 [1] : vector<128x128xf32> to vector<128xf32>
    %14 = vector.shape_cast %13 : vector<128xf32> to vector<128x1xf32>
    %15 = vector.broadcast %14 : vector<128x1xf32> to vector<128x128xf32>
    %16 = arith.divf %12, %15 : vector<128x128xf32>
    %c256 = arith.constant 256 : index
    %c0_11 = arith.constant 0 : index
    %17 = vector.load %arg6[%c256, %c0_11] : memref<384x256xbf16, #tpu.memory_space<vmem>>, vector<32x128xbf16>
    %18 = arith.truncf %16 : vector<128x128xf32> to vector<128x128xbf16>
    %cst_12 = arith.constant dense<0.000000e+00> : vector<32x128xf32>
    %19 = tpu.matmul %17, %18, %cst_12 {dimension_numbers = #tpu.dot_dimension_numbers<[1], [1], [0], [0], [0, 0, 1, 0], [], []>} : vector<32x128xbf16>, vector<128x128xbf16>, vector<32x128xf32> -> vector<32x128xf32>
    %20 = arith.truncf %19 : vector<32x128xf32> to vector<32x128xbf16>
    %c0_13 = arith.constant 0 : index
    %c0_14 = arith.constant 0 : index
    %21 = vector.load %arg7[%c0_13, %c0_14] : memref<128x256xbf16, #tpu.memory_space<vmem>>, vector<32x128xbf16>
    tpu.vector_store %arg7[%c0_13, %c0_14], %20 {strides = array<i32>} : memref<128x256xbf16, #tpu.memory_space<vmem>>, vector<32x128xbf16>,
    %c32 = arith.constant 32 : index
    %c0_15 = arith.constant 0 : index
    %22 = vector.load %arg6[%c32, %c0_15] : memref<384x256xbf16, #tpu.memory_space<vmem>>, vector<32x128xbf16>
    %c160 = arith.constant 160 : index
    %c0_16 = arith.constant 0 : index
    %23 = vector.load %arg6[%c160, %c0_16] : memref<384x256xbf16, #tpu.memory_space<vmem>>, vector<32x128xbf16>
    %cst_17 = arith.constant dense<0.000000e+00> : vector<128x128xf32>
    %24 = tpu.matmul %22, %23, %cst_17 {dimension_numbers = #tpu.dot_dimension_numbers<[0], [0], [1], [1], [0, 1, 1, 1], [], []>} : vector<32x128xbf16>, vector<32x128xbf16>, vector<128x128xf32> -> vector<128x128xf32>
    %cst_18 = arith.constant dense<0xFF800000> : vector<128xf32>
    %25 = vector.multi_reduction <maximumf>, %24, %cst_18 [1] : vector<128x128xf32> to vector<128xf32>
    %26 = vector.shape_cast %25 : vector<128xf32> to vector<128x1xf32>
    %27 = vector.broadcast %26 : vector<128x1xf32> to vector<128x128xf32>
    %28 = arith.subf %24, %27 : vector<128x128xf32>
    %29 = math.exp %28 : vector<128x128xf32>
    %cst_19 = arith.constant dense<0.000000e+00> : vector<128xf32>
    %30 = vector.multi_reduction <add>, %29, %cst_19 [1] : vector<128x128xf32> to vector<128xf32>
    %31 = vector.shape_cast %30 : vector<128xf32> to vector<128x1xf32>
    %32 = vector.broadcast %31 : vector<128x1xf32> to vector<128x128xf32>
    %33 = arith.divf %29, %32 : vector<128x128xf32>
    %c288 = arith.constant 288 : index
    %c0_20 = arith.constant 0 : index
    %34 = vector.load %arg6[%c288, %c0_20] : memref<384x256xbf16, #tpu.memory_space<vmem>>, vector<32x128xbf16>
    %35 = arith.truncf %33 : vector<128x128xf32> to vector<128x128xbf16>
    %cst_21 = arith.constant dense<0.000000e+00> : vector<32x128xf32>
    %36 = tpu.matmul %34, %35, %cst_21 {dimension_numbers = #tpu.dot_dimension_numbers<[1], [1], [0], [0], [0, 0, 1, 0], [], []>} : vector<32x128xbf16>, vector<128x128xbf16>, vector<32x128xf32> -> vector<32x128xf32>
    %37 = arith.truncf %36 : vector<32x128xf32> to vector<32x128xbf16>
    %c32_22 = arith.constant 32 : index
    %c0_23 = arith.constant 0 : index
    %38 = vector.load %arg7[%c32_22, %c0_23] : memref<128x256xbf16, #tpu.memory_space<vmem>>, vector<32x128xbf16>
    tpu.vector_store %arg7[%c32_22, %c0_23], %37 {strides = array<i32>} : memref<128x256xbf16, #tpu.memory_space<vmem>>, vector<32x128xbf16>,
    %c64 = arith.constant 64 : index
    %c0_24 = arith.constant 0 : index
    %39 = vector.load %arg6[%c64, %c0_24] : memref<384x256xbf16, #tpu.memory_space<vmem>>, vector<32x128xbf16>
    %c192 = arith.constant 192 : index
    %c0_25 = arith.constant 0 : index
    %40 = vector.load %arg6[%c192, %c0_25] : memref<384x256xbf16, #tpu.memory_space<vmem>>, vector<32x128xbf16>
    %cst_26 = arith.constant dense<0.000000e+00> : vector<128x128xf32>
    %41 = tpu.matmul %39, %40, %cst_26 {dimension_numbers = #tpu.dot_dimension_numbers<[0], [0], [1], [1], [0, 1, 1, 1], [], []>} : vector<32x128xbf16>, vector<32x128xbf16>, vector<128x128xf32> -> vector<128x128xf32>
    %cst_27 = arith.constant dense<0xFF800000> : vector<128xf32>
    %42 = vector.multi_reduction <maximumf>, %41, %cst_27 [1] : vector<128x128xf32> to vector<128xf32>
    %43 = vector.shape_cast %42 : vector<128xf32> to vector<128x1xf32>
    %44 = vector.broadcast %43 : vector<128x1xf32> to vector<128x128xf32>
    %45 = arith.subf %41, %44 : vector<128x128xf32>
    %46 = math.exp %45 : vector<128x128xf32>
    %cst_28 = arith.constant dense<0.000000e+00> : vector<128xf32>
    %47 = vector.multi_reduction <add>, %46, %cst_28 [1] : vector<128x128xf32> to vector<128xf32>
    %48 = vector.shape_cast %47 : vector<128xf32> to vector<128x1xf32>
    %49 = vector.broadcast %48 : vector<128x1xf32> to vector<128x128xf32>
    %50 = arith.divf %46, %49 : vector<128x128xf32>
    %c320 = arith.constant 320 : index
    %c0_29 = arith.constant 0 : index
    %51 = vector.load %arg6[%c320, %c0_29] : memref<384x256xbf16, #tpu.memory_space<vmem>>, vector<32x128xbf16>
    %52 = arith.truncf %50 : vector<128x128xf32> to vector<128x128xbf16>
    %cst_30 = arith.constant dense<0.000000e+00> : vector<32x128xf32>
    %53 = tpu.matmul %51, %52, %cst_30 {dimension_numbers = #tpu.dot_dimension_numbers<[1], [1], [0], [0], [0, 0, 1, 0], [], []>} : vector<32x128xbf16>, vector<128x128xbf16>, vector<32x128xf32> -> vector<32x128xf32>
    %54 = arith.truncf %53 : vector<32x128xf32> to vector<32x128xbf16>
    %c64_31 = arith.constant 64 : index
    %c0_32 = arith.constant 0 : index
    %55 = vector.load %arg7[%c64_31, %c0_32] : memref<128x256xbf16, #tpu.memory_space<vmem>>, vector<32x128xbf16>
    tpu.vector_store %arg7[%c64_31, %c0_32], %54 {strides = array<i32>} : memref<128x256xbf16, #tpu.memory_space<vmem>>, vector<32x128xbf16>,
    %c96 = arith.constant 96 : index
    %c0_33 = arith.constant 0 : index
    %56 = vector.load %arg6[%c96, %c0_33] : memref<384x256xbf16, #tpu.memory_space<vmem>>, vector<32x128xbf16>
    %c224 = arith.constant 224 : index
    %c0_34 = arith.constant 0 : index
    %57 = vector.load %arg6[%c224, %c0_34] : memref<384x256xbf16, #tpu.memory_space<vmem>>, vector<32x128xbf16>
    %cst_35 = arith.constant dense<0.000000e+00> : vector<128x128xf32>
    %58 = tpu.matmul %56, %57, %cst_35 {dimension_numbers = #tpu.dot_dimension_numbers<[0], [0], [1], [1], [0, 1, 1, 1], [], []>} : vector<32x128xbf16>, vector<32x128xbf16>, vector<128x128xf32> -> vector<128x128xf32>
    %cst_36 = arith.constant dense<0xFF800000> : vector<128xf32>
    %59 = vector.multi_reduction <maximumf>, %58, %cst_36 [1] : vector<128x128xf32> to vector<128xf32>
    %60 = vector.shape_cast %59 : vector<128xf32> to vector<128x1xf32>
    %61 = vector.broadcast %60 : vector<128x1xf32> to vector<128x128xf32>
    %62 = arith.subf %58, %61 : vector<128x128xf32>
    %63 = math.exp %62 : vector<128x128xf32>
    %cst_37 = arith.constant dense<0.000000e+00> : vector<128xf32>
    %64 = vector.multi_reduction <add>, %63, %cst_37 [1] : vector<128x128xf32> to vector<128xf32>
    %65 = vector.shape_cast %64 : vector<128xf32> to vector<128x1xf32>
    %66 = vector.broadcast %65 : vector<128x1xf32> to vector<128x128xf32>
    %67 = arith.divf %63, %66 : vector<128x128xf32>
    %c352 = arith.constant 352 : index
    %c0_38 = arith.constant 0 : index
    %68 = vector.load %arg6[%c352, %c0_38] : memref<384x256xbf16, #tpu.memory_space<vmem>>, vector<32x128xbf16>
    %69 = arith.truncf %67 : vector<128x128xf32> to vector<128x128xbf16>
    %cst_39 = arith.constant dense<0.000000e+00> : vector<32x128xf32>
    %70 = tpu.matmul %68, %69, %cst_39 {dimension_numbers = #tpu.dot_dimension_numbers<[1], [1], [0], [0], [0, 0, 1, 0], [], []>} : vector<32x128xbf16>, vector<128x128xbf16>, vector<32x128xf32> -> vector<32x128xf32>
    %71 = arith.truncf %70 : vector<32x128xf32> to vector<32x128xbf16>
    %c96_40 = arith.constant 96 : index
    %c0_41 = arith.constant 0 : index
    %72 = vector.load %arg7[%c96_40, %c0_41] : memref<128x256xbf16, #tpu.memory_space<vmem>>, vector<32x128xbf16>
    tpu.vector_store %arg7[%c96_40, %c0_41], %71 {strides = array<i32>} : memref<128x256xbf16, #tpu.memory_space<vmem>>, vector<32x128xbf16>,
    %c0_42 = arith.constant 0 : index
    %c128_43 = arith.constant 128 : index
    %73 = vector.load %arg6[%c0_42, %c128_43] : memref<384x256xbf16, #tpu.memory_space<vmem>>, vector<32x128xbf16>
    %c128_44 = arith.constant 128 : index
    %c128_45 = arith.constant 128 : index
    %74 = vector.load %arg6[%c128_44, %c128_45] : memref<384x256xbf16, #tpu.memory_space<vmem>>, vector<32x128xbf16>
    %cst_46 = arith.constant dense<0.000000e+00> : vector<128x128xf32>
    %75 = tpu.matmul %73, %74, %cst_46 {dimension_numbers = #tpu.dot_dimension_numbers<[0], [0], [1], [1], [0, 1, 1, 1], [], []>} : vector<32x128xbf16>, vector<32x128xbf16>, vector<128x128xf32> -> vector<128x128xf32>
    %cst_47 = arith.constant dense<0xFF800000> : vector<128xf32>
    %76 = vector.multi_reduction <maximumf>, %75, %cst_47 [1] : vector<128x128xf32> to vector<128xf32>
    %77 = vector.shape_cast %76 : vector<128xf32> to vector<128x1xf32>
    %78 = vector.broadcast %77 : vector<128x1xf32> to vector<128x128xf32>
    %79 = arith.subf %75, %78 : vector<128x128xf32>
    %80 = math.exp %79 : vector<128x128xf32>
    %cst_48 = arith.constant dense<0.000000e+00> : vector<128xf32>
    %81 = vector.multi_reduction <add>, %80, %cst_48 [1] : vector<128x128xf32> to vector<128xf32>
    %82 = vector.shape_cast %81 : vector<128xf32> to vector<128x1xf32>
    %83 = vector.broadcast %82 : vector<128x1xf32> to vector<128x128xf32>
    %84 = arith.divf %80, %83 : vector<128x128xf32>
    %c256_49 = arith.constant 256 : index
    %c128_50 = arith.constant 128 : index
    %85 = vector.load %arg6[%c256_49, %c128_50] : memref<384x256xbf16, #tpu.memory_space<vmem>>, vector<32x128xbf16>
    %86 = arith.truncf %84 : vector<128x128xf32> to vector<128x128xbf16>
    %cst_51 = arith.constant dense<0.000000e+00> : vector<32x128xf32>
    %87 = tpu.matmul %85, %86, %cst_51 {dimension_numbers = #tpu.dot_dimension_numbers<[1], [1], [0], [0], [0, 0, 1, 0], [], []>} : vector<32x128xbf16>, vector<128x128xbf16>, vector<32x128xf32> -> vector<32x128xf32>
    %88 = arith.truncf %87 : vector<32x128xf32> to vector<32x128xbf16>
    %c0_52 = arith.constant 0 : index
    %c128_53 = arith.constant 128 : index
    %89 = vector.load %arg7[%c0_52, %c128_53] : memref<128x256xbf16, #tpu.memory_space<vmem>>, vector<32x128xbf16>
    tpu.vector_store %arg7[%c0_52, %c128_53], %88 {strides = array<i32>} : memref<128x256xbf16, #tpu.memory_space<vmem>>, vector<32x128xbf16>,
    %c32_54 = arith.constant 32 : index
    %c128_55 = arith.constant 128 : index
    %90 = vector.load %arg6[%c32_54, %c128_55] : memref<384x256xbf16, #tpu.memory_space<vmem>>, vector<32x128xbf16>
    %c160_56 = arith.constant 160 : index
    %c128_57 = arith.constant 128 : index
    %91 = vector.load %arg6[%c160_56, %c128_57] : memref<384x256xbf16, #tpu.memory_space<vmem>>, vector<32x128xbf16>
    %cst_58 = arith.constant dense<0.000000e+00> : vector<128x128xf32>
    %92 = tpu.matmul %90, %91, %cst_58 {dimension_numbers = #tpu.dot_dimension_numbers<[0], [0], [1], [1], [0, 1, 1, 1], [], []>} : vector<32x128xbf16>, vector<32x128xbf16>, vector<128x128xf32> -> vector<128x128xf32>
    %cst_59 = arith.constant dense<0xFF800000> : vector<128xf32>
    %93 = vector.multi_reduction <maximumf>, %92, %cst_59 [1] : vector<128x128xf32> to vector<128xf32>
    %94 = vector.shape_cast %93 : vector<128xf32> to vector<128x1xf32>
    %95 = vector.broadcast %94 : vector<128x1xf32> to vector<128x128xf32>
    %96 = arith.subf %92, %95 : vector<128x128xf32>
    %97 = math.exp %96 : vector<128x128xf32>
    %cst_60 = arith.constant dense<0.000000e+00> : vector<128xf32>
    %98 = vector.multi_reduction <add>, %97, %cst_60 [1] : vector<128x128xf32> to vector<128xf32>
    %99 = vector.shape_cast %98 : vector<128xf32> to vector<128x1xf32>
    %100 = vector.broadcast %99 : vector<128x1xf32> to vector<128x128xf32>
    %101 = arith.divf %97, %100 : vector<128x128xf32>
    %c288_61 = arith.constant 288 : index
    %c128_62 = arith.constant 128 : index
    %102 = vector.load %arg6[%c288_61, %c128_62] : memref<384x256xbf16, #tpu.memory_space<vmem>>, vector<32x128xbf16>
    %103 = arith.truncf %101 : vector<128x128xf32> to vector<128x128xbf16>
    %cst_63 = arith.constant dense<0.000000e+00> : vector<32x128xf32>
    %104 = tpu.matmul %102, %103, %cst_63 {dimension_numbers = #tpu.dot_dimension_numbers<[1], [1], [0], [0], [0, 0, 1, 0], [], []>} : vector<32x128xbf16>, vector<128x128xbf16>, vector<32x128xf32> -> vector<32x128xf32>
    %105 = arith.truncf %104 : vector<32x128xf32> to vector<32x128xbf16>
    %c32_64 = arith.constant 32 : index
    %c128_65 = arith.constant 128 : index
    %106 = vector.load %arg7[%c32_64, %c128_65] : memref<128x256xbf16, #tpu.memory_space<vmem>>, vector<32x128xbf16>
    tpu.vector_store %arg7[%c32_64, %c128_65], %105 {strides = array<i32>} : memref<128x256xbf16, #tpu.memory_space<vmem>>, vector<32x128xbf16>,
    %c64_66 = arith.constant 64 : index
    %c128_67 = arith.constant 128 : index
    %107 = vector.load %arg6[%c64_66, %c128_67] : memref<384x256xbf16, #tpu.memory_space<vmem>>, vector<32x128xbf16>
    %c192_68 = arith.constant 192 : index
    %c128_69 = arith.constant 128 : index
    %108 = vector.load %arg6[%c192_68, %c128_69] : memref<384x256xbf16, #tpu.memory_space<vmem>>, vector<32x128xbf16>
    %cst_70 = arith.constant dense<0.000000e+00> : vector<128x128xf32>
    %109 = tpu.matmul %107, %108, %cst_70 {dimension_numbers = #tpu.dot_dimension_numbers<[0], [0], [1], [1], [0, 1, 1, 1], [], []>} : vector<32x128xbf16>, vector<32x128xbf16>, vector<128x128xf32> -> vector<128x128xf32>
    %cst_71 = arith.constant dense<0xFF800000> : vector<128xf32>
    %110 = vector.multi_reduction <maximumf>, %109, %cst_71 [1] : vector<128x128xf32> to vector<128xf32>
    %111 = vector.shape_cast %110 : vector<128xf32> to vector<128x1xf32>
    %112 = vector.broadcast %111 : vector<128x1xf32> to vector<128x128xf32>
    %113 = arith.subf %109, %112 : vector<128x128xf32>
    %114 = math.exp %113 : vector<128x128xf32>
    %cst_72 = arith.constant dense<0.000000e+00> : vector<128xf32>
    %115 = vector.multi_reduction <add>, %114, %cst_72 [1] : vector<128x128xf32> to vector<128xf32>
    %116 = vector.shape_cast %115 : vector<128xf32> to vector<128x1xf32>
    %117 = vector.broadcast %116 : vector<128x1xf32> to vector<128x128xf32>
    %118 = arith.divf %114, %117 : vector<128x128xf32>
    %c320_73 = arith.constant 320 : index
    %c128_74 = arith.constant 128 : index
    %119 = vector.load %arg6[%c320_73, %c128_74] : memref<384x256xbf16, #tpu.memory_space<vmem>>, vector<32x128xbf16>
    %120 = arith.truncf %118 : vector<128x128xf32> to vector<128x128xbf16>
    %cst_75 = arith.constant dense<0.000000e+00> : vector<32x128xf32>
    %121 = tpu.matmul %119, %120, %cst_75 {dimension_numbers = #tpu.dot_dimension_numbers<[1], [1], [0], [0], [0, 0, 1, 0], [], []>} : vector<32x128xbf16>, vector<128x128xbf16>, vector<32x128xf32> -> vector<32x128xf32>
    %122 = arith.truncf %121 : vector<32x128xf32> to vector<32x128xbf16>
    %c64_76 = arith.constant 64 : index
    %c128_77 = arith.constant 128 : index
    %123 = vector.load %arg7[%c64_76, %c128_77] : memref<128x256xbf16, #tpu.memory_space<vmem>>, vector<32x128xbf16>
    tpu.vector_store %arg7[%c64_76, %c128_77], %122 {strides = array<i32>} : memref<128x256xbf16, #tpu.memory_space<vmem>>, vector<32x128xbf16>,
    %c96_78 = arith.constant 96 : index
    %c128_79 = arith.constant 128 : index
    %124 = vector.load %arg6[%c96_78, %c128_79] : memref<384x256xbf16, #tpu.memory_space<vmem>>, vector<32x128xbf16>
    %c224_80 = arith.constant 224 : index
    %c128_81 = arith.constant 128 : index
    %125 = vector.load %arg6[%c224_80, %c128_81] : memref<384x256xbf16, #tpu.memory_space<vmem>>, vector<32x128xbf16>
    %cst_82 = arith.constant dense<0.000000e+00> : vector<128x128xf32>
    %126 = tpu.matmul %124, %125, %cst_82 {dimension_numbers = #tpu.dot_dimension_numbers<[0], [0], [1], [1], [0, 1, 1, 1], [], []>} : vector<32x128xbf16>, vector<32x128xbf16>, vector<128x128xf32> -> vector<128x128xf32>
    %cst_83 = arith.constant dense<0xFF800000> : vector<128xf32>
    %127 = vector.multi_reduction <maximumf>, %126, %cst_83 [1] : vector<128x128xf32> to vector<128xf32>
    %128 = vector.shape_cast %127 : vector<128xf32> to vector<128x1xf32>
    %129 = vector.broadcast %128 : vector<128x1xf32> to vector<128x128xf32>
    %130 = arith.subf %126, %129 : vector<128x128xf32>
    %131 = math.exp %130 : vector<128x128xf32>
    %cst_84 = arith.constant dense<0.000000e+00> : vector<128xf32>
    %132 = vector.multi_reduction <add>, %131, %cst_84 [1] : vector<128x128xf32> to vector<128xf32>
    %133 = vector.shape_cast %132 : vector<128xf32> to vector<128x1xf32>
    %134 = vector.broadcast %133 : vector<128x1xf32> to vector<128x128xf32>
    %135 = arith.divf %131, %134 : vector<128x128xf32>
    %c352_85 = arith.constant 352 : index
    %c128_86 = arith.constant 128 : index
    %136 = vector.load %arg6[%c352_85, %c128_86] : memref<384x256xbf16, #tpu.memory_space<vmem>>, vector<32x128xbf16>
    %137 = arith.truncf %135 : vector<128x128xf32> to vector<128x128xbf16>
    %cst_87 = arith.constant dense<0.000000e+00> : vector<32x128xf32>
    %138 = tpu.matmul %136, %137, %cst_87 {dimension_numbers = #tpu.dot_dimension_numbers<[1], [1], [0], [0], [0, 0, 1, 0], [], []>} : vector<32x128xbf16>, vector<128x128xbf16>, vector<32x128xf32> -> vector<32x128xf32>
    %139 = arith.truncf %138 : vector<32x128xf32> to vector<32x128xbf16>
    %c96_88 = arith.constant 96 : index
    %c128_89 = arith.constant 128 : index
    %140 = vector.load %arg7[%c96_88, %c128_89] : memref<128x256xbf16, #tpu.memory_space<vmem>>, vector<32x128xbf16>
    tpu.vector_store %arg7[%c96_88, %c128_89], %139 {strides = array<i32>} : memref<128x256xbf16, #tpu.memory_space<vmem>>, vector<32x128xbf16>,
    %c0_90 = arith.constant 0 : index
    %c0_91 = arith.constant 0 : index
    %141 = vector.load %arg3[%c0_90, %c0_91] : memref<32x128xbf16, #tpu.memory_space<vmem>>, vector<32x128xbf16>
    %c0_92 = arith.constant 0 : index
    %c0_93 = arith.constant 0 : index
    %142 = vector.load %arg7[%c0_92, %c0_93] : memref<128x256xbf16, #tpu.memory_space<vmem>>, vector<128x256xbf16>
    %cst_94 = arith.constant dense<0.000000e+00> : vector<32x256xf32>
    %143 = tpu.matmul %141, %142, %cst_94 {dimension_numbers = #tpu.dot_dimension_numbers<[1], [0], [0], [1], [0, 0, 1, 1], [], []>} : vector<32x128xbf16>, vector<128x256xbf16>, vector<32x256xf32> -> vector<32x256xf32>
    %c0_95 = arith.constant 0 : index
    %c0_96 = arith.constant 0 : index
    %144 = vector.load %arg4[%c0_95, %c0_96] : memref<32x256xf32, #tpu.memory_space<vmem>>, vector<32x256xf32>
    %145 = arith.addf %143, %144 : vector<32x256xf32>
    %c0_97 = arith.constant 0 : index
    %c0_98 = arith.constant 0 : index
    %146 = vector.load %arg5[%c0_97, %c0_98] : memref<32x256xf32, #tpu.memory_space<vmem>>, vector<32x256xf32>
    tpu.vector_store %arg5[%c0_97, %c0_98], %145 {strides = array<i32>} : memref<32x256xf32, #tpu.memory_space<vmem>>, vector<32x256xf32>,
    return
  }
  func.func @transform_0(%arg0: i32) -> (i32, i32) {
    %c0_i32 = arith.constant 0 : i32
    %c0_i32_0 = arith.constant 0 : i32
    return %c0_i32, %arg0 : i32, i32
  }
  func.func @transform_1(%arg0: i32) -> (i32, i32) {
    %c0_i32 = arith.constant 0 : i32
    %c0_i32_0 = arith.constant 0 : i32
    %c0_i32_1 = arith.constant 0 : i32
    return %c0_i32, %c0_i32_0 : i32, i32
  }
  func.func @transform_2(%arg0: i32) -> (i32, i32) {
    %c0_i32 = arith.constant 0 : i32
    %c0_i32_0 = arith.constant 0 : i32
    %c0_i32_1 = arith.constant 0 : i32
    return %c0_i32, %c0_i32_0 : i32, i32
  }
  func.func @transform_3(%arg0: i32) -> (i32, i32) {
    %c0_i32 = arith.constant 0 : i32
    %c0_i32_0 = arith.constant 0 : i32
    %c0_i32_1 = arith.constant 0 : i32
    return %c0_i32, %c0_i32_0 : i32, i32
  }
  func.func @transform_4(%arg0: i32) -> (i32, i32) {
    %c0_i32 = arith.constant 0 : i32
    %c0_i32_0 = arith.constant 0 : i32
    return %c0_i32, %arg0 : i32, i32
  }
}

</mosaic_0001>

<bundles_post_ra>
// kernel: tpu_custom_call.1
= control target key start
LH: loop header
LB: loop body
LE: loop exit
PB: predicated region body
PF: predicated region fallthrough
CT: control target
= control target key end

     0   :  { %9 = vsyncpa [#allocation6], 0  ;;  %s6844_s0 = inlined_call_operand.vmem [shape: bf16[32,512], index: 0, kind: input, shape index: {}]   ;;  %s6845_s1 = inlined_call_operand.vmem [shape: bf16[384,32], index: 1, kind: input, shape index: {}]   ;;  %s6846_s2 = inlined_call_operand.vmem [shape: bf16[32,128], index: 2, kind: input, shape index: {}]   ;;  %s6847_s3 = inlined_call_operand.vmem [shape: f32[32,256], index: 3, kind: input, shape index: {}]   ;;  %s6848_s4 = inlined_call_operand.hbm [shape: f32[32,512], index: 4, kind: output, shape index: {}]  }
   0x1   :  { %11 = vsyncpa [#allocation6 + $0x1], 0  ;;  %s5142_s15 = smov 0   ;;  %s5144_s16 = smov 0  }
   0x2   :  { %s5146_s17 = smov 0   ;;  %s5148_s18 = smov 0  }
   0x3 LB: > { %s3846_s19 = sadd.s32 4294967295, %s5110_s18   ;;  %s3847_s20 = sadd.s32 4294967294, %s5110_s18   ;;  %s5110_s18 = sphi %s5148_s18, %s6977_s18   ;;  %s5106_s17 = sphi %s5146_s17, %s6976_s17   ;;  %s5102_s16 = sphi %s5144_s16, %s6975_s16   ;;  %s5098_s15 = sphi %s5142_s15, %s6974_s15  }
   0x4   : > { %s5165_s21 = sadd.s32 1, %s5110_s18   ;;  %s24_s22 = sadd.s32 1, %s5106_s17 }
   0x5   : > { %s21_s23 = ssub.s32 %s5110_s18, %s5165_s21  ;;  %p31_p0 = scmp.ne.s32.totalorder %s5106_s17, %s5102_s16 }
   0x6   : > { %p22_p1 = scmp.eq.s32.totalorder %s21_s23, 0  ;;  %p32_p2 = scmp.eq.s32.totalorder %s5110_s18, 0 }
   0x7   : > { %p124_p3 = scmp.eq.s32.totalorder %s3846_s19, 1  ;;  %p129_p4 = scmp.ne.s32.totalorder %s5102_s16, %s5098_s15 }
   0x8   : > { %s5178_s24 = scalar_select %p22_p1, %s5106_s17, %s24_s22  }
   0x9   : > { %p33_p5 = por %p32_p2, %p31_p0  ;;  %p5180_p6 = por %p124_p3, %p31_p0 }
   0xa   : > { %p130_p7 = scmp.eq.s32.totalorder %s3847_s20, 1  ;;  %p3849_p9 = scmp.ge.s32.totalorder %s5110_s18, 2 }
   0xc   : > { %p5184_p8 = por %p130_p7, %p129_p4  ;;  %155 = sbr.rel (%p3849_p9) target bundleno = 26 (0x1a), region = 28 }
  0x13   : > { %158 = sbr.rel (!%p33_p5) target bundleno = 26 (0x1a), region = 32  ;;  %s160_s27 = sand.u32 (%p33_p5), 1, %s5106_s17  }
  0x14   : > { %s3979_s28 = sshll.u32 (%p33_p5), %s5110_s18, 3  ;;  %s3850_s29 = sshll.u32 (%p33_p5), %s160_s27, 5 }
  0x15   : > { %s165_s6 = scalar_lea.vmem (%p33_p5), %s6844_s0, %s3979_s28  ;;  %s162_s7 = scalar_lea.vmem (%p33_p5), [#allocation4], %s3850_s29 }
  0x16   : > { %v199_v0 = vld [vmem:[%s165_s6] sm:$0xff] (%p33_p5)  ;;  %v201_v1 = vld [vmem:[%s165_s6 + $0x10] sm:$0xff] (%p33_p5) }
  0x17   : > { %v203_v2 = vld [vmem:[%s165_s6 + $0x20] sm:$0xff] (%p33_p5)  ;;  %200 = vst [vmem:[%s162_s7] sm:$0xff] (%p33_p5), %v199_v0  ;;  %202 = vst [vmem:[%s162_s7 + $0x8] sm:$0xff] (%p33_p5), %v201_v1  ;;  %v205_v3 = vld [vmem:[%s165_s6 + $0x30] sm:$0xff] (%p33_p5) }
  0x18   : > { %204 = vst [vmem:[%s162_s7 + $0x10] sm:$0xff] (%p33_p5), %v203_v2  ;;  %206 = vst [vmem:[%s162_s7 + $0x18] sm:$0xff] (%p33_p5), %v205_v3 }
  0x1a PF: > { %p3853_p10 = scmp.ge.s32.totalorder %s5110_s18, 1  ;;  %p211_p11 = scmp.lt.s32.totalorder %s5110_s18, 3 }
  0x1c   : > { %p212_p12 = pnand %p3853_p10, %p211_p11 }
  0x1e   : > { %215 = sbr.rel (%p212_p12) target bundleno = 3875 (0xf23), region = 70 }
  0x25   : > { %s5199_s8 = sand.u32 1, %s5102_s16   ;;  %v6849_v4 = vmov 0   ;;  %v4510_v9 = vld [vmem:[%s6845_s1] sm:$0xff]   ;;  %vm438_vm0 = vcmask 261120   ;;  %v4511_v10 = vld [vmem:[%s6845_s1 + $0x8] sm:$0xff]   ;;  %v4512_v11 = vld [vmem:[%s6845_s1 + $0x10] sm:$0xff]  }
  0x26   : > { %s3854_s9 = sshll.u32 %s5199_s8, 5  ;;  %543 = vmatprep.mubr.bf16.mxu0 %v6849_v4  ;;  %v4513_v12 = vld [vmem:[%s6845_s1 + $0x18] sm:$0xff]   ;;  %v4514_v13 = vld [vmem:[%s6845_s1 + $0x20] sm:$0xff]   ;;  %v4515_v14 = vld [vmem:[%s6845_s1 + $0x28] sm:$0xff]   ;;  %s3855_s20 = sshll.u32 %s5199_s8, 6 }
  0x27   : > { %s220_s10 = scalar_lea.vmem [#allocation4], %s3854_s9  ;;  %v4516_v15 = vld [vmem:[%s6845_s1 + $0x30] sm:$0xff]   ;;  %v4517_v16 = vld [vmem:[%s6845_s1 + $0x38] sm:$0xff]   ;;  %v4518_v17 = vld [vmem:[%s6845_s1 + $0x40] sm:$0xff]   ;;  %s242_s7 = scalar_lea.vmem [#allocation5], %s3855_s20 }
  0x28   : > { %v4504_v5 = vld [vmem:[%s220_s10 + $0x4] ss:$8 sps:$4 sm:$0xff]   ;;  %v4506_v6 = vld [vmem:[%s220_s10] ss:$8 sps:$4 sm:$0xff]   ;;  %v4507_v7 = vld [vmem:[%s220_s10 + $0x14] ss:$8 sps:$4 sm:$0xff]  }
  0x29   : > { %511 = vmatprep.subr.bf16.mxu0 %v4504_v5  ;;  %v4509_v8 = vld [vmem:[%s220_s10 + $0x10] ss:$8 sps:$4 sm:$0xff]   ;;  %v4519_v18 = vld [vmem:[%s6845_s1 + $0x48] sm:$0xff]   ;;  %s3779_s11 = sshll.u32 %s242_s7, 4  ;;  %s3980_s20 = sshll.u32 %s3846_s19, 8  ;;  %s6795_s11 = int_to_ptr.vmem [resolvable:$true] %s3779_s11 }
  0x2a   : > { %512 = vmatpush1.bf16.msra.mxu0 %v4506_v6  ;;  %s6800_s19 = scalar_lea.hbm %s6848_s4, %s3980_s20  ;;  %s3766_s30 = scalar_lea.sflag [#allocation6], %s5199_s8 }
  0x2b   : > { %513 = vmatprep.subr.bf16.mxu0 %v4507_v7  ;;  %s5048_s5 = scalar_lea.vmem %s6795_s11, 1024  ;;  %s5113_s6 = smov [#allocation5]  }
  0x2c   : > { %p5049_p13 = scmp.ne.s32.totalorder %s6795_s11, %s5048_s5  ;;  %s5052_s9 = sshll.u32 %s5113_s6, 4  ;;  %s5053_s9 = int_to_ptr.vmem [resolvable:$false] %s5052_s9 }
  0x2d   : > { %s5054_s10 = scalar_lea.vmem %s5053_s9, 2048  ;;  %p5055_p2 = scmp.lt.s32.totalorder %s6795_s11, %s5053_s9 }
  0x2e   : > { %514 = vmatpush1.bf16.msra.mxu0 %v4509_v8  ;;  %p5050_p0 = pnand %p5049_p13, %p5180_p6  ;;  %p5056_p3 = scmp.lt.s32.totalorder %s5054_s10, %s5048_s5 }
  0x30   : > { %p5051_p1 = pneg %p5050_p0  ;;  %p5057_p4 = por %p5056_p3, %p5055_p2 }
  0x31   : > { %3884 = vmatmul.mubr.msk.bf16.vlgmr.msra.gmra.mrb[0].mxu0 %vm438_vm0, %v4510_v9 }
  0x32   : > { %553 = vmatprep.mubr.bf16.mxu0 %v6849_v4  ;;  %p5058_p5 = pnand %p5057_p4, %p5051_p1 }
  0x39   : > { %3885 = vmatmul.mubr.msk.bf16.gmra.mrb[4].mxu0 %vm438_vm0, %v4511_v10 }
  0x3a   : > { %563 = vmatprep.mubr.bf16.mxu0 %v6849_v4 }
  0x41   : > { %3886 = vmatmul.mubr.msk.bf16.gmra.mrb[8].mxu0 %vm438_vm0, %v4512_v11 }
  0x42   : > { %573 = vmatprep.mubr.bf16.mxu0 %v6849_v4 }
  0x49   : > { %3887 = vmatmul.mubr.msk.bf16.gmra.mrb[12].mxu0 %vm438_vm0, %v4513_v12 }
  0x4a   : > { %583 = vmatprep.mubr.bf16.mxu0 %v6849_v4 }
  0x51   : > { %3888 = vmatmul.mubr.msk.bf16.gmra.mrb[16].mxu0 %vm438_vm0, %v4514_v13 }
  0x52   : > { %593 = vmatprep.mubr.bf16.mxu0 %v6849_v4 }
  0x59   : > { %3889 = vmatmul.mubr.msk.bf16.gmra.mrb[20].mxu0 %vm438_vm0, %v4515_v14 }
  0x5a   : > { %603 = vmatprep.mubr.bf16.mxu0 %v6849_v4 }
  0x61   : > { %3890 = vmatmul.mubr.msk.bf16.gmra.mrb[24].mxu0 %vm438_vm0, %v4516_v15 }
  0x62   : > { %613 = vmatprep.mubr.bf16.mxu0 %v6849_v4 }
  0x69   : > { %3891 = vmatmul.mubr.msk.bf16.gmra.mrb[28].mxu0 %vm438_vm0, %v4517_v16 }
  0x6a   : > { %623 = vmatprep.mubr.bf16.mxu0 %v6849_v4 }
  0x71   : > { %3892 = vmatmul.mubr.msk.bf16.gmra.mrb[32].mxu0 %vm438_vm0, %v4518_v17 }
  0x72   : > { %633 = vmatprep.mubr.bf16.mxu0 %v6849_v4 }
  0x79   : > { %3893 = vmatmul.mubr.msk.bf16.gmra.mrb[36].mxu0 %vm438_vm0, %v4519_v18 }
  0x7a   : > { %643 = vmatprep.mubr.bf16.mxu0 %v6849_v4 }
 0x104   : > { %v545_v19 = vpop.f32.mrb[0].mxu0 }
 0x105   : > { %v5253_v20 = vpop.f32.mrb[1].mxu0 }
 0x106   : > { %v549_v21 = vpop.f32.mrb[2].mxu0 }
 0x107   : > { %v5255_v22 = vpop.f32.mrb[3].mxu0  ;;  %v784_v23 = vpack.c.bf16 %v549_v21, %v545_v19 }
 0x109   : > { %884 = vxpose.xlu0.c.b16.start [1/2] (short) %v784_v23, 128 }
 0x10c   : > { %v555_v25 = vpop.f32.mrb[4].mxu0 }
 0x10d   : > { %v5259_v26 = vpop.f32.mrb[5].mxu0 }
 0x10e   : > { %v559_v27 = vpop.f32.mrb[6].mxu0 }
 0x10f   : > { %v786_v28 = vpack.c.bf16 %v559_v27, %v555_v25  ;;  %v5261_v29 = vpop.f32.mrb[7].mxu0 }
 0x111   : > { %885 = vxpose.xlu0.c.b16.end [2/2] (short) %v786_v28, 128  ;;  %v4520_v28 = vld [vmem:[%s6845_s1 + $0x50] sm:$0xff]  }
 0x112   : > { %3894 = vmatmul.mubr.msk.bf16.gmra.mrb[40].mxu0 %vm438_vm0, %v4520_v28 }
 0x113   : > { %653 = vmatprep.mubr.bf16.mxu0 %v6849_v4 }
 0x114   : > { %v5265_v31 = vpop.f32.mrb[8].mxu0 }
 0x115   : > { %v5267_v32 = vpop.f32.mrb[9].mxu0 }
 0x116   : > { %v5269_v33 = vpop.f32.mrb[10].mxu0 }
 0x117   : > { %v5273_v35 = vpop.f32.mrb[11].mxu0 }
 0x11c   : > { %v5277_v37 = vpop.f32.mrb[12].mxu0 }
 0x11d   : > { %v5279_v38 = vpop.f32.mrb[13].mxu0 }
 0x11e   : > { %v5281_v39 = vpop.f32.mrb[14].mxu0 }
 0x11f   : > { %v5285_v41 = vpop.f32.mrb[15].mxu0 }
 0x124   : > { %v5289_v43 = vpop.f32.mrb[16].mxu0 }
 0x125   : > { %v5291_v44 = vpop.f32.mrb[17].mxu0 }
 0x126   : > { %6881 = vst [vmem:[#allocation8_spill] sm:$0xff] %v5291_v44  ;;  %v5293_v45 = vpop.f32.mrb[18].mxu0 }
 0x127   : > { %v5297_v47 = vpop.f32.mrb[19].mxu0 }
 0x12c   : > { %v5301_v49 = vpop.f32.mrb[20].mxu0 }
 0x12d   : > { %v5303_v50 = vpop.f32.mrb[21].mxu0 }
 0x12e   : > { %6882 = vst [vmem:[#allocation9_spill] sm:$0xff] %v5303_v50  ;;  %v5305_v51 = vpop.f32.mrb[22].mxu0 }
 0x12f   : > { %v5309_v53 = vpop.f32.mrb[23].mxu0 }
 0x130   : > { %6883 = vst [vmem:[#allocation10_spill] sm:$0xff] %v5309_v53 }
 0x134   : > { %v5313_v55 = vpop.f32.mrb[24].mxu0 }
 0x135   : > { %v5315_v56 = vpop.f32.mrb[25].mxu0 }
 0x136   : > { %6884 = vst [vmem:[#allocation11_spill] sm:$0xff] %v5315_v56  ;;  %v5317_v57 = vpop.f32.mrb[26].mxu0 }
 0x137   : > { %v5321_v59 = vpop.f32.mrb[27].mxu0 }
 0x138   : > { %6885 = vst [vmem:[#allocation12_spill] sm:$0xff] %v5321_v59 }
 0x13c   : > { %v5325_v61 = vpop.f32.mrb[28].mxu0 }
 0x13d   : > { %v5327_v62 = vpop.f32.mrb[29].mxu0 }
 0x13e   : > { %6886 = vst [vmem:[#allocation13_spill] sm:$0xff] %v5327_v62  ;;  %v5329_v63 = vpop.f32.mrb[30].mxu0 }
 0x13f   : > { %v5333_v1 = vpop.f32.mrb[31].mxu0 }
 0x140   : > { %6887 = vst [vmem:[#allocation14_spill] sm:$0xff] %v5333_v1 }
 0x144   : > { %v625_v3 = vpop.f32.mrb[32].mxu0 }
 0x145   : > { %v627_v5 = vpop.f32.mrb[33].mxu0 }
 0x146   : > { %v629_v6 = vpop.f32.mrb[34].mxu0 }
 0x147   : > { %v800_v7 = vpack.c.bf16 %v629_v6, %v625_v3  ;;  %v631_v8 = vpop.f32.mrb[35].mxu0  ;;  %v4521_v3 = vld [vmem:[%s6845_s1 + $0x58] sm:$0xff]   ;;  %v4523_v6 = vld [vmem:[%s6845_s1 + $0x68] sm:$0xff]  }
 0x148   : > { %v5337_v9 = vpack.c.bf16 %v631_v8, %v627_v5  ;;  %3895 = vmatmul.mubr.msk.bf16.gmra.mrb[44].mxu0 %vm438_vm0, %v4521_v3  ;;  %v4522_v5 = vld [vmem:[%s6845_s1 + $0x60] sm:$0xff]  }
 0x149   : > { %4141 = vmatprep.subr.bf16.mxu1 %v800_v7  ;;  %663 = vmatprep.mubr.bf16.mxu0 %v6849_v4 }
 0x14a   : > { %4142 = vmatpush3.bf16.msra.mxu1 %v800_v7  ;;  %v4524_v7 = vld [vmem:[%s6845_s1 + $0x70] sm:$0xff]  }
 0x14c   : > { %v635_v10 = vpop.f32.mrb[36].mxu0 }
 0x14d   : > { %v637_v11 = vpop.f32.mrb[37].mxu0 }
 0x14e   : > { %v639_v12 = vpop.f32.mrb[38].mxu0 }
 0x14f   : > { %v802_v13 = vpack.c.bf16 %v639_v12, %v635_v10  ;;  %v641_v14 = vpop.f32.mrb[39].mxu0 }
 0x150   : > { %v5339_v15 = vpack.c.bf16 %v641_v14, %v637_v11  ;;  %3896 = vmatmul.mubr.msk.bf16.gmra.mrb[48].mxu0 %vm438_vm0, %v4522_v5 }
 0x151   : > { %4143 = vmatprep.subr.bf16.mxu1 %v802_v13  ;;  %673 = vmatprep.mubr.bf16.mxu0 %v6849_v4 }
 0x152   : > { %4144 = vmatpush3.bf16.msra.mxu1 %v802_v13 }
 0x158   : > { %3897 = vmatmul.mubr.msk.bf16.gmra.mrb[52].mxu0 %vm438_vm0, %v4523_v6  ;;  %v4526_v6 = vld [vmem:[%s6845_s1 + $0x80] sm:$0xff]  }
 0x159   : > { %683 = vmatprep.mubr.bf16.mxu0 %v6849_v4 }
 0x160   : > { %3898 = vmatmul.mubr.msk.bf16.gmra.mrb[56].mxu0 %vm438_vm0, %v4524_v7  ;;  %v4527_v7 = vld [vmem:[%s6845_s1 + $0x88] sm:$0xff]  }
 0x161   : > { %693 = vmatprep.mubr.bf16.mxu0 %v6849_v4 }
 0x173   : > { %v892_v16 = vpop.trf.xlu0 }
 0x174   : > { %4145 = vmatprep.mubr.msk.bf16.mxu1 %vm438_vm0, %v892_v16 }
 0x177   : > { %v893_v17 = vpop.trf.xlu0 }
 0x178   : > { %4146 = vmatmul.mubr.msk.bf16.vlgmr.msra.gmra.mrb[0].mxu1 %vm438_vm0, %v893_v17 }
 0x17b   : > { %v894_v18 = vpop.trf.xlu0 }
 0x17c   : > { %4149 = vmatprep.mubr.msk.bf16.mxu1 %vm438_vm0, %v894_v18 }
 0x17f   : > { %v895_v19 = vpop.trf.xlu0 }
 0x180   : > { %4150 = vmatmul.mubr.msk.bf16.gmra.mrb[4].mxu1 %vm438_vm0, %v895_v19 }
 0x183   : > { %v896_v21 = vpop.trf.xlu0 }
 0x184   : > { %4153 = vmatprep.mubr.msk.bf16.mxu1 %vm438_vm0, %v896_v21 }
 0x187   : > { %v897_v23 = vpop.trf.xlu0 }
 0x188   : > { %4154 = vmatmul.mubr.msk.bf16.gmra.mrb[8].mxu1 %vm438_vm0, %v897_v23 }
 0x18b   : > { %v898_v25 = vpop.trf.xlu0 }
 0x18c   : > { %4157 = vmatprep.mubr.msk.bf16.mxu1 %vm438_vm0, %v898_v25  ;;  %v4525_v25 = vld [vmem:[%s6845_s1 + $0x78] sm:$0xff]  }
 0x18d   : > { %3899 = vmatmul.mubr.msk.bf16.gmra.mrb[60].mxu0 %vm438_vm0, %v4525_v25 }
 0x18e   : > { %703 = vmatprep.mubr.bf16.mxu0 %v6849_v4 }
 0x18f   : > { %v899_v27 = vpop.trf.xlu0 }
 0x190   : > { %4158 = vmatmul.mubr.msk.bf16.gmra.mrb[12].mxu1 %vm438_vm0, %v899_v27 }
 0x195   : > { %3900 = vmatmul.mubr.msk.bf16.gmra.mrb[64].mxu0 %vm438_vm0, %v4526_v6 }
 0x196   : > { %713 = vmatprep.mubr.bf16.mxu0 %v6849_v4 }
 0x19d   : > { %3901 = vmatmul.mubr.msk.bf16.gmra.mrb[68].mxu0 %vm438_vm0, %v4527_v7 }
 0x19e   : > { %723 = vmatprep.mubr.bf16.mxu0 %v6849_v4 }
 0x24b   : > { %v4147_v8 = vpop.f32.mrb[0].mxu1 }
 0x24c   : > { %1025 = vmax.xlane.f32.xlu0 %v4147_v8  ;;  %v958_v10 = vpop.f32.mrb[1].mxu1 }
 0x24d   : > { %1021 = vmax.xlane.f32.xlu1 %v958_v10  ;;  %v4148_v11 = vpop.f32.mrb[2].mxu1 }
 0x24e   : > { %v961_v12 = vpop.f32.mrb[3].mxu1 }
 0x251   : > { %1023 = vmax.xlane.f32.xlu1 %v961_v12 }
 0x253   : > { %v5374_v13 = vpop.f32.mrb[4].mxu1 }
 0x254   : > { %v974_v14 = vpop.f32.mrb[5].mxu1 }
 0x255   : > { %1027 = vmax.xlane.f32.xlu1 %v4148_v11  ;;  %v5376_v16 = vpop.f32.mrb[6].mxu1 }
 0x256   : > { %v977_v17 = vpop.f32.mrb[7].mxu1 }
 0x259   : > { %1029 = vmax.xlane.f32.xlu1 %v974_v14 }
 0x25b   : > { %v5378_v18 = vpop.f32.mrb[8].mxu1 }
 0x25c   : > { %v5380_v19 = vpop.f32.mrb[9].mxu1 }
 0x25d   : > { %1031 = vmax.xlane.f32.xlu1 %v977_v17  ;;  %v5382_v21 = vpop.f32.mrb[10].mxu1 }
 0x25e   : > { %v5384_v23 = vpop.f32.mrb[11].mxu1 }
 0x261   : > { %1033 = vmax.xlane.f32.xlu1 %v5374_v13 }
 0x263   : > { %v5392_v27 = vpop.f32.mrb[12].mxu1 }
 0x264   : > { %v5394_v28 = vpop.f32.mrb[13].mxu1 }
 0x265   : > { %1035 = vmax.xlane.f32.xlu1 %v5376_v16  ;;  %v5397_v3 = vpop.f32.mrb[14].mxu1 }
 0x266   : > { %v5399_v5 = vpop.f32.mrb[15].mxu1 }
 0x267   : > { %1047 = vmax.xlane.f32.xlu0 %v5399_v5 }
 0x269   : > { %1037 = vmax.xlane.f32.xlu1 %v5380_v19 }
 0x26b   : > { %1051 = vmax.xlane.f32.xlu0 %v5397_v3 }
 0x26d   : > { %1039 = vmax.xlane.f32.xlu1 %v5384_v23 }
 0x271   : > { %1041 = vmax.xlane.f32.xlu1 %v5378_v18 }
 0x275   : > { %1043 = vmax.xlane.f32.xlu1 %v5382_v21 }
 0x279   : > { %1045 = vmax.xlane.f32.xlu1 %v5394_v28 }
 0x27d   : > { %1049 = vmax.xlane.f32.xlu1 %v5392_v27 }
 0x2d9   : > { %v1026_v25 = vpop.xlane.xlu0 %1025 }
 0x2da   : > { %v1055_v6 = vsub.f32 %v4147_v8, %v1026_v25  ;;  %v1022_v2 = vpop.xlane.xlu1 %1021 }
 0x2db   : > { %v1053_v54 = vsub.f32 %v958_v10, %v1022_v2 }
 0x2dc   : > { %v1073_v48 = vmul.f32 1.442695, %v1055_v6 }
 0x2dd   : > { %v1069_v60 = vmul.f32 1.442695, %v1053_v54 }
 0x2de   : > { %v1024_v42 = vpop.xlane.xlu1 %1023 }
 0x2df   : > { %4536 = vpow2.f32 %v1069_v60  ;;  %v1054_v30 = vsub.f32 %v961_v12, %v1024_v42 }
 0x2e0   : > { %4538 = vpow2.f32 %v1073_v48 }
 0x2e1   : > { %v1071_v7 = vmul.f32 1.442695, %v1054_v30 }
 0x2e2   : > { %v1028_v36 = vpop.xlane.xlu1 %1027 }
 0x2e3   : > { %4540 = vpow2.f32 %v1071_v7  ;;  %v1056_v24 = vsub.f32 %v4148_v11, %v1028_v36 }
 0x2e5   : > { %v1075_v0 = vmul.f32 1.442695, %v1056_v24 }
 0x2e6   : > { %v1030_v58 = vpop.xlane.xlu1 %1029 }
 0x2e7   : > { %4542 = vpow2.f32 %v1075_v0  ;;  %v1057_v52 = vsub.f32 %v974_v14, %v1030_v58 }
 0x2e9   : > { %v5419_v46 = vpop.eup %4536  ;;  %v1077_v4 = vmul.f32 1.442695, %v1057_v52 }
 0x2ea   : > { %v1032_v8 = vpop.xlane.xlu1 %1031  ;;  %1101 = vadd.xlane.f32.xlu1 %v5419_v46  ;;  %v5422_v2 = vpop.eup %4538 }
 0x2eb   : > { %4544 = vpow2.f32 %v1077_v4  ;;  %v1058_v54 = vsub.f32 %v977_v17, %v1032_v8 }
 0x2ed   : > { %v5424_v42 = vpop.eup %4540  ;;  %v1079_v30 = vmul.f32 1.442695, %v1058_v54 }
 0x2ee   : > { %v1034_v48 = vpop.xlane.xlu1 %1033  ;;  %1105 = vadd.xlane.f32.xlu1 %v5422_v2  ;;  %1103 = vadd.xlane.f32.xlu0 %v5424_v42 }
 0x2ef   : > { %4546 = vpow2.f32 %v1079_v30  ;;  %v1059_v24 = vsub.f32 %v5374_v13, %v1034_v48 }
 0x2f1   : > { %v5429_v36 = vpop.eup %4542  ;;  %v1081_v52 = vmul.f32 1.442695, %v1059_v24 }
 0x2f2   : > { %v1036_v58 = vpop.xlane.xlu1 %1035  ;;  %1107 = vadd.xlane.f32.xlu0 %v5429_v36 }
 0x2f3   : > { %4548 = vpow2.f32 %v1081_v52  ;;  %v1060_v4 = vsub.f32 %v5376_v16, %v1036_v58 }
 0x2f4   : > { %v1048_v16 = vpop.xlane.xlu0 %1047 }
 0x2f5   : > { %v5433_v60 = vpop.eup %4544  ;;  %v1083_v0 = vmul.f32 1.442695, %v1060_v4  ;;  %v1066_v30 = vsub.f32 %v5399_v5, %v1048_v16 }
 0x2f6   : > { %v1038_v10 = vpop.xlane.xlu1 %1037  ;;  %1109 = vadd.xlane.f32.xlu1 %v5433_v60 }
 0x2f7   : > { %4550 = vpow2.f32 %v1083_v0  ;;  %v1061_v11 = vsub.f32 %v5380_v19, %v1038_v10  ;;  %v1095_v4 = vmul.f32 1.442695, %v1066_v30 }
 0x2f8   : > { %v1052_v24 = vpop.xlane.xlu0 %1051 }
 0x2f9   : > { %v5437_v12 = vpop.eup %4546  ;;  %v1085_v13 = vmul.f32 1.442695, %v1061_v11  ;;  %v1068_v0 = vsub.f32 %v5397_v3, %v1052_v24 }
 0x2fa   : > { %v1040_v14 = vpop.xlane.xlu1 %1039  ;;  %1111 = vadd.xlane.f32.xlu0 %v5437_v12 }
 0x2fb   : > { %4552 = vpow2.f32 %v1085_v13  ;;  %v1062_v17 = vsub.f32 %v5384_v23, %v1040_v14  ;;  %v1099_v13 = vmul.f32 1.442695, %v1068_v0 }
 0x2fd   : > { %v5441_v25 = vpop.eup %4548  ;;  %v1087_v6 = vmul.f32 1.442695, %v1062_v17  ;;  %v645_v17 = vpop.f32.mrb[40].mxu0 }
 0x2fe   : > { %v1042_v7 = vpop.xlane.xlu1 %1041  ;;  %1113 = vadd.xlane.f32.xlu1 %v5441_v25 }
 0x2ff   : > { %4554 = vpow2.f32 %v1087_v6  ;;  %v1063_v8 = vsub.f32 %v5378_v18, %v1042_v7  ;;  %v647_v6 = vpop.f32.mrb[41].mxu0 }
 0x301   : > { %v5445_v19 = vpop.eup %4550  ;;  %v1089_v54 = vmul.f32 1.442695, %v1063_v8 }
 0x302   : > { %v1044_v48 = vpop.xlane.xlu1 %1043  ;;  %1115 = vadd.xlane.f32.xlu0 %v5445_v19 }
 0x303   : > { %4556 = vpow2.f32 %v1089_v54  ;;  %v1064_v23 = vsub.f32 %v5382_v21, %v1044_v48 }
 0x305   : > { %v5450_v52 = vpop.eup %4552  ;;  %v1091_v58 = vmul.f32 1.442695, %v1064_v23 }
 0x306   : > { %1117 = vadd.xlane.f32.xlu1 %v5450_v52  ;;  %v1046_v18 = vpop.xlane.xlu1 %1045 }
 0x307   : > { %4558 = vpow2.f32 %v1091_v58  ;;  %v1065_v10 = vsub.f32 %v5394_v28, %v1046_v18  ;;  %v649_v28 = vpop.f32.mrb[42].mxu0 }
 0x308   : > { %4560 = vpow2.f32 %v1095_v4  ;;  %v5462_v7 = vpack.c.bf16 %v649_v28, %v645_v17  ;;  %v651_v8 = vpop.f32.mrb[43].mxu0 }
 0x309   : > { %v5455_v5 = vpop.eup %4554  ;;  %v1093_v11 = vmul.f32 1.442695, %v1065_v10  ;;  %v5464_v54 = vpack.c.bf16 %v651_v8, %v647_v6  ;;  %v655_v48 = vpop.f32.mrb[44].mxu0 }
 0x30a   : > { %v1050_v14 = vpop.xlane.xlu1 %1049  ;;  %1119 = vadd.xlane.f32.xlu0 %v5455_v5  ;;  %v657_v23 = vpop.f32.mrb[45].mxu0 }
 0x30b   : > { %4562 = vpow2.f32 %v1093_v11  ;;  %v1067_v21 = vsub.f32 %v5392_v27, %v1050_v14  ;;  %v659_v58 = vpop.f32.mrb[46].mxu0 }
 0x30c   : > { %4564 = vpow2.f32 %v1099_v13  ;;  %v5475_v4 = vpack.c.bf16 %v659_v58, %v655_v48  ;;  %v661_v0 = vpop.f32.mrb[47].mxu0 }
 0x30d   : > { %v5459_v16 = vpop.eup %4556  ;;  %v1097_v3 = vmul.f32 1.442695, %v1067_v21  ;;  %v5479_v10 = vpack.c.bf16 %v661_v0, %v657_v23  ;;  %v665_v13 = vpop.f32.mrb[48].mxu0 }
 0x30e   : > { %1121 = vadd.xlane.f32.xlu1 %v5459_v16  ;;  %v667_v14 = vpop.f32.mrb[49].mxu0 }
 0x30f   : > { %4566 = vpow2.f32 %v1097_v3  ;;  %v669_v21 = vpop.f32.mrb[50].mxu0 }
 0x310   : > { %v5485_v17 = vpack.c.bf16 %v669_v21, %v665_v13  ;;  %v671_v3 = vpop.f32.mrb[51].mxu0 }
 0x311   : > { %v5466_v30 = vpop.eup %4558  ;;  %v5487_v6 = vpack.c.bf16 %v671_v3, %v667_v14  ;;  %v675_v28 = vpop.f32.mrb[52].mxu0 }
 0x312   : > { %1123 = vadd.xlane.f32.xlu0 %v5466_v30  ;;  %v5469_v27 = vpop.eup %4560  ;;  %v677_v8 = vpop.f32.mrb[53].mxu0 }
 0x313   : > { %6888 = vst [vmem:[#allocation15_spill] sm:$0xff] %v5487_v6  ;;  %v679_v48 = vpop.f32.mrb[54].mxu0 }
 0x314   : > { %v5489_v58 = vpack.c.bf16 %v679_v48, %v675_v28  ;;  %v681_v23 = vpop.f32.mrb[55].mxu0 }
 0x315   : > { %v5471_v24 = vpop.eup %4562  ;;  %v5491_v0 = vpack.c.bf16 %v681_v23, %v677_v8  ;;  %v685_v40 = vpop.f32.mrb[56].mxu0 }
 0x316   : > { %1125 = vadd.xlane.f32.xlu1 %v5471_v24  ;;  %1127 = vadd.xlane.f32.xlu0 %v5469_v27  ;;  %v5477_v18 = vpop.eup %4564  ;;  %v687_v34 = vpop.f32.mrb[57].mxu0 }
 0x317   : > { %6889 = vst [vmem:[#allocation16_spill] sm:$0xff] %v5491_v0  ;;  %v689_v62 = vpop.f32.mrb[58].mxu0 }
 0x318   : > { %v5493_v1 = vpack.c.bf16 %v689_v62, %v685_v40  ;;  %v691_v50 = vpop.f32.mrb[59].mxu0 }
 0x319   : > { %v5481_v11 = vpop.eup %4566  ;;  %v5495_v53 = vpack.c.bf16 %v691_v50, %v687_v34  ;;  %v695_v13 = vpop.f32.mrb[60].mxu0 }
 0x31a   : > { %1129 = vadd.xlane.f32.xlu1 %v5481_v11  ;;  %1131 = vadd.xlane.f32.xlu0 %v5477_v18  ;;  %v697_v21 = vpop.f32.mrb[61].mxu0 }
 0x31b   : > { %6890 = vst [vmem:[#allocation17_spill] sm:$0xff] %v5495_v53  ;;  %v699_v14 = vpop.f32.mrb[62].mxu0 }
 0x31c   : > { %v5497_v3 = vpack.c.bf16 %v699_v14, %v695_v13  ;;  %v701_v6 = vpop.f32.mrb[63].mxu0 }
 0x31d   : > { %v5499_v56 = vpack.c.bf16 %v701_v6, %v697_v21  ;;  %v705_v28 = vpop.f32.mrb[64].mxu0  ;;  %v6894_v21 = vpack.c.bf16 %v5269_v33, %v5265_v31 }
 0x31e   : > { %v5501_v48 = vpop.f32.mrb[65].mxu0 }
 0x31f   : > { %6891 = vst [vmem:[#allocation18_spill] sm:$0xff] %v5499_v56  ;;  %v709_v8 = vpop.f32.mrb[66].mxu0 }
 0x320   : > { %v816_v23 = vpack.c.bf16 %v709_v8, %v705_v28  ;;  %v5503_v0 = vpop.f32.mrb[67].mxu0  ;;  %v6895_v28 = vpack.c.bf16 %v5281_v39, %v5277_v37 }
 0x321   : > { %v5507_v34 = vpop.f32.mrb[68].mxu0 }
 0x322   : > { %4177 = vmatprep.mubr.bf16.mxu1 %v816_v23  ;;  %v5509_v50 = vpop.f32.mrb[69].mxu0 }
 0x323   : > { %6892 = vst [vmem:[#allocation19_spill] sm:$0xff] %v5509_v50  ;;  %v5511_v62 = vpop.f32.mrb[70].mxu0 }
 0x324   : > { %v5515_v13 = vpop.f32.mrb[71].mxu0 }
 0x325   : > { %6893 = vst [vmem:[#allocation20_spill] sm:$0xff] %v5515_v13 }
 0x347   : > { %1232 = vxpose.xlu1.c.b16.start [1/2] (short) %v6894_v21, 128 }
 0x34b   : > { %1233 = vxpose.xlu1.c.b16.end [2/2] (short) %v6895_v28, 128 }
 0x377   : > { %v1102_v8 = vpop.xlane.xlu1 %1101 }
 0x378   : > { %4568 = vrcp.f32 %v1102_v8 }
 0x37b   : > { %v1106_v23 = vpop.xlane.xlu1 %1105  ;;  %v1104_v40 = vpop.xlane.xlu0 %1103 }
 0x37c   : > { %4570 = vrcp.f32 %v1104_v40 }
 0x37d   : > { %4572 = vrcp.f32 %v1106_v23 }
 0x37f   : > { %v1108_v6 = vpop.xlane.xlu0 %1107 }
 0x380   : > { %4574 = vrcp.f32 %v1108_v6 }
 0x382   : > { %v4569_v53 = vpop.eup %4568 }
 0x383   : > { %v1110_v56 = vpop.xlane.xlu1 %1109  ;;  %v1134_v14 = vmul.f32 %v4569_v53, %v5419_v46 }
 0x384   : > { %4576 = vrcp.f32 %v1110_v56 }
 0x386   : > { %v4571_v31 = vpop.eup %4570 }
 0x387   : > { %v1112_v33 = vpop.xlane.xlu0 %1111  ;;  %v4573_v21 = vpop.eup %4572  ;;  %v1136_v37 = vmul.f32 %v4571_v31, %v5424_v42 }
 0x388   : > { %4578 = vrcp.f32 %v1112_v33  ;;  %v1138_v50 = vmul.f32 %v4573_v21, %v5422_v2 }
 0x389   : > { %v1167_v28 = vpack.c.bf16 %v1136_v37, %v1134_v14 }
 0x38a   : > { %v4575_v39 = vpop.eup %4574 }
 0x38b   : > { %v1114_v8 = vpop.xlane.xlu1 %1113  ;;  %v1140_v40 = vmul.f32 %v4575_v39, %v5429_v36  ;;  %4161 = vmatprep.subr.bf16.mxu1 %v1167_v28 }
 0x38c   : > { %4162 = vmatpush3.bf16.xpose.msra.mxu1 %v1167_v28  ;;  %4580 = vrcp.f32 %v1114_v8 }
 0x38d   : > { %v1168_v6 = vpack.c.bf16 %v1140_v40, %v1138_v50 }
 0x38e   : > { %v4577_v23 = vpop.eup %4576 }
 0x38f   : > { %4163 = vmatprep.subr.bf16.mxu1 %v1168_v6  ;;  %v1116_v56 = vpop.xlane.xlu0 %1115  ;;  %v1142_v46 = vmul.f32 %v4577_v23, %v5433_v60 }
 0x390   : > { %4582 = vrcp.f32 %v1116_v56 }
 0x392   : > { %v4579_v33 = vpop.eup %4578 }
 0x393   : > { %v1118_v13 = vpop.xlane.xlu1 %1117  ;;  %v1144_v53 = vmul.f32 %v4579_v33, %v5437_v12 }
 0x394   : > { %4164 = vmatpush3.bf16.xpose.msra.mxu1 %v1168_v6  ;;  %4584 = vrcp.f32 %v1118_v13 }
 0x395   : > { %v1169_v42 = vpack.c.bf16 %v1144_v53, %v1142_v46 }
 0x396   : > { %v4581_v36 = vpop.eup %4580 }
 0x397   : > { %4165 = vmatprep.subr.bf16.mxu1 %v1169_v42  ;;  %v1120_v2 = vpop.xlane.xlu0 %1119  ;;  %v1146_v31 = vmul.f32 %v4581_v36, %v5441_v25 }
 0x398   : > { %4586 = vrcp.f32 %v1120_v2 }
 0x39a   : > { %v4583_v14 = vpop.eup %4582 }
 0x39b   : > { %v1122_v50 = vpop.xlane.xlu1 %1121  ;;  %v1148_v21 = vmul.f32 %v4583_v14, %v5445_v19 }
 0x39c   : > { %4166 = vmatpush3.bf16.xpose.msra.mxu1 %v1169_v42  ;;  %4588 = vrcp.f32 %v1122_v50 }
 0x39d   : > { %v1170_v37 = vpack.c.bf16 %v1148_v21, %v1146_v31 }
 0x39e   : > { %v4585_v39 = vpop.eup %4584 }
 0x39f   : > { %4167 = vmatprep.subr.bf16.mxu1 %v1170_v37  ;;  %v1124_v60 = vpop.xlane.xlu0 %1123  ;;  %v1150_v8 = vmul.f32 %v4585_v39, %v5450_v52 }
 0x3a0   : > { %4590 = vrcp.f32 %v1124_v60 }
 0x3a2   : > { %v4587_v12 = vpop.eup %4586 }
 0x3a3   : > { %v1126_v28 = vpop.xlane.xlu1 %1125  ;;  %v1128_v13 = vpop.xlane.xlu0 %1127  ;;  %v1152_v40 = vmul.f32 %v4587_v12, %v5455_v5 }
 0x3a4   : > { %4592 = vrcp.f32 %v1126_v28  ;;  %4168 = vmatpush3.bf16.xpose.msra.mxu1 %v1170_v37 }
 0x3a5   : > { %4594 = vrcp.f32 %v1128_v13  ;;  %v1171_v25 = vpack.c.bf16 %v1152_v40, %v1150_v8 }
 0x3a6   : > { %v4589_v19 = vpop.eup %4588 }
 0x3a7   : > { %v1130_v6 = vpop.xlane.xlu1 %1129  ;;  %4169 = vmatprep.subr.bf16.mxu1 %v1171_v25  ;;  %v1132_v56 = vpop.xlane.xlu0 %1131  ;;  %v1154_v33 = vmul.f32 %v4589_v19, %v5459_v16 }
 0x3a8   : > { %4596 = vrcp.f32 %v1130_v6 }
 0x3a9   : > { %4598 = vrcp.f32 %v1132_v56 }
 0x3aa   : > { %v4591_v23 = vpop.eup %4590 }
 0x3ab   : > { %v1156_v46 = vmul.f32 %v4591_v23, %v5466_v30 }
 0x3ac   : > { %4170 = vmatpush3.bf16.xpose.msra.mxu1 %v1171_v25 }
 0x3ad   : > { %v1172_v53 = vpack.c.bf16 %v1156_v46, %v1154_v33  ;;  %v1240_v30 = vpop.trf.xlu1 }
 0x3ae   : > { %v4593_v52 = vpop.eup %4592 }
 0x3af   : > { %v4595_v42 = vpop.eup %4594  ;;  %4171 = vmatprep.subr.bf16.mxu1 %v1172_v53  ;;  %v1158_v5 = vmul.f32 %v4593_v52, %v5471_v24 }
 0x3b0   : > { %v1160_v2 = vmul.f32 %v4595_v42, %v5469_v27  ;;  %v6896_v27 = vpack.c.bf16 %v5511_v62, %v5507_v34 }
 0x3b1   : > { %v1241_v37 = vpop.trf.xlu1 }
 0x3b2   : > { %v4597_v36 = vpop.eup %4596  ;;  %v1173_v14 = vpack.c.bf16 %v1160_v2, %v1158_v5 }
 0x3b3   : > { %v4599_v50 = vpop.eup %4598  ;;  %v1162_v31 = vmul.f32 %v4597_v36, %v5481_v11 }
 0x3b4   : > { %4172 = vmatpush3.bf16.xpose.msra.mxu1 %v1172_v53  ;;  %v1164_v16 = vmul.f32 %v4599_v50, %v5477_v18  ;;  %v4528_v50 = vld [vmem:[%s6845_s1 + $0x90] sm:$0xff]  }
 0x3b5   : > { %4173 = vmatprep.subr.bf16.mxu1 %v1173_v14  ;;  %v1242_v24 = vpop.trf.xlu1  ;;  %3902 = vmatmul.mubr.msk.bf16.gmra.mrb[72].mxu0 %vm438_vm0, %v4528_v50 }
 0x3b6   : > { %v1174_v21 = vpack.c.bf16 %v1164_v16, %v1162_v31  ;;  %v6901_v31 = vmov 0   ;;  %v4529_v16 = vld [vmem:[%s6845_s1 + $0x98] sm:$0xff]  }
 0x3b7   : > { %733 = vmatprep.mubr.bf16.mxu0 %v6901_v31 }
 0x3b9   : > { %v1243_v18 = vpop.trf.xlu1 }
 0x3bc   : > { %4174 = vmatpush3.bf16.xpose.msra.mxu1 %v1173_v14 }
 0x3bd   : > { %4175 = vmatprep.subr.bf16.mxu1 %v1174_v21  ;;  %v1244_v11 = vpop.trf.xlu1  ;;  %3903 = vmatmul.mubr.msk.bf16.gmra.mrb[76].mxu0 %vm438_vm0, %v4529_v16 }
 0x3be   : > { %743 = vmatprep.mubr.bf16.mxu0 %v6901_v31 }
 0x3c1   : > { %v1245_v60 = vpop.trf.xlu1 }
 0x3c4   : > { %4176 = vmatpush3.bf16.xpose.msra.mxu1 %v1174_v21 }
 0x3c5   : > { %4181 = vmatprep.subr.bf16.mxu1 %v5462_v7  ;;  %v1246_v34 = vpop.trf.xlu1 }
 0x3cb   : > { %4178 = vmatmul.mubr.bf16.vlgmr.msra.gmra.mrb[16].mxu1 %v6896_v27 }
 0x3cc   : > { %4182 = vmatpush3.bf16.msra.mxu1 %v5462_v7  ;;  %4185 = vmatprep.mubr.msk.bf16.mxu1 %vm438_vm0, %v1240_v30  ;;  %v1247_v7 = vpop.trf.xlu1 }
 0x3cd   : > { %4183 = vmatprep.subr.bf16.mxu1 %v5475_v4 }
 0x3d0   : > { %4184 = vmatpush3.bf16.msra.mxu1 %v5475_v4 }
 0x3d3   : > { %4186 = vmatmul.mubr.msk.bf16.vlgmr.msra.gmra.mrb[20].mxu1 %vm438_vm0, %v1241_v37 }
 0x3d4   : > { %4189 = vmatprep.mubr.msk.bf16.mxu1 %vm438_vm0, %v1242_v24 }
 0x3db   : > { %4190 = vmatmul.mubr.msk.bf16.gmra.mrb[24].mxu1 %vm438_vm0, %v1243_v18 }
 0x3dc   : > { %4193 = vmatprep.mubr.msk.bf16.mxu1 %vm438_vm0, %v1244_v11 }
 0x3e3   : > { %4194 = vmatmul.mubr.msk.bf16.gmra.mrb[28].mxu1 %vm438_vm0, %v1245_v60 }
 0x3e4   : > { %4197 = vmatprep.mubr.msk.bf16.mxu1 %vm438_vm0, %v1246_v34 }
 0x3eb   : > { %4198 = vmatmul.mubr.msk.bf16.gmra.mrb[32].mxu1 %vm438_vm0, %v1247_v7 }
 0x49e   : > { %v5556_v4 = vpop.f32.mrb[16].mxu1 }
 0x49f   : > { %6897 = vst [vmem:[#allocation21_spill] sm:$0xff] %v5556_v4  ;;  %v5558_v62 = vpop.f32.mrb[17].mxu1 }
 0x4a0   : > { %6898 = vst [vmem:[#allocation22_spill] sm:$0xff] %v5558_v62  ;;  %v5560_v39 = vpop.f32.mrb[18].mxu1 }
 0x4a1   : > { %6899 = vst [vmem:[#allocation23_spill] sm:$0xff] %v5560_v39  ;;  %v5564_v28 = vpop.f32.mrb[19].mxu1 }
 0x4a2   : > { %6900 = vst [vmem:[#allocation24_spill] sm:$0xff] %v5564_v28 }
 0x4a6   : > { %v4187_v8 = vpop.f32.mrb[20].mxu1 }
 0x4a7   : > { %v1306_v40 = vpop.f32.mrb[21].mxu1 }
 0x4a8   : > { %1369 = vmax.xlane.f32.xlu0 %v1306_v40  ;;  %v4188_v25 = vpop.f32.mrb[22].mxu1 }
 0x4a9   : > { %v1309_v6 = vpop.f32.mrb[23].mxu1 }
 0x4ac   : > { %1371 = vmax.xlane.f32.xlu0 %v1309_v6 }
 0x4ae   : > { %v5568_v19 = vpop.f32.mrb[24].mxu1 }
 0x4af   : > { %v1322_v56 = vpop.f32.mrb[25].mxu1 }
 0x4b0   : > { %1373 = vmax.xlane.f32.xlu0 %v4187_v8  ;;  %v5570_v23 = vpop.f32.mrb[26].mxu1 }
 0x4b1   : > { %v1325_v33 = vpop.f32.mrb[27].mxu1 }
 0x4b4   : > { %1375 = vmax.xlane.f32.xlu0 %v4188_v25 }
 0x4b6   : > { %v5572_v46 = vpop.f32.mrb[28].mxu1 }
 0x4b7   : > { %v5574_v53 = vpop.f32.mrb[29].mxu1 }
 0x4b8   : > { %1377 = vmax.xlane.f32.xlu0 %v1322_v56  ;;  %v5576_v52 = vpop.f32.mrb[30].mxu1 }
 0x4b9   : > { %v5578_v42 = vpop.f32.mrb[31].mxu1 }
 0x4bc   : > { %1379 = vmax.xlane.f32.xlu0 %v1325_v33 }
 0x4be   : > { %v5580_v5 = vpop.f32.mrb[32].mxu1 }
 0x4bf   : > { %v5582_v2 = vpop.f32.mrb[33].mxu1 }
 0x4c0   : > { %1381 = vmax.xlane.f32.xlu0 %v5568_v19  ;;  %v5585_v36 = vpop.f32.mrb[34].mxu1 }
 0x4c1   : > { %v5587_v14 = vpop.f32.mrb[35].mxu1 }
 0x4c2   : > { %1395 = vmax.xlane.f32.xlu1 %v5587_v14 }
 0x4c4   : > { %1383 = vmax.xlane.f32.xlu0 %v5570_v23 }
 0x4c8   : > { %1385 = vmax.xlane.f32.xlu0 %v5574_v53 }
 0x4cc   : > { %1387 = vmax.xlane.f32.xlu0 %v5578_v42 }
 0x4d0   : > { %1389 = vmax.xlane.f32.xlu0 %v5572_v46 }
 0x4d4   : > { %1391 = vmax.xlane.f32.xlu0 %v5576_v52 }
 0x4d8   : > { %1393 = vmax.xlane.f32.xlu0 %v5582_v2 }
 0x4dc   : > { %1397 = vmax.xlane.f32.xlu0 %v5580_v5 }
 0x4e0   : > { %1399 = vmax.xlane.f32.xlu0 %v5585_v36 }
 0x535   : > { %v1370_v21 = vpop.xlane.xlu0 %1369 }
 0x536   : > { %v1401_v30 = vsub.f32 %v1306_v40, %v1370_v21 }
 0x538   : > { %v1417_v37 = vmul.f32 1.442695, %v1401_v30 }
 0x539   : > { %v1372_v24 = vpop.xlane.xlu0 %1371 }
 0x53a   : > { %4600 = vpow2.f32 %v1417_v37  ;;  %v1402_v27 = vsub.f32 %v1309_v6, %v1372_v24 }
 0x53c   : > { %v1419_v18 = vmul.f32 1.442695, %v1402_v27 }
 0x53d   : > { %v1374_v11 = vpop.xlane.xlu0 %1373 }
 0x53e   : > { %4602 = vpow2.f32 %v1419_v18  ;;  %v1403_v60 = vsub.f32 %v4187_v8, %v1374_v11 }
 0x540   : > { %v1421_v34 = vmul.f32 1.442695, %v1403_v60 }
 0x541   : > { %v1376_v7 = vpop.xlane.xlu0 %1375 }
 0x542   : > { %4604 = vpow2.f32 %v1421_v34  ;;  %v1404_v50 = vsub.f32 %v4188_v25, %v1376_v7 }
 0x544   : > { %v5608_v16 = vpop.eup %4600  ;;  %v1423_v12 = vmul.f32 1.442695, %v1404_v50 }
 0x545   : > { %v1378_v13 = vpop.xlane.xlu0 %1377  ;;  %1449 = vadd.xlane.f32.xlu0 %v5608_v16 }
 0x546   : > { %4606 = vpow2.f32 %v1423_v12  ;;  %v1405_v40 = vsub.f32 %v1322_v56, %v1378_v13 }
 0x548   : > { %v5611_v21 = vpop.eup %4602  ;;  %v1425_v30 = vmul.f32 1.442695, %v1405_v40 }
 0x549   : > { %v1380_v6 = vpop.xlane.xlu0 %1379  ;;  %1451 = vadd.xlane.f32.xlu0 %v5611_v21 }
 0x54a   : > { %4608 = vpow2.f32 %v1425_v30  ;;  %v1406_v8 = vsub.f32 %v1325_v33, %v1380_v6 }
 0x54c   : > { %v5614_v37 = vpop.eup %4604  ;;  %v1427_v24 = vmul.f32 1.442695, %v1406_v8 }
 0x54d   : > { %v1382_v25 = vpop.xlane.xlu0 %1381  ;;  %1453 = vadd.xlane.f32.xlu0 %v5614_v37 }
 0x54e   : > { %4610 = vpow2.f32 %v1427_v24  ;;  %v1407_v27 = vsub.f32 %v5568_v19, %v1382_v25 }
 0x54f   : > { %v1396_v8 = vpop.xlane.xlu1 %1395 }
 0x550   : > { %v5618_v18 = vpop.eup %4606  ;;  %v1429_v12 = vmul.f32 1.442695, %v1407_v27  ;;  %v1414_v27 = vsub.f32 %v5587_v14, %v1396_v8 }
 0x551   : > { %v1384_v13 = vpop.xlane.xlu0 %1383  ;;  %1455 = vadd.xlane.f32.xlu0 %v5618_v18 }
 0x552   : > { %4612 = vpow2.f32 %v1429_v12  ;;  %v1408_v56 = vsub.f32 %v5570_v23, %v1384_v13 }
 0x554   : > { %v5622_v11 = vpop.eup %4608  ;;  %v1431_v33 = vmul.f32 1.442695, %v1408_v56 }
 0x555   : > { %v1386_v60 = vpop.xlane.xlu0 %1385  ;;  %1457 = vadd.xlane.f32.xlu0 %v5622_v11 }
 0x556   : > { %4614 = vpow2.f32 %v1431_v33  ;;  %v1409_v34 = vsub.f32 %v5574_v53, %v1386_v60  ;;  %v1443_v33 = vmul.f32 1.442695, %v1414_v27 }
 0x558   : > { %v5626_v7 = vpop.eup %4610  ;;  %v1433_v19 = vmul.f32 1.442695, %v1409_v34 }
 0x559   : > { %v1388_v50 = vpop.xlane.xlu0 %1387  ;;  %1459 = vadd.xlane.f32.xlu0 %v5626_v7 }
 0x55a   : > { %4616 = vpow2.f32 %v1433_v19  ;;  %v1410_v40 = vsub.f32 %v5578_v42, %v1388_v50 }
 0x55c   : > { %v5630_v30 = vpop.eup %4612  ;;  %v1435_v23 = vmul.f32 1.442695, %v1410_v40 }
 0x55d   : > { %v1390_v6 = vpop.xlane.xlu0 %1389  ;;  %1461 = vadd.xlane.f32.xlu0 %v5630_v30 }
 0x55e   : > { %4618 = vpow2.f32 %v1435_v23  ;;  %v1411_v24 = vsub.f32 %v5572_v46, %v1390_v6 }
 0x560   : > { %v5634_v53 = vpop.eup %4614  ;;  %v1437_v25 = vmul.f32 1.442695, %v1411_v24 }
 0x561   : > { %v1392_v12 = vpop.xlane.xlu0 %1391  ;;  %1463 = vadd.xlane.f32.xlu1 %v5634_v53 }
 0x562   : > { %4620 = vpow2.f32 %v1437_v25  ;;  %v1412_v42 = vsub.f32 %v5576_v52, %v1392_v12 }
 0x564   : > { %v5639_v13 = vpop.eup %4616  ;;  %v1439_v56 = vmul.f32 1.442695, %v1412_v42 }
 0x565   : > { %v1394_v60 = vpop.xlane.xlu0 %1393  ;;  %1465 = vadd.xlane.f32.xlu0 %v5639_v13 }
 0x566   : > { %4622 = vpow2.f32 %v1439_v56  ;;  %v1413_v46 = vsub.f32 %v5582_v2, %v1394_v60 }
 0x567   : > { %4624 = vpow2.f32 %v1443_v33 }
 0x568   : > { %v5643_v34 = vpop.eup %4618  ;;  %v1441_v19 = vmul.f32 1.442695, %v1413_v46 }
 0x569   : > { %v1398_v14 = vpop.xlane.xlu0 %1397  ;;  %1467 = vadd.xlane.f32.xlu1 %v5643_v34 }
 0x56a   : > { %4626 = vpow2.f32 %v1441_v19  ;;  %v1415_v52 = vsub.f32 %v5580_v5, %v1398_v14 }
 0x56c   : > { %v5647_v50 = vpop.eup %4620  ;;  %v1445_v40 = vmul.f32 1.442695, %v1415_v52 }
 0x56d   : > { %1469 = vadd.xlane.f32.xlu0 %v5647_v50  ;;  %v1400_v23 = vpop.xlane.xlu0 %1399 }
 0x56e   : > { %4628 = vpow2.f32 %v1445_v40  ;;  %v1416_v6 = vsub.f32 %v5585_v36, %v1400_v23  ;;  %v725_v36 = vpop.f32.mrb[72].mxu0 }
 0x56f   : > { %v5666_v12 = vpop.f32.mrb[73].mxu0 }
 0x570   : > { %v5651_v2 = vpop.eup %4622  ;;  %v1447_v8 = vmul.f32 1.442695, %v1416_v6  ;;  %v729_v42 = vpop.f32.mrb[74].mxu0  ;;  %v6904_v6 = vpack.c.bf16 %v5293_v45, %v5289_v43 }
 0x571   : > { %1471 = vadd.xlane.f32.xlu1 %v5651_v2  ;;  %v5654_v24 = vpop.eup %4624  ;;  %v820_v56 = vpack.c.bf16 %v729_v42, %v725_v36  ;;  %v5668_v33 = vpop.f32.mrb[75].mxu0  ;;  %v6906_v36 = vpack.c.bf16 %v5317_v57, %v5313_v55  ;;  %v6907_v42 = vpack.c.bf16 %v5329_v63, %v5325_v61 }
 0x572   : > { %4630 = vpow2.f32 %v1447_v8  ;;  %v5672_v46 = vpop.f32.mrb[76].mxu0  ;;  %v6905_v8 = vpack.c.bf16 %v5305_v51, %v5301_v49 }
 0x573   : > { %4217 = vmatprep.mubr.bf16.mxu1 %v820_v56  ;;  %v5674_v19 = vpop.f32.mrb[77].mxu0 }
 0x574   : > { %v5656_v25 = vpop.eup %4626  ;;  %6902 = vst [vmem:[#allocation25_spill] sm:$0xff] %v5674_v19  ;;  %v5676_v14 = vpop.f32.mrb[78].mxu0 }
 0x575   : > { %1473 = vadd.xlane.f32.xlu0 %v5656_v25  ;;  %1475 = vadd.xlane.f32.xlu1 %v5654_v24  ;;  %v822_v52 = vpack.c.bf16 %v5676_v14, %v5672_v46  ;;  %v5680_v40 = vpop.f32.mrb[79].mxu0 }
 0x576   : > { %6903 = vst [vmem:[#allocation26_spill] sm:$0xff] %v5680_v40 }
 0x578   : > { %v5660_v5 = vpop.eup %4628 }
 0x579   : > { %1477 = vadd.xlane.f32.xlu0 %v5660_v5 }
 0x57c   : > { %v5663_v27 = vpop.eup %4630 }
 0x57d   : > { %1479 = vadd.xlane.f32.xlu1 %v5663_v27 }
 0x5a6   : > { %1580 = vxpose.xlu0.c.b16.start [1/2] (short) %v6904_v6, 128 }
 0x5aa   : > { %1581 = vxpose.xlu0.c.b16.end [2/2] (short) %v6905_v8, 128  ;;  %1928 = vxpose.xlu1.c.b16.start [1/2] (short) %v6906_v36, 128 }
 0x5ae   : > { %1929 = vxpose.xlu1.c.b16.end [2/2] (short) %v6907_v42, 128 }
 0x5d2   : > { %v1450_v56 = vpop.xlane.xlu0 %1449 }
 0x5d3   : > { %4632 = vrcp.f32 %v1450_v56 }
 0x5d6   : > { %v1452_v60 = vpop.xlane.xlu0 %1451 }
 0x5d7   : > { %4634 = vrcp.f32 %v1452_v60 }
 0x5da   : > { %v1454_v23 = vpop.xlane.xlu0 %1453 }
 0x5db   : > { %4636 = vrcp.f32 %v1454_v23 }
 0x5dd   : > { %v4633_v45 = vpop.eup %4632 }
 0x5de   : > { %v1456_v43 = vpop.xlane.xlu0 %1455  ;;  %v1482_v51 = vmul.f32 %v4633_v45, %v5608_v16 }
 0x5df   : > { %4638 = vrcp.f32 %v1456_v43 }
 0x5e1   : > { %v4635_v6 = vpop.eup %4634 }
 0x5e2   : > { %v1458_v49 = vpop.xlane.xlu0 %1457  ;;  %v1484_v55 = vmul.f32 %v4635_v6, %v5611_v21 }
 0x5e3   : > { %4640 = vrcp.f32 %v1458_v49 }
 0x5e4   : > { %v1515_v57 = vpack.c.bf16 %v1484_v55, %v1482_v51 }
 0x5e5   : > { %v4637_v63 = vpop.eup %4636 }
 0x5e6   : > { %4201 = vmatprep.subr.bf16.mxu1 %v1515_v57  ;;  %v1460_v61 = vpop.xlane.xlu0 %1459  ;;  %v1486_v23 = vmul.f32 %v4637_v63, %v5614_v37 }
 0x5e7   : > { %4642 = vrcp.f32 %v1460_v61  ;;  %4202 = vmatpush3.bf16.xpose.msra.mxu1 %v1515_v57 }
 0x5e9   : > { %v4639_v8 = vpop.eup %4638 }
 0x5ea   : > { %v1462_v60 = vpop.xlane.xlu0 %1461  ;;  %v1488_v36 = vmul.f32 %v4639_v8, %v5618_v18 }
 0x5eb   : > { %4644 = vrcp.f32 %v1462_v60 }
 0x5ec   : > { %v1516_v42 = vpack.c.bf16 %v1488_v36, %v1486_v23 }
 0x5ed   : > { %v4641_v16 = vpop.eup %4640 }
 0x5ee   : > { %4203 = vmatprep.subr.bf16.mxu1 %v1516_v42  ;;  %v1464_v56 = vpop.xlane.xlu1 %1463  ;;  %v1490_v45 = vmul.f32 %v4641_v16, %v5622_v11 }
 0x5ef   : > { %4646 = vrcp.f32 %v1464_v56  ;;  %4204 = vmatpush3.bf16.xpose.msra.mxu1 %v1516_v42 }
 0x5f1   : > { %v4643_v21 = vpop.eup %4642 }
 0x5f2   : > { %v1466_v43 = vpop.xlane.xlu0 %1465  ;;  %v1492_v6 = vmul.f32 %v4643_v21, %v5626_v7 }
 0x5f3   : > { %4648 = vrcp.f32 %v1466_v43 }
 0x5f4   : > { %v1517_v49 = vpack.c.bf16 %v1492_v6, %v1490_v45 }
 0x5f5   : > { %v4645_v37 = vpop.eup %4644 }
 0x5f6   : > { %4205 = vmatprep.subr.bf16.mxu1 %v1517_v49  ;;  %v1468_v51 = vpop.xlane.xlu1 %1467  ;;  %v1494_v57 = vmul.f32 %v4645_v37, %v5630_v30 }
 0x5f7   : > { %4650 = vrcp.f32 %v1468_v51  ;;  %4206 = vmatpush3.bf16.xpose.msra.mxu1 %v1517_v49 }
 0x5f9   : > { %v4647_v18 = vpop.eup %4646 }
 0x5fa   : > { %v1470_v55 = vpop.xlane.xlu0 %1469  ;;  %v1496_v61 = vmul.f32 %v4647_v18, %v5634_v53 }
 0x5fb   : > { %4652 = vrcp.f32 %v1470_v55 }
 0x5fc   : > { %v1518_v63 = vpack.c.bf16 %v1496_v61, %v1494_v57 }
 0x5fd   : > { %v4649_v11 = vpop.eup %4648 }
 0x5fe   : > { %4207 = vmatprep.subr.bf16.mxu1 %v1518_v63  ;;  %v1472_v8 = vpop.xlane.xlu1 %1471  ;;  %v1498_v36 = vmul.f32 %v4649_v11, %v5639_v13 }
 0x5ff   : > { %4654 = vrcp.f32 %v1472_v8  ;;  %4208 = vmatpush3.bf16.xpose.msra.mxu1 %v1518_v63 }
 0x601   : > { %v4651_v7 = vpop.eup %4650 }
 0x602   : > { %v1474_v60 = vpop.xlane.xlu0 %1473  ;;  %v1476_v23 = vpop.xlane.xlu1 %1475  ;;  %v1500_v42 = vmul.f32 %v4651_v7, %v5643_v34 }
 0x603   : > { %4656 = vrcp.f32 %v1474_v60 }
 0x604   : > { %4658 = vrcp.f32 %v1476_v23  ;;  %v1519_v56 = vpack.c.bf16 %v1500_v42, %v1498_v36  ;;  %v4532_v42 = vld [vmem:[%s6845_s1 + $0xb0] sm:$0xff]  }
 0x605   : > { %v4653_v53 = vpop.eup %4652 }
 0x606   : > { %v1478_v30 = vpop.xlane.xlu0 %1477  ;;  %4209 = vmatprep.subr.bf16.mxu1 %v1519_v56  ;;  %v1502_v43 = vmul.f32 %v4653_v53, %v5647_v50 }
 0x607   : > { %4210 = vmatpush3.bf16.xpose.msra.mxu1 %v1519_v56  ;;  %4660 = vrcp.f32 %v1478_v30 }
 0x609   : > { %v4655_v16 = vpop.eup %4654 }
 0x60a   : > { %v1480_v21 = vpop.xlane.xlu1 %1479  ;;  %v1504_v45 = vmul.f32 %v4655_v16, %v5651_v2 }
 0x60b   : > { %4662 = vrcp.f32 %v1480_v21 }
 0x60c   : > { %v1520_v6 = vpack.c.bf16 %v1504_v45, %v1502_v43  ;;  %v1588_v61 = vpop.trf.xlu0 }
 0x60d   : > { %v4657_v49 = vpop.eup %4656 }
 0x60e   : > { %v4659_v13 = vpop.eup %4658  ;;  %4211 = vmatprep.subr.bf16.mxu1 %v1520_v6  ;;  %v1506_v34 = vmul.f32 %v4657_v49, %v5656_v25 }
 0x60f   : > { %4212 = vmatpush3.bf16.xpose.msra.mxu1 %v1520_v6  ;;  %v1508_v51 = vmul.f32 %v4659_v13, %v5654_v24 }
 0x610   : > { %v1589_v63 = vpop.trf.xlu0 }
 0x611   : > { %v1521_v37 = vpack.c.bf16 %v1508_v51, %v1506_v34  ;;  %v4661_v18 = vpop.eup %4660 }
 0x612   : > { %v1510_v57 = vmul.f32 %v4661_v18, %v5660_v5 }
 0x613   : > { %4213 = vmatprep.subr.bf16.mxu1 %v1521_v37 }
 0x614   : > { %v1590_v25 = vpop.trf.xlu0 }
 0x615   : > { %v4663_v55 = vpop.eup %4662 }
 0x616   : > { %v1512_v50 = vmul.f32 %v4663_v55, %v5663_v27 }
 0x617   : > { %4214 = vmatpush3.bf16.xpose.msra.mxu1 %v1521_v37 }
 0x618   : > { %v1522_v2 = vpack.c.bf16 %v1512_v50, %v1510_v57  ;;  %v1591_v24 = vpop.trf.xlu0 }
 0x61a   : > { %4215 = vmatprep.subr.bf16.mxu1 %v1522_v2 }
 0x61c   : > { %v1592_v5 = vpop.trf.xlu0 }
 0x61f   : > { %4216 = vmatpush3.bf16.xpose.msra.mxu1 %v1522_v2 }
 0x620   : > { %4221 = vmatprep.subr.bf16.mxu1 %v5485_v17 }
 0x626   : > { %4218 = vmatmul.mubr.bf16.vlgmr.msra.gmra.mrb[36].mxu1 %v822_v52 }
 0x627   : > { %4222 = vmatpush3.bf16.msra.mxu1 %v5485_v17  ;;  %4225 = vmatprep.mubr.msk.bf16.mxu1 %vm438_vm0, %v1588_v61  ;;  %v1593_v17 = vpop.trf.xlu0 }
 0x628   : > { %4223 = vmatprep.subr.bf16.mxu1 %v5489_v58 }
 0x62b   : > { %4224 = vmatpush3.bf16.msra.mxu1 %v5489_v58  ;;  %v1594_v27 = vpop.trf.xlu0  ;;  %v1936_v58 = vpop.trf.xlu1 }
 0x62c   : > { %4261 = vmatprep.subr.bf16.mxu1 %v5493_v1 }
 0x62e   : > { %4226 = vmatmul.mubr.msk.bf16.vlgmr.msra.gmra.mrb[40].mxu1 %vm438_vm0, %v1589_v63 }
 0x62f   : > { %4262 = vmatpush3.bf16.msra.mxu1 %v5493_v1  ;;  %4229 = vmatprep.mubr.msk.bf16.mxu1 %vm438_vm0, %v1590_v25  ;;  %v1595_v46 = vpop.trf.xlu0  ;;  %v1937_v1 = vpop.trf.xlu1 }
 0x630   : > { %4263 = vmatprep.subr.bf16.mxu1 %v5497_v3 }
 0x633   : > { %4264 = vmatpush3.bf16.msra.mxu1 %v5497_v3  ;;  %v1938_v14 = vpop.trf.xlu1 }
 0x636   : > { %4230 = vmatmul.mubr.msk.bf16.gmra.mrb[44].mxu1 %vm438_vm0, %v1591_v24 }
 0x637   : > { %4233 = vmatprep.mubr.msk.bf16.mxu1 %vm438_vm0, %v1592_v5  ;;  %v1939_v3 = vpop.trf.xlu1  ;;  %v4530_v5 = vld [vmem:[%s6845_s1 + $0xa0] sm:$0xff]  }
 0x638   : > { %3904 = vmatmul.mubr.msk.bf16.gmra.mrb[80].mxu0 %vm438_vm0, %v4530_v5 }
 0x639   : > { %753 = vmatprep.mubr.bf16.mxu0 %v6901_v31 }
 0x63b   : > { %v1940_v52 = vpop.trf.xlu1 }
 0x63e   : > { %4234 = vmatmul.mubr.msk.bf16.gmra.mrb[48].mxu1 %vm438_vm0, %v1593_v17 }
 0x63f   : > { %4237 = vmatprep.mubr.msk.bf16.mxu1 %vm438_vm0, %v1594_v27  ;;  %v1941_v8 = vpop.trf.xlu1 }
 0x643   : > { %v1942_v11 = vpop.trf.xlu1 }
 0x646   : > { %4238 = vmatmul.mubr.msk.bf16.gmra.mrb[52].mxu1 %vm438_vm0, %v1595_v46 }
 0x647   : > { %4265 = vmatprep.mubr.msk.bf16.mxu1 %vm438_vm0, %v1936_v58  ;;  %v1943_v7 = vpop.trf.xlu1 }
 0x64e   : > { %4266 = vmatmul.mubr.msk.bf16.vlgmr.msra.gmra.mrb[56].mxu1 %vm438_vm0, %v1937_v1 }
 0x64f   : > { %4269 = vmatprep.mubr.msk.bf16.mxu1 %vm438_vm0, %v1938_v14 }
 0x656   : > { %4270 = vmatmul.mubr.msk.bf16.gmra.mrb[60].mxu1 %vm438_vm0, %v1939_v3 }
 0x657   : > { %4273 = vmatprep.mubr.msk.bf16.mxu1 %vm438_vm0, %v1940_v52  ;;  %v4531_v52 = vld [vmem:[%s6845_s1 + $0xa8] sm:$0xff]  }
 0x658   : > { %3905 = vmatmul.mubr.msk.bf16.gmra.mrb[84].mxu0 %vm438_vm0, %v4531_v52  ;;  %v4533_v52 = vld [vmem:[%s6845_s1 + $0xb8] sm:$0xff]  }
 0x659   : > { %763 = vmatprep.mubr.bf16.mxu0 %v6901_v31 }
 0x65e   : > { %4274 = vmatmul.mubr.msk.bf16.gmra.mrb[64].mxu1 %vm438_vm0, %v1941_v8 }
 0x65f   : > { %4277 = vmatprep.mubr.msk.bf16.mxu1 %vm438_vm0, %v1942_v11 }
 0x660   : > { %3906 = vmatmul.mubr.msk.bf16.gmra.mrb[88].mxu0 %vm438_vm0, %v4532_v42 }
 0x661   : > { %773 = vmatprep.mubr.bf16.mxu0 %v6901_v31 }
 0x666   : > { %4278 = vmatmul.mubr.msk.bf16.gmra.mrb[68].mxu1 %vm438_vm0, %v1943_v7 }
 0x668   : > { %3907 = vmatmul.mubr.msk.bf16.gmra.mrb[92].mxu0 %vm438_vm0, %v4533_v52 }
 0x6f9   : > { %v5739_v60 = vpop.f32.mrb[36].mxu1 }
 0x6fa   : > { %6908 = vst [vmem:[#allocation27_spill] sm:$0xff] %v5739_v60  ;;  %v5741_v23 = vpop.f32.mrb[37].mxu1 }
 0x6fb   : > { %6909 = vst [vmem:[#allocation28_spill] sm:$0xff] %v5741_v23  ;;  %v5743_v36 = vpop.f32.mrb[38].mxu1 }
 0x6fc   : > { %6910 = vst [vmem:[#allocation29_spill] sm:$0xff] %v5743_v36  ;;  %v5747_v56 = vpop.f32.mrb[39].mxu1 }
 0x6fd   : > { %6911 = vst [vmem:[#allocation30_spill] sm:$0xff] %v5747_v56 }
 0x701   : > { %v5751_v53 = vpop.f32.mrb[40].mxu1 }
 0x702   : > { %v5753_v16 = vpop.f32.mrb[41].mxu1 }
 0x703   : > { %1717 = vmax.xlane.f32.xlu0 %v5753_v16  ;;  %v5756_v21 = vpop.f32.mrb[42].mxu1 }
 0x704   : > { %v5758_v43 = vpop.f32.mrb[43].mxu1 }
 0x705   : > { %1719 = vmax.xlane.f32.xlu1 %v5758_v43 }
 0x707   : > { %1721 = vmax.xlane.f32.xlu0 %v5751_v53 }
 0x709   : > { %1723 = vmax.xlane.f32.xlu1 %v5756_v21  ;;  %v5763_v45 = vpop.f32.mrb[44].mxu1 }
 0x70a   : > { %v5765_v6 = vpop.f32.mrb[45].mxu1 }
 0x70b   : > { %v5767_v49 = vpop.f32.mrb[46].mxu1 }
 0x70c   : > { %v5769_v13 = vpop.f32.mrb[47].mxu1 }
 0x711   : > { %v5771_v34 = vpop.f32.mrb[48].mxu1 }
 0x712   : > { %v5773_v51 = vpop.f32.mrb[49].mxu1 }
 0x713   : > { %v5775_v37 = vpop.f32.mrb[50].mxu1 }
 0x714   : > { %v5777_v18 = vpop.f32.mrb[51].mxu1 }
 0x719   : > { %v5779_v55 = vpop.f32.mrb[52].mxu1 }
 0x71a   : > { %v5781_v57 = vpop.f32.mrb[53].mxu1 }
 0x71b   : > { %v5783_v50 = vpop.f32.mrb[54].mxu1 }
 0x71c   : > { %v5785_v2 = vpop.f32.mrb[55].mxu1 }
 0x721   : > { %v5787_v61 = vpop.f32.mrb[56].mxu1 }
 0x722   : > { %v5789_v63 = vpop.f32.mrb[57].mxu1 }
 0x723   : > { %2065 = vmax.xlane.f32.xlu0 %v5789_v63  ;;  %v5792_v25 = vpop.f32.mrb[58].mxu1 }
 0x724   : > { %v5794_v24 = vpop.f32.mrb[59].mxu1 }
 0x725   : > { %2067 = vmax.xlane.f32.xlu1 %v5794_v24 }
 0x727   : > { %1725 = vmax.xlane.f32.xlu0 %v5765_v6 }
 0x729   : > { %1727 = vmax.xlane.f32.xlu1 %v5769_v13  ;;  %v5803_v17 = vpop.f32.mrb[60].mxu1 }
 0x72a   : > { %v5806_v27 = vpop.f32.mrb[61].mxu1 }
 0x72b   : > { %2069 = vmax.xlane.f32.xlu0 %v5787_v61  ;;  %v5809_v58 = vpop.f32.mrb[62].mxu1 }
 0x72c   : > { %v5811_v46 = vpop.f32.mrb[63].mxu1 }
 0x72d   : > { %2071 = vmax.xlane.f32.xlu1 %v5792_v25 }
 0x72f   : > { %1729 = vmax.xlane.f32.xlu0 %v5763_v45 }
 0x731   : > { %1731 = vmax.xlane.f32.xlu1 %v5767_v49  ;;  %v5816_v1 = vpop.f32.mrb[64].mxu1 }
 0x732   : > { %v5818_v14 = vpop.f32.mrb[65].mxu1 }
 0x733   : > { %2073 = vmax.xlane.f32.xlu0 %v5806_v27  ;;  %v5821_v3 = vpop.f32.mrb[66].mxu1 }
 0x734   : > { %v5826_v8 = vpop.f32.mrb[67].mxu1 }
 0x735   : > { %2075 = vmax.xlane.f32.xlu1 %v5811_v46 }
 0x737   : > { %1733 = vmax.xlane.f32.xlu0 %v5773_v51 }
 0x739   : > { %1735 = vmax.xlane.f32.xlu1 %v5777_v18  ;;  %v5833_v11 = vpop.f32.mrb[68].mxu1 }
 0x73a   : > { %v5835_v7 = vpop.f32.mrb[69].mxu1 }
 0x73b   : > { %2077 = vmax.xlane.f32.xlu0 %v5803_v17  ;;  %v5838_v5 = vpop.f32.mrb[70].mxu1 }
 0x73c   : > { %v5843_v30 = vpop.f32.mrb[71].mxu1 }
 0x73d   : > { %2079 = vmax.xlane.f32.xlu1 %v5809_v58 }
 0x73f   : > { %1737 = vmax.xlane.f32.xlu0 %v5771_v34 }
 0x741   : > { %1739 = vmax.xlane.f32.xlu1 %v5775_v37 }
 0x743   : > { %2081 = vmax.xlane.f32.xlu0 %v5818_v14 }
 0x745   : > { %2083 = vmax.xlane.f32.xlu1 %v5826_v8 }
 0x747   : > { %1741 = vmax.xlane.f32.xlu0 %v5781_v57 }
 0x749   : > { %1743 = vmax.xlane.f32.xlu1 %v5785_v2 }
 0x74b   : > { %2085 = vmax.xlane.f32.xlu0 %v5816_v1 }
 0x74d   : > { %2087 = vmax.xlane.f32.xlu1 %v5821_v3 }
 0x74f   : > { %1745 = vmax.xlane.f32.xlu0 %v5779_v55 }
 0x751   : > { %1747 = vmax.xlane.f32.xlu1 %v5783_v50 }
 0x753   : > { %2089 = vmax.xlane.f32.xlu0 %v5835_v7 }
 0x755   : > { %2091 = vmax.xlane.f32.xlu1 %v5843_v30 }
 0x757   : > { %2093 = vmax.xlane.f32.xlu0 %v5833_v11 }
 0x759   : > { %2095 = vmax.xlane.f32.xlu1 %v5838_v5 }
 0x790   : > { %v1718_v42 = vpop.xlane.xlu0 %1717 }
 0x791   : > { %v1749_v52 = vsub.f32 %v5753_v16, %v1718_v42 }
 0x792   : > { %v1720_v60 = vpop.xlane.xlu1 %1719 }
 0x793   : > { %v1765_v36 = vmul.f32 1.442695, %v1749_v52  ;;  %v1750_v23 = vsub.f32 %v5758_v43, %v1720_v60 }
 0x794   : > { %v1722_v56 = vpop.xlane.xlu0 %1721 }
 0x795   : > { %4664 = vpow2.f32 %v1765_v36  ;;  %v1767_v4 = vmul.f32 1.442695, %v1750_v23  ;;  %v1751_v39 = vsub.f32 %v5751_v53, %v1722_v56 }
 0x796   : > { %v1724_v31 = vpop.xlane.xlu1 %1723 }
 0x797   : > { %4666 = vpow2.f32 %v1767_v4  ;;  %v1769_v62 = vmul.f32 1.442695, %v1751_v39  ;;  %v1752_v28 = vsub.f32 %v5756_v21, %v1724_v31 }
 0x799   : > { %4668 = vpow2.f32 %v1769_v62  ;;  %v1771_v19 = vmul.f32 1.442695, %v1752_v28 }
 0x79b   : > { %4670 = vpow2.f32 %v1771_v19 }
 0x79f   : > { %v5870_v40 = vpop.eup %4664 }
 0x7a0   : > { %1797 = vadd.xlane.f32.xlu0 %v5870_v40 }
 0x7a1   : > { %v5873_v16 = vpop.eup %4666 }
 0x7a2   : > { %1799 = vadd.xlane.f32.xlu1 %v5873_v16 }
 0x7a3   : > { %v5876_v60 = vpop.eup %4668 }
 0x7a4   : > { %1801 = vadd.xlane.f32.xlu0 %v5876_v60 }
 0x7a5   : > { %v5879_v23 = vpop.eup %4670 }
 0x7a6   : > { %1803 = vadd.xlane.f32.xlu1 %v5879_v23 }
 0x7b0   : > { %v2066_v4 = vpop.xlane.xlu0 %2065 }
 0x7b1   : > { %v2097_v62 = vsub.f32 %v5789_v63, %v2066_v4 }
 0x7b2   : > { %v2068_v39 = vpop.xlane.xlu1 %2067 }
 0x7b3   : > { %v2113_v28 = vmul.f32 1.442695, %v2097_v62  ;;  %v2098_v31 = vsub.f32 %v5794_v24, %v2068_v39 }
 0x7b4   : > { %v1726_v19 = vpop.xlane.xlu0 %1725 }
 0x7b5   : > { %4672 = vpow2.f32 %v2113_v28  ;;  %v2115_v36 = vmul.f32 1.442695, %v2098_v31  ;;  %v1753_v56 = vsub.f32 %v5765_v6, %v1726_v19 }
 0x7b6   : > { %v1728_v53 = vpop.xlane.xlu1 %1727 }
 0x7b7   : > { %4674 = vpow2.f32 %v2115_v36  ;;  %v1773_v21 = vmul.f32 1.442695, %v1753_v56  ;;  %v1754_v43 = vsub.f32 %v5769_v13, %v1728_v53 }
 0x7b8   : > { %v2070_v42 = vpop.xlane.xlu0 %2069 }
 0x7b9   : > { %4676 = vpow2.f32 %v1773_v21  ;;  %v1775_v52 = vmul.f32 1.442695, %v1754_v43  ;;  %v2099_v59 = vsub.f32 %v5787_v61, %v2070_v42 }
 0x7ba   : > { %v2072_v63 = vpop.xlane.xlu1 %2071 }
 0x7bb   : > { %4678 = vpow2.f32 %v1775_v52  ;;  %v2117_v4 = vmul.f32 1.442695, %v2099_v59  ;;  %v2100_v24 = vsub.f32 %v5792_v25, %v2072_v63 }
 0x7bc   : > { %v1730_v62 = vpop.xlane.xlu0 %1729 }
 0x7bd   : > { %4680 = vpow2.f32 %v2117_v4  ;;  %v2119_v39 = vmul.f32 1.442695, %v2100_v24  ;;  %v1755_v6 = vsub.f32 %v5763_v45, %v1730_v62 }
 0x7be   : > { %v1732_v28 = vpop.xlane.xlu1 %1731 }
 0x7bf   : > { %v5889_v31 = vpop.eup %4672  ;;  %4682 = vpow2.f32 %v2119_v39  ;;  %v1777_v13 = vmul.f32 1.442695, %v1755_v6  ;;  %v1756_v19 = vsub.f32 %v5767_v49, %v1732_v28 }
 0x7c0   : > { %v2074_v36 = vpop.xlane.xlu0 %2073  ;;  %2145 = vadd.xlane.f32.xlu0 %v5889_v31 }
 0x7c1   : > { %v5893_v61 = vpop.eup %4674  ;;  %4684 = vpow2.f32 %v1777_v13  ;;  %v1779_v59 = vmul.f32 1.442695, %v1756_v19  ;;  %v2101_v25 = vsub.f32 %v5806_v27, %v2074_v36 }
 0x7c2   : > { %v2076_v56 = vpop.xlane.xlu1 %2075  ;;  %2147 = vadd.xlane.f32.xlu1 %v5893_v61 }
 0x7c3   : > { %v5897_v45 = vpop.eup %4676  ;;  %4686 = vpow2.f32 %v1779_v59  ;;  %v2121_v53 = vmul.f32 1.442695, %v2101_v25  ;;  %v2102_v21 = vsub.f32 %v5811_v46, %v2076_v56 }
 0x7c4   : > { %v1734_v43 = vpop.xlane.xlu0 %1733  ;;  %1805 = vadd.xlane.f32.xlu0 %v5897_v45 }
 0x7c5   : > { %v5901_v49 = vpop.eup %4678  ;;  %4688 = vpow2.f32 %v2121_v53  ;;  %v2123_v42 = vmul.f32 1.442695, %v2102_v21  ;;  %v1757_v52 = vsub.f32 %v5773_v51, %v1734_v43 }
 0x7c6   : > { %v1736_v63 = vpop.xlane.xlu1 %1735  ;;  %1807 = vadd.xlane.f32.xlu1 %v5901_v49 }
 0x7c7   : > { %v5905_v27 = vpop.eup %4680  ;;  %4690 = vpow2.f32 %v2123_v42  ;;  %v1781_v4 = vmul.f32 1.442695, %v1757_v52  ;;  %v1758_v24 = vsub.f32 %v5777_v18, %v1736_v63 }
 0x7c8   : > { %v2078_v62 = vpop.xlane.xlu0 %2077  ;;  %2149 = vadd.xlane.f32.xlu0 %v5905_v27 }
 0x7c9   : > { %v5909_v46 = vpop.eup %4682  ;;  %4692 = vpow2.f32 %v1781_v4  ;;  %v1783_v39 = vmul.f32 1.442695, %v1758_v24  ;;  %v2103_v6 = vsub.f32 %v5803_v17, %v2078_v62 }
 0x7ca   : > { %v2080_v28 = vpop.xlane.xlu1 %2079  ;;  %2151 = vadd.xlane.f32.xlu1 %v5909_v46 }
 0x7cb   : > { %v5913_v51 = vpop.eup %4684  ;;  %4694 = vpow2.f32 %v1783_v39  ;;  %v2125_v13 = vmul.f32 1.442695, %v2103_v6  ;;  %v2104_v19 = vsub.f32 %v5809_v58, %v2080_v28 }
 0x7cc   : > { %v1738_v36 = vpop.xlane.xlu0 %1737  ;;  %1809 = vadd.xlane.f32.xlu0 %v5913_v51 }
 0x7cd   : > { %v5917_v18 = vpop.eup %4686  ;;  %4696 = vpow2.f32 %v2125_v13  ;;  %v2127_v59 = vmul.f32 1.442695, %v2104_v19  ;;  %v1759_v25 = vsub.f32 %v5771_v34, %v1738_v36 }
 0x7ce   : > { %v1740_v56 = vpop.xlane.xlu1 %1739  ;;  %1811 = vadd.xlane.f32.xlu1 %v5917_v18 }
 0x7cf   : > { %v5921_v17 = vpop.eup %4688  ;;  %4698 = vpow2.f32 %v2127_v59  ;;  %v1785_v53 = vmul.f32 1.442695, %v1759_v25  ;;  %v1760_v21 = vsub.f32 %v5775_v37, %v1740_v56 }
 0x7d0   : > { %v2082_v43 = vpop.xlane.xlu0 %2081  ;;  %2153 = vadd.xlane.f32.xlu0 %v5921_v17 }
 0x7d1   : > { %v5925_v58 = vpop.eup %4690  ;;  %4700 = vpow2.f32 %v1785_v53  ;;  %v1787_v42 = vmul.f32 1.442695, %v1760_v21  ;;  %v2105_v52 = vsub.f32 %v5818_v14, %v2082_v43 }
 0x7d2   : > { %v2084_v63 = vpop.xlane.xlu1 %2083  ;;  %2155 = vadd.xlane.f32.xlu1 %v5925_v58 }
 0x7d3   : > { %v5929_v34 = vpop.eup %4692  ;;  %4702 = vpow2.f32 %v1787_v42  ;;  %v2129_v4 = vmul.f32 1.442695, %v2105_v52  ;;  %v2106_v24 = vsub.f32 %v5826_v8, %v2084_v63 }
 0x7d4   : > { %v1742_v62 = vpop.xlane.xlu0 %1741  ;;  %1813 = vadd.xlane.f32.xlu0 %v5929_v34 }
 0x7d5   : > { %v5933_v37 = vpop.eup %4694  ;;  %4704 = vpow2.f32 %v2129_v4  ;;  %v2131_v39 = vmul.f32 1.442695, %v2106_v24  ;;  %v1761_v6 = vsub.f32 %v5781_v57, %v1742_v62 }
 0x7d6   : > { %v1744_v28 = vpop.xlane.xlu1 %1743  ;;  %1815 = vadd.xlane.f32.xlu1 %v5933_v37 }
 0x7d7   : > { %v5937_v14 = vpop.eup %4696  ;;  %4706 = vpow2.f32 %v2131_v39  ;;  %v1789_v13 = vmul.f32 1.442695, %v1761_v6  ;;  %v1762_v19 = vsub.f32 %v5785_v2, %v1744_v28 }
 0x7d8   : > { %v2086_v36 = vpop.xlane.xlu0 %2085  ;;  %2157 = vadd.xlane.f32.xlu0 %v5937_v14 }
 0x7d9   : > { %v5941_v8 = vpop.eup %4698  ;;  %4708 = vpow2.f32 %v1789_v13  ;;  %v1791_v59 = vmul.f32 1.442695, %v1762_v19  ;;  %v2107_v25 = vsub.f32 %v5816_v1, %v2086_v36 }
 0x7da   : > { %v2088_v56 = vpop.xlane.xlu1 %2087  ;;  %2159 = vadd.xlane.f32.xlu1 %v5941_v8 }
 0x7db   : > { %v5945_v57 = vpop.eup %4700  ;;  %4710 = vpow2.f32 %v1791_v59  ;;  %v2133_v53 = vmul.f32 1.442695, %v2107_v25  ;;  %v2108_v21 = vsub.f32 %v5821_v3, %v2088_v56 }
 0x7dc   : > { %v1746_v43 = vpop.xlane.xlu0 %1745  ;;  %1817 = vadd.xlane.f32.xlu0 %v5945_v57 }
 0x7dd   : > { %v5949_v2 = vpop.eup %4702  ;;  %4712 = vpow2.f32 %v2133_v53  ;;  %v2135_v42 = vmul.f32 1.442695, %v2108_v21  ;;  %v1763_v52 = vsub.f32 %v5779_v55, %v1746_v43 }
 0x7de   : > { %v1748_v63 = vpop.xlane.xlu1 %1747  ;;  %1819 = vadd.xlane.f32.xlu1 %v5949_v2 }
 0x7df   : > { %v5953_v1 = vpop.eup %4704  ;;  %4714 = vpow2.f32 %v2135_v42  ;;  %v1793_v4 = vmul.f32 1.442695, %v1763_v52  ;;  %v1764_v24 = vsub.f32 %v5783_v50, %v1748_v63 }
 0x7e0   : > { %2161 = vadd.xlane.f32.xlu0 %v5953_v1  ;;  %v2090_v3 = vpop.xlane.xlu0 %2089 }
 0x7e1   : > { %v5957_v62 = vpop.eup %4706  ;;  %4716 = vpow2.f32 %v1793_v4  ;;  %v1795_v39 = vmul.f32 1.442695, %v1764_v24  ;;  %v2109_v6 = vsub.f32 %v5835_v7, %v2090_v3  ;;  %v745_v24 = vpop.f32.mrb[80].mxu0 }
 0x7e2   : > { %2163 = vadd.xlane.f32.xlu1 %v5957_v62  ;;  %v2092_v55 = vpop.xlane.xlu1 %2091  ;;  %v5994_v3 = vpop.f32.mrb[81].mxu0 }
 0x7e3   : > { %v5961_v28 = vpop.eup %4708  ;;  %4718 = vpow2.f32 %v1795_v39  ;;  %v2137_v13 = vmul.f32 1.442695, %v2109_v6  ;;  %v2110_v19 = vsub.f32 %v5843_v30, %v2092_v55  ;;  %6912 = vst [vmem:[#allocation31_spill] sm:$0xff] %v5994_v3  ;;  %v749_v39 = vpop.f32.mrb[82].mxu0 }
 0x7e4   : > { %1821 = vadd.xlane.f32.xlu0 %v5961_v28  ;;  %v2094_v50 = vpop.xlane.xlu0 %2093  ;;  %v5996_v6 = vpop.f32.mrb[83].mxu0  ;;  %v824_v55 = vpack.c.bf16 %v749_v39, %v745_v24 }
 0x7e5   : > { %v5965_v36 = vpop.eup %4710  ;;  %4720 = vpow2.f32 %v2137_v13  ;;  %v2139_v59 = vmul.f32 1.442695, %v2110_v19  ;;  %v2111_v25 = vsub.f32 %v5833_v11, %v2094_v50  ;;  %6913 = vst [vmem:[#allocation32_spill] sm:$0xff] %v5996_v6  ;;  %v6000_v19 = vpop.f32.mrb[84].mxu0  ;;  %v6919_v13 = vpack.c.bf16 %v5285_v41, %v5279_v38 }
 0x7e6   : > { %1823 = vadd.xlane.f32.xlu1 %v5965_v36  ;;  %v2096_v7 = vpop.xlane.xlu1 %2095  ;;  %4257 = vmatprep.mubr.bf16.mxu0 %v824_v55  ;;  %v6002_v50 = vpop.f32.mrb[85].mxu0 }
 0x7e7   : > { %v5969_v56 = vpop.eup %4712  ;;  %4722 = vpow2.f32 %v2139_v59  ;;  %v2141_v53 = vmul.f32 1.442695, %v2111_v25  ;;  %v2112_v21 = vsub.f32 %v5838_v5, %v2096_v7  ;;  %6914 = vst [vmem:[#allocation33_spill] sm:$0xff] %v6002_v50  ;;  %v6004_v59 = vpop.f32.mrb[86].mxu0 }
 0x7e8   : > { %2165 = vadd.xlane.f32.xlu0 %v5969_v56  ;;  %v6006_v25 = vpop.f32.mrb[87].mxu0 }
 0x7e9   : > { %v5973_v30 = vpop.eup %4714  ;;  %4724 = vpow2.f32 %v2141_v53  ;;  %v2143_v43 = vmul.f32 1.442695, %v2112_v21  ;;  %6915 = vst [vmem:[#allocation34_spill] sm:$0xff] %v6006_v25  ;;  %v765_v21 = vpop.f32.mrb[88].mxu0 }
 0x7ea   : > { %2167 = vadd.xlane.f32.xlu1 %v5973_v30 }
 0x7eb   : > { %v5976_v42 = vpop.eup %4716  ;;  %4726 = vpow2.f32 %v2143_v43  ;;  %v6012_v43 = vpop.f32.mrb[89].mxu0 }
 0x7ec   : > { %1825 = vadd.xlane.f32.xlu0 %v5976_v42  ;;  %v769_v24 = vpop.f32.mrb[90].mxu0 }
 0x7ed   : > { %v5979_v11 = vpop.eup %4718  ;;  %v6014_v39 = vpop.f32.mrb[91].mxu0  ;;  %v828_v55 = vpack.c.bf16 %v769_v24, %v765_v21  ;;  %v6916_v21 = vpack.c.bf16 %v5255_v22, %v5253_v20  ;;  %v6917_v24 = vpack.c.bf16 %v5273_v35, %v5267_v32 }
 0x7ee   : > { %1827 = vadd.xlane.f32.xlu1 %v5979_v11  ;;  %v6018_v3 = vpop.f32.mrb[92].mxu0 }
 0x7ef   : > { %v5982_v52 = vpop.eup %4720  ;;  %4297 = vmatprep.mubr.bf16.mxu1 %v828_v55  ;;  %v6020_v6 = vpop.f32.mrb[93].mxu0  ;;  %v6918_v55 = vpack.c.bf16 %v5261_v29, %v5259_v26 }
 0x7f0   : > { %2169 = vadd.xlane.f32.xlu0 %v5982_v52  ;;  %v6022_v44 = vpop.f32.mrb[94].mxu0 }
 0x7f1   : > { %v5985_v5 = vpop.eup %4722  ;;  %v6026_v7 = vpop.f32.mrb[95].mxu0 }
 0x7f2   : > { %2171 = vadd.xlane.f32.xlu1 %v5985_v5 }
 0x7f3   : > { %v5988_v63 = vpop.eup %4724 }
 0x7f4   : > { %2173 = vadd.xlane.f32.xlu0 %v5988_v63 }
 0x7f5   : > { %v5991_v4 = vpop.eup %4726 }
 0x7f6   : > { %2175 = vadd.xlane.f32.xlu1 %v5991_v4 }
 0x821   : > { %2276 = vxpose.xlu0.c.b16.start [1/2] (short) %v6916_v21, 128 }
 0x823   : > { %2624 = vxpose.xlu1.c.b16.start [1/2] (short) %v6917_v24, 128 }
 0x825   : > { %2277 = vxpose.xlu0.c.b16.end [2/2] (short) %v6918_v55, 128 }
 0x827   : > { %2625 = vxpose.xlu1.c.b16.end [2/2] (short) %v6919_v13, 128 }
 0x82d   : > { %v1798_v53 = vpop.xlane.xlu0 %1797 }
 0x82e   : > { %4728 = vrcp.f32 %v1798_v53 }
 0x82f   : > { %v1800_v25 = vpop.xlane.xlu1 %1799 }
 0x830   : > { %4730 = vrcp.f32 %v1800_v25 }
 0x831   : > { %v1802_v50 = vpop.xlane.xlu0 %1801 }
 0x832   : > { %4732 = vrcp.f32 %v1802_v50 }
 0x833   : > { %v1804_v20 = vpop.xlane.xlu1 %1803 }
 0x834   : > { %4734 = vrcp.f32 %v1804_v20 }
 0x838   : > { %v4729_v22 = vpop.eup %4728 }
 0x839   : > { %v1830_v32 = vmul.f32 %v4729_v22, %v5870_v40 }
 0x83a   : > { %v4731_v21 = vpop.eup %4730 }
 0x83b   : > { %v1832_v35 = vmul.f32 %v4731_v21, %v5873_v16 }
 0x83c   : > { %v4733_v26 = vpop.eup %4732 }
 0x83d   : > { %v1863_v29 = vpack.c.bf16 %v1832_v35, %v1830_v32  ;;  %v1834_v38 = vmul.f32 %v4733_v26, %v5876_v60 }
 0x83e   : > { %v4735_v24 = vpop.eup %4734 }
 0x83f   : > { %4241 = vmatprep.subr.bf16.mxu0 %v1863_v29  ;;  %v1836_v41 = vmul.f32 %v4735_v24, %v5879_v23 }
 0x840   : > { %4242 = vmatpush3.bf16.xpose.msra.mxu0 %v1863_v29 }
 0x841   : > { %v1864_v13 = vpack.c.bf16 %v1836_v41, %v1834_v38 }
 0x843   : > { %4243 = vmatprep.subr.bf16.mxu0 %v1864_v13 }
 0x848   : > { %4244 = vmatpush3.bf16.xpose.msra.mxu0 %v1864_v13 }
 0x84d   : > { %v2146_v50 = vpop.xlane.xlu0 %2145 }
 0x84e   : > { %4736 = vrcp.f32 %v2146_v50 }
 0x84f   : > { %v2148_v25 = vpop.xlane.xlu1 %2147 }
 0x850   : > { %4738 = vrcp.f32 %v2148_v25 }
 0x851   : > { %v1806_v53 = vpop.xlane.xlu0 %1805 }
 0x852   : > { %4740 = vrcp.f32 %v1806_v53 }
 0x853   : > { %v1808_v40 = vpop.xlane.xlu1 %1807 }
 0x854   : > { %4742 = vrcp.f32 %v1808_v40 }
 0x855   : > { %v2150_v16 = vpop.xlane.xlu0 %2149 }
 0x856   : > { %4744 = vrcp.f32 %v2150_v16 }
 0x857   : > { %v2152_v55 = vpop.xlane.xlu1 %2151 }
 0x858   : > { %v4737_v20 = vpop.eup %4736  ;;  %4746 = vrcp.f32 %v2152_v55 }
 0x859   : > { %v1810_v60 = vpop.xlane.xlu0 %1809  ;;  %v2178_v21 = vmul.f32 %v4737_v20, %v5889_v31 }
 0x85a   : > { %v4739_v22 = vpop.eup %4738  ;;  %4748 = vrcp.f32 %v1810_v60 }
 0x85b   : > { %v1812_v23 = vpop.xlane.xlu1 %1811  ;;  %v2180_v32 = vmul.f32 %v4739_v22, %v5893_v61 }
 0x85c   : > { %v4741_v35 = vpop.eup %4740  ;;  %4750 = vrcp.f32 %v1812_v23 }
 0x85d   : > { %v2154_v26 = vpop.xlane.xlu0 %2153  ;;  %v2211_v29 = vpack.c.bf16 %v2180_v32, %v2178_v21  ;;  %v1838_v41 = vmul.f32 %v4741_v35, %v5897_v45 }
 0x85e   : > { %v4743_v24 = vpop.eup %4742  ;;  %4752 = vrcp.f32 %v2154_v26 }
 0x85f   : > { %4281 = vmatprep.subr.bf16.mxu1 %v2211_v29  ;;  %v2156_v38 = vpop.xlane.xlu1 %2155  ;;  %v1840_v13 = vmul.f32 %v4743_v24, %v5901_v49 }
 0x860   : > { %v4745_v50 = vpop.eup %4744  ;;  %4754 = vrcp.f32 %v2156_v38  ;;  %4282 = vmatpush3.bf16.xpose.msra.mxu1 %v2211_v29 }
 0x861   : > { %v1814_v25 = vpop.xlane.xlu0 %1813  ;;  %v1865_v53 = vpack.c.bf16 %v1840_v13, %v1838_v41  ;;  %v2182_v40 = vmul.f32 %v4745_v50, %v5905_v27 }
 0x862   : > { %v4747_v31 = vpop.eup %4746  ;;  %4756 = vrcp.f32 %v1814_v25 }
 0x863   : > { %4245 = vmatprep.subr.bf16.mxu0 %v1865_v53  ;;  %v1816_v61 = vpop.xlane.xlu1 %1815  ;;  %v2184_v16 = vmul.f32 %v4747_v31, %v5909_v46 }
 0x864   : > { %v4749_v55 = vpop.eup %4748  ;;  %4758 = vrcp.f32 %v1816_v61  ;;  %4246 = vmatpush3.bf16.xpose.msra.mxu0 %v1865_v53 }
 0x865   : > { %v2158_v20 = vpop.xlane.xlu0 %2157  ;;  %v2212_v45 = vpack.c.bf16 %v2184_v16, %v2182_v40  ;;  %v1842_v22 = vmul.f32 %v4749_v55, %v5913_v51 }
 0x866   : > { %v4751_v60 = vpop.eup %4750  ;;  %4760 = vrcp.f32 %v2158_v20 }
 0x867   : > { %4283 = vmatprep.subr.bf16.mxu1 %v2212_v45  ;;  %v2160_v49 = vpop.xlane.xlu1 %2159  ;;  %v1844_v23 = vmul.f32 %v4751_v60, %v5917_v18 }
 0x868   : > { %v4753_v21 = vpop.eup %4752  ;;  %4762 = vrcp.f32 %v2160_v49  ;;  %4284 = vmatpush3.bf16.xpose.msra.mxu1 %v2212_v45 }
 0x869   : > { %v1818_v32 = vpop.xlane.xlu0 %1817  ;;  %v1866_v27 = vpack.c.bf16 %v1844_v23, %v1842_v22  ;;  %v2186_v26 = vmul.f32 %v4753_v21, %v5921_v17 }
 0x86a   : > { %v4755_v35 = vpop.eup %4754  ;;  %4764 = vrcp.f32 %v1818_v32 }
 0x86b   : > { %4247 = vmatprep.subr.bf16.mxu0 %v1866_v27  ;;  %v1820_v46 = vpop.xlane.xlu1 %1819  ;;  %v2188_v29 = vmul.f32 %v4755_v35, %v5925_v58 }
 0x86c   : > { %v4757_v24 = vpop.eup %4756  ;;  %4766 = vrcp.f32 %v1820_v46  ;;  %4248 = vmatpush3.bf16.xpose.msra.mxu0 %v1866_v27 }
 0x86d   : > { %v2162_v38 = vpop.xlane.xlu0 %2161  ;;  %v2213_v51 = vpack.c.bf16 %v2188_v29, %v2186_v26  ;;  %v1846_v13 = vmul.f32 %v4757_v24, %v5929_v34 }
 0x86e   : > { %v4759_v41 = vpop.eup %4758  ;;  %4768 = vrcp.f32 %v2162_v38 }
 0x86f   : > { %4285 = vmatprep.subr.bf16.mxu1 %v2213_v51  ;;  %v2164_v18 = vpop.xlane.xlu1 %2163  ;;  %v1848_v50 = vmul.f32 %v4759_v41, %v5933_v37 }
 0x870   : > { %v4761_v25 = vpop.eup %4760  ;;  %4770 = vrcp.f32 %v2164_v18  ;;  %4286 = vmatpush3.bf16.xpose.msra.mxu1 %v2213_v51 }
 0x871   : > { %v1822_v53 = vpop.xlane.xlu0 %1821  ;;  %v1867_v17 = vpack.c.bf16 %v1848_v50, %v1846_v13  ;;  %v2190_v61 = vmul.f32 %v4761_v25, %v5937_v14 }
 0x872   : > { %v4763_v31 = vpop.eup %4762  ;;  %4772 = vrcp.f32 %v1822_v53 }
 0x873   : > { %4249 = vmatprep.subr.bf16.mxu0 %v1867_v17  ;;  %v1824_v58 = vpop.xlane.xlu1 %1823  ;;  %v2192_v40 = vmul.f32 %v4763_v31, %v5941_v8 }
 0x874   : > { %v4765_v16 = vpop.eup %4764  ;;  %4774 = vrcp.f32 %v1824_v58  ;;  %4250 = vmatpush3.bf16.xpose.msra.mxu0 %v1867_v17 }
 0x875   : > { %v2166_v55 = vpop.xlane.xlu0 %2165  ;;  %v2214_v34 = vpack.c.bf16 %v2192_v40, %v2190_v61  ;;  %v1850_v45 = vmul.f32 %v4765_v16, %v5945_v57 }
 0x876   : > { %v4767_v20 = vpop.eup %4766  ;;  %4776 = vrcp.f32 %v2166_v55 }
 0x877   : > { %4287 = vmatprep.subr.bf16.mxu1 %v2214_v34  ;;  %v2168_v37 = vpop.xlane.xlu1 %2167  ;;  %v1852_v60 = vmul.f32 %v4767_v20, %v5949_v2 }
 0x878   : > { %v4769_v49 = vpop.eup %4768  ;;  %4778 = vrcp.f32 %v2168_v37  ;;  %4288 = vmatpush3.bf16.xpose.msra.mxu1 %v2214_v34 }
 0x879   : > { %v1826_v22 = vpop.xlane.xlu0 %1825  ;;  %v1868_v14 = vpack.c.bf16 %v1852_v60, %v1850_v45  ;;  %v2194_v21 = vmul.f32 %v4769_v49, %v5953_v1 }
 0x87a   : > { %v4771_v23 = vpop.eup %4770  ;;  %4780 = vrcp.f32 %v1826_v22  ;;  %v6923_v22 = vpack.c.bf16 %v5668_v33, %v5666_v12 }
 0x87b   : > { %4251 = vmatprep.subr.bf16.mxu0 %v1868_v14  ;;  %v1828_v8 = vpop.xlane.xlu1 %1827  ;;  %v2196_v32 = vmul.f32 %v4771_v23, %v5957_v62 }
 0x87c   : > { %v4773_v27 = vpop.eup %4772  ;;  %4782 = vrcp.f32 %v1828_v8  ;;  %4252 = vmatpush3.bf16.xpose.msra.mxu0 %v1868_v14 }
 0x87d   : > { %v2170_v35 = vpop.xlane.xlu0 %2169  ;;  %v2215_v57 = vpack.c.bf16 %v2196_v32, %v2194_v21  ;;  %v1854_v26 = vmul.f32 %v4773_v27, %v5961_v28 }
 0x87e   : > { %v4775_v46 = vpop.eup %4774  ;;  %4784 = vrcp.f32 %v2170_v35 }
 0x87f   : > { %4289 = vmatprep.subr.bf16.mxu1 %v2215_v57  ;;  %v2172_v2 = vpop.xlane.xlu1 %2171  ;;  %v1856_v29 = vmul.f32 %v4775_v46, %v5965_v36 }
 0x880   : > { %v4777_v24 = vpop.eup %4776  ;;  %4786 = vrcp.f32 %v2172_v2  ;;  %4290 = vmatpush3.bf16.xpose.msra.mxu1 %v2215_v57 }
 0x881   : > { %v2174_v38 = vpop.xlane.xlu0 %2173  ;;  %v1869_v1 = vpack.c.bf16 %v1856_v29, %v1854_v26  ;;  %v2198_v41 = vmul.f32 %v4777_v24, %v5969_v56 }
 0x882   : > { %v4779_v51 = vpop.eup %4778  ;;  %4788 = vrcp.f32 %v2174_v38 }
 0x883   : > { %4253 = vmatprep.subr.bf16.mxu0 %v1869_v1  ;;  %v2176_v62 = vpop.xlane.xlu1 %2175  ;;  %v2200_v18 = vmul.f32 %v4779_v51, %v5973_v30 }
 0x884   : > { %v4781_v13 = vpop.eup %4780  ;;  %4790 = vrcp.f32 %v2176_v62  ;;  %4254 = vmatpush3.bf16.xpose.msra.mxu0 %v1869_v1 }
 0x885   : > { %v2216_v50 = vpack.c.bf16 %v2200_v18, %v2198_v41  ;;  %v1858_v36 = vmul.f32 %v4781_v13, %v5976_v42 }
 0x886   : > { %v4783_v28 = vpop.eup %4782 }
 0x887   : > { %4291 = vmatprep.subr.bf16.mxu1 %v2216_v50  ;;  %v1860_v25 = vmul.f32 %v4783_v28, %v5979_v11  ;;  %v2284_v53 = vpop.trf.xlu0 }
 0x888   : > { %v4785_v17 = vpop.eup %4784  ;;  %4292 = vmatpush3.bf16.xpose.msra.mxu1 %v2216_v50 }
 0x889   : > { %v1870_v31 = vpack.c.bf16 %v1860_v25, %v1858_v36  ;;  %v2202_v56 = vmul.f32 %v4785_v17, %v5982_v52  ;;  %v2632_v37 = vpop.trf.xlu1  ;;  %v6920_v52 = vpack.c.bf16 %v6004_v59, %v6000_v19 }
 0x88a   : > { %v4787_v58 = vpop.eup %4786 }
 0x88b   : > { %4255 = vmatprep.subr.bf16.mxu0 %v1870_v31  ;;  %v2204_v30 = vmul.f32 %v4787_v58, %v5985_v5  ;;  %v2285_v40 = vpop.trf.xlu0 }
 0x88c   : > { %v4789_v61 = vpop.eup %4788  ;;  %4256 = vmatpush3.bf16.xpose.msra.mxu0 %v1870_v31 }
 0x88d   : > { %4301 = vmatprep.subr.bf16.mxu0 %v5337_v9  ;;  %v2217_v16 = vpack.c.bf16 %v2204_v30, %v2202_v56  ;;  %v2206_v42 = vmul.f32 %v4789_v61, %v5988_v63  ;;  %v2633_v63 = vpop.trf.xlu1 }
 0x88e   : > { %v4791_v55 = vpop.eup %4790 }
 0x88f   : > { %4293 = vmatprep.subr.bf16.mxu1 %v2217_v16  ;;  %v2208_v11 = vmul.f32 %v4791_v55, %v5991_v4  ;;  %v2286_v20 = vpop.trf.xlu0 }
 0x890   : > { %4294 = vmatpush3.bf16.xpose.msra.mxu1 %v2217_v16 }
 0x891   : > { %v2218_v34 = vpack.c.bf16 %v2208_v11, %v2206_v42  ;;  %v2634_v19 = vpop.trf.xlu1 }
 0x893   : > { %4258 = vmatmul.mubr.bf16.vlgmr.msra.gmra.mrb[96].mxu0 %v6920_v52  ;;  %4295 = vmatprep.subr.bf16.mxu1 %v2218_v34  ;;  %v2287_v5 = vpop.trf.xlu0 }
 0x894   : > { %4302 = vmatpush3.bf16.msra.mxu0 %v5337_v9  ;;  %4305 = vmatprep.mubr.msk.bf16.mxu0 %vm438_vm0, %v2284_v53  ;;  %v6921_v9 = vpack.c.bf16 %v6022_v44, %v6018_v3 }
 0x895   : > { %4303 = vmatprep.subr.bf16.mxu0 %v5339_v15  ;;  %v2635_v59 = vpop.trf.xlu1 }
 0x897   : > { %v2288_v4 = vpop.trf.xlu0 }
 0x898   : > { %4296 = vmatpush3.bf16.xpose.msra.mxu1 %v2218_v34  ;;  %4304 = vmatpush3.bf16.msra.mxu0 %v5339_v15 }
 0x899   : > { %4341 = vmatprep.subr.bf16.mxu1 %v5464_v54  ;;  %v2636_v3 = vpop.trf.xlu1 }
 0x89b   : > { %4306 = vmatmul.mubr.msk.bf16.vlgmr.msra.gmra.mrb[100].mxu0 %vm438_vm0, %v2285_v40  ;;  %v2289_v15 = vpop.trf.xlu0 }
 0x89c   : > { %4309 = vmatprep.mubr.msk.bf16.mxu0 %vm438_vm0, %v2286_v20 }
 0x89d   : > { %v2637_v45 = vpop.trf.xlu1 }
 0x89f   : > { %4298 = vmatmul.mubr.bf16.vlgmr.msra.gmra.mrb[72].mxu1 %v6921_v9  ;;  %v2290_v44 = vpop.trf.xlu0 }
 0x8a0   : > { %4342 = vmatpush3.bf16.msra.mxu1 %v5464_v54  ;;  %4345 = vmatprep.mubr.msk.bf16.mxu1 %vm438_vm0, %v2632_v37 }
 0x8a1   : > { %4343 = vmatprep.subr.bf16.mxu1 %v5479_v10  ;;  %v2638_v60 = vpop.trf.xlu1 }
 0x8a3   : > { %4310 = vmatmul.mubr.msk.bf16.gmra.mrb[104].mxu0 %vm438_vm0, %v2287_v5  ;;  %v2291_v54 = vpop.trf.xlu0 }
 0x8a4   : > { %4344 = vmatpush3.bf16.msra.mxu1 %v5479_v10  ;;  %4313 = vmatprep.mubr.msk.bf16.mxu0 %vm438_vm0, %v2288_v4  ;;  %v6922_v10 = vpack.c.bf16 %v5503_v0, %v5501_v48 }
 0x8a5   : > { %v2639_v49 = vpop.trf.xlu1 }
 0x8a7   : > { %4346 = vmatmul.mubr.msk.bf16.vlgmr.msra.gmra.mrb[76].mxu1 %vm438_vm0, %v2633_v63 }
 0x8a8   : > { %4349 = vmatprep.mubr.msk.bf16.mxu1 %vm438_vm0, %v2634_v19 }
 0x8ab   : > { %4314 = vmatmul.mubr.msk.bf16.gmra.mrb[108].mxu0 %vm438_vm0, %v2289_v15 }
 0x8ac   : > { %4317 = vmatprep.mubr.msk.bf16.mxu0 %vm438_vm0, %v2290_v44 }
 0x8af   : > { %4350 = vmatmul.mubr.msk.bf16.gmra.mrb[80].mxu1 %vm438_vm0, %v2635_v59 }
 0x8b0   : > { %4353 = vmatprep.mubr.msk.bf16.mxu1 %vm438_vm0, %v2636_v3 }
 0x8b3   : > { %4318 = vmatmul.mubr.msk.bf16.gmra.mrb[112].mxu0 %vm438_vm0, %v2291_v54 }
 0x8b4   : > { %4337 = vmatprep.mubr.bf16.mxu0 %v6922_v10 }
 0x8b7   : > { %4354 = vmatmul.mubr.msk.bf16.gmra.mrb[84].mxu1 %vm438_vm0, %v2637_v45 }
 0x8b8   : > { %4357 = vmatprep.mubr.msk.bf16.mxu1 %vm438_vm0, %v2638_v60 }
 0x8bf   : > { %4358 = vmatmul.mubr.msk.bf16.gmra.mrb[88].mxu1 %vm438_vm0, %v2639_v49 }
 0x8c0   : > { %4377 = vmatprep.mubr.bf16.mxu1 %v6923_v22 }
 0x966   : > { %v6110_v14 = vpop.f32.mrb[96].mxu0 }
 0x967   : > { %v6112_v23 = vpop.f32.mrb[97].mxu0 }
 0x968   : > { %v6114_v8 = vpop.f32.mrb[98].mxu0 }
 0x969   : > { %v6118_v48 = vpop.f32.mrb[99].mxu0 }
 0x96e   : > { %v6122_v32 = vpop.f32.mrb[100].mxu0 }
 0x96f   : > { %v6124_v27 = vpop.f32.mrb[101].mxu0 }
 0x970   : > { %2413 = vmax.xlane.f32.xlu0 %v6124_v27  ;;  %v6127_v12 = vpop.f32.mrb[102].mxu0 }
 0x971   : > { %v6129_v33 = vpop.f32.mrb[103].mxu0 }
 0x972   : > { %2415 = vmax.xlane.f32.xlu1 %v6129_v33  ;;  %v6132_v35 = vpop.f32.mrb[72].mxu1 }
 0x973   : > { %v6134_v57 = vpop.f32.mrb[73].mxu1 }
 0x974   : > { %2417 = vmax.xlane.f32.xlu0 %v6122_v32  ;;  %v6137_v46 = vpop.f32.mrb[74].mxu1 }
 0x975   : > { %v6141_v26 = vpop.f32.mrb[75].mxu1 }
 0x976   : > { %2419 = vmax.xlane.f32.xlu1 %v6127_v12  ;;  %v6146_v24 = vpop.f32.mrb[104].mxu0 }
 0x977   : > { %v6148_v38 = vpop.f32.mrb[105].mxu0 }
 0x978   : > { %v6150_v1 = vpop.f32.mrb[106].mxu0 }
 0x979   : > { %v6152_v51 = vpop.f32.mrb[107].mxu0 }
 0x97a   : > { %v6154_v62 = vpop.f32.mrb[76].mxu1 }
 0x97b   : > { %v6156_v41 = vpop.f32.mrb[77].mxu1 }
 0x97c   : > { %v6158_v18 = vpop.f32.mrb[78].mxu1  ;;  %2761 = vmax.xlane.f32.xlu0 %v6156_v41 }
 0x97d   : > { %v6161_v13 = vpop.f32.mrb[79].mxu1 }
 0x97e   : > { %2763 = vmax.xlane.f32.xlu1 %v6161_v13  ;;  %v6164_v50 = vpop.f32.mrb[108].mxu0 }
 0x97f   : > { %v6166_v28 = vpop.f32.mrb[109].mxu0 }
 0x980   : > { %2421 = vmax.xlane.f32.xlu0 %v6148_v38  ;;  %v6169_v36 = vpop.f32.mrb[110].mxu0 }
 0x981   : > { %v6171_v25 = vpop.f32.mrb[111].mxu0 }
 0x982   : > { %2423 = vmax.xlane.f32.xlu1 %v6152_v51  ;;  %v6174_v53 = vpop.f32.mrb[80].mxu1 }
 0x983   : > { %v6176_v17 = vpop.f32.mrb[81].mxu1 }
 0x984   : > { %2765 = vmax.xlane.f32.xlu0 %v6154_v62  ;;  %v6179_v31 = vpop.f32.mrb[82].mxu1 }
 0x985   : > { %v6181_v58 = vpop.f32.mrb[83].mxu1 }
 0x986   : > { %2767 = vmax.xlane.f32.xlu1 %v6158_v18  ;;  %v6184_v56 = vpop.f32.mrb[112].mxu0 }
 0x987   : > { %v6186_v30 = vpop.f32.mrb[113].mxu0 }
 0x988   : > { %2425 = vmax.xlane.f32.xlu0 %v6146_v24  ;;  %v6189_v61 = vpop.f32.mrb[114].mxu0 }
 0x989   : > { %v6191_v40 = vpop.f32.mrb[115].mxu0 }
 0x98a   : > { %2427 = vmax.xlane.f32.xlu1 %v6150_v1  ;;  %v6194_v16 = vpop.f32.mrb[84].mxu1 }
 0x98b   : > { %v6196_v55 = vpop.f32.mrb[85].mxu1 }
 0x98c   : > { %2769 = vmax.xlane.f32.xlu0 %v6176_v17  ;;  %v6199_v42 = vpop.f32.mrb[86].mxu1 }
 0x98d   : > { %v6201_v11 = vpop.f32.mrb[87].mxu1 }
 0x98e   : > { %2771 = vmax.xlane.f32.xlu1 %v6181_v58 }
 0x990   : > { %2429 = vmax.xlane.f32.xlu0 %v6166_v28 }
 0x992   : > { %2431 = vmax.xlane.f32.xlu1 %v6171_v25  ;;  %v6206_v34 = vpop.f32.mrb[88].mxu1 }
 0x993   : > { %v6208_v20 = vpop.f32.mrb[89].mxu1 }
 0x994   : > { %2773 = vmax.xlane.f32.xlu0 %v6174_v53  ;;  %v6211_v37 = vpop.f32.mrb[90].mxu1 }
 0x995   : > { %v6213_v52 = vpop.f32.mrb[91].mxu1 }
 0x996   : > { %2775 = vmax.xlane.f32.xlu1 %v6179_v31 }
 0x998   : > { %2433 = vmax.xlane.f32.xlu0 %v6164_v50 }
 0x99a   : > { %2435 = vmax.xlane.f32.xlu1 %v6169_v36 }
 0x99c   : > { %2777 = vmax.xlane.f32.xlu0 %v6196_v55 }
 0x99e   : > { %2779 = vmax.xlane.f32.xlu1 %v6201_v11 }
 0x9a0   : > { %2437 = vmax.xlane.f32.xlu0 %v6186_v30 }
 0x9a2   : > { %2439 = vmax.xlane.f32.xlu1 %v6191_v40 }
 0x9a4   : > { %2781 = vmax.xlane.f32.xlu0 %v6194_v16 }
 0x9a6   : > { %2783 = vmax.xlane.f32.xlu1 %v6199_v42 }
 0x9a8   : > { %2441 = vmax.xlane.f32.xlu0 %v6184_v56 }
 0x9aa   : > { %2443 = vmax.xlane.f32.xlu1 %v6189_v61 }
 0x9ac   : > { %2785 = vmax.xlane.f32.xlu0 %v6208_v20 }
 0x9ae   : > { %2787 = vmax.xlane.f32.xlu1 %v6213_v52 }
 0x9b0   : > { %2789 = vmax.xlane.f32.xlu0 %v6206_v34 }
 0x9b2   : > { %2791 = vmax.xlane.f32.xlu1 %v6211_v37 }
 0x9fd   : > { %v2414_v5 = vpop.xlane.xlu0 %2413 }
 0x9fe   : > { %v2445_v63 = vsub.f32 %v6124_v27, %v2414_v5 }
 0x9ff   : > { %v2416_v4 = vpop.xlane.xlu1 %2415 }
 0xa00   : > { %v2461_v19 = vmul.f32 1.442695, %v2445_v63  ;;  %v2446_v9 = vsub.f32 %v6129_v33, %v2416_v4 }
 0xa01   : > { %v2418_v15 = vpop.xlane.xlu0 %2417 }
 0xa02   : > { %4792 = vpow2.f32 %v2461_v19  ;;  %v2463_v59 = vmul.f32 1.442695, %v2446_v9  ;;  %v2447_v44 = vsub.f32 %v6122_v32, %v2418_v15 }
 0xa03   : > { %v2420_v3 = vpop.xlane.xlu1 %2419 }
 0xa04   : > { %4794 = vpow2.f32 %v2463_v59  ;;  %v2465_v54 = vmul.f32 1.442695, %v2447_v44  ;;  %v2448_v45 = vsub.f32 %v6127_v12, %v2420_v3 }
 0xa06   : > { %4796 = vpow2.f32 %v2465_v54  ;;  %v2467_v10 = vmul.f32 1.442695, %v2448_v45 }
 0xa08   : > { %4798 = vpow2.f32 %v2467_v10 }
 0xa09   : > { %v2762_v60 = vpop.xlane.xlu0 %2761 }
 0xa0a   : > { %v2793_v49 = vsub.f32 %v6156_v41, %v2762_v60 }
 0xa0b   : > { %v2764_v22 = vpop.xlane.xlu1 %2763 }
 0xa0c   : > { %v6235_v27 = vpop.eup %4792  ;;  %v2809_v33 = vmul.f32 1.442695, %v2793_v49  ;;  %v2794_v5 = vsub.f32 %v6161_v13, %v2764_v22 }
 0xa0d   : > { %v2422_v63 = vpop.xlane.xlu0 %2421  ;;  %2493 = vadd.xlane.f32.xlu0 %v6235_v27 }
 0xa0e   : > { %v6239_v32 = vpop.eup %4794  ;;  %4800 = vpow2.f32 %v2809_v33  ;;  %v2811_v4 = vmul.f32 1.442695, %v2794_v5  ;;  %v2449_v12 = vsub.f32 %v6148_v38, %v2422_v63 }
 0xa0f   : > { %v2424_v19 = vpop.xlane.xlu1 %2423  ;;  %2495 = vadd.xlane.f32.xlu1 %v6239_v32 }
 0xa10   : > { %v6243_v9 = vpop.eup %4796  ;;  %4802 = vpow2.f32 %v2811_v4  ;;  %v2469_v41 = vmul.f32 1.442695, %v2449_v12  ;;  %v2450_v15 = vsub.f32 %v6152_v51, %v2424_v19 }
 0xa11   : > { %v2766_v59 = vpop.xlane.xlu0 %2765  ;;  %2497 = vadd.xlane.f32.xlu0 %v6243_v9 }
 0xa12   : > { %v6247_v13 = vpop.eup %4798  ;;  %4804 = vpow2.f32 %v2469_v41  ;;  %v2471_v44 = vmul.f32 1.442695, %v2450_v15  ;;  %v2795_v3 = vsub.f32 %v6154_v62, %v2766_v59 }
 0xa13   : > { %v2768_v54 = vpop.xlane.xlu1 %2767  ;;  %2499 = vadd.xlane.f32.xlu1 %v6247_v13 }
 0xa14   : > { %4806 = vpow2.f32 %v2471_v44  ;;  %v2813_v38 = vmul.f32 1.442695, %v2795_v3  ;;  %v2796_v45 = vsub.f32 %v6158_v18, %v2768_v54 }
 0xa15   : > { %v2426_v10 = vpop.xlane.xlu0 %2425 }
 0xa16   : > { %4808 = vpow2.f32 %v2813_v38  ;;  %v2815_v60 = vmul.f32 1.442695, %v2796_v45  ;;  %v2451_v51 = vsub.f32 %v6146_v24, %v2426_v10 }
 0xa17   : > { %v2428_v49 = vpop.xlane.xlu1 %2427 }
 0xa18   : > { %v6253_v22 = vpop.eup %4800  ;;  %4810 = vpow2.f32 %v2815_v60  ;;  %v2473_v33 = vmul.f32 1.442695, %v2451_v51  ;;  %v2452_v5 = vsub.f32 %v6150_v1, %v2428_v49 }
 0xa19   : > { %v2770_v62 = vpop.xlane.xlu0 %2769  ;;  %2841 = vadd.xlane.f32.xlu0 %v6253_v22 }
 0xa1a   : > { %v6257_v63 = vpop.eup %4802  ;;  %4812 = vpow2.f32 %v2473_v33  ;;  %v2475_v4 = vmul.f32 1.442695, %v2452_v5  ;;  %v2797_v18 = vsub.f32 %v6176_v17, %v2770_v62 }
 0xa1b   : > { %v2772_v12 = vpop.xlane.xlu1 %2771  ;;  %2843 = vadd.xlane.f32.xlu1 %v6257_v63 }
 0xa1c   : > { %v6261_v24 = vpop.eup %4804  ;;  %4814 = vpow2.f32 %v2475_v4  ;;  %v2817_v19 = vmul.f32 1.442695, %v2797_v18  ;;  %v2798_v41 = vsub.f32 %v6181_v58, %v2772_v12 }
 0xa1d   : > { %v2430_v15 = vpop.xlane.xlu0 %2429  ;;  %2501 = vadd.xlane.f32.xlu0 %v6261_v24 }
 0xa1e   : > { %v6265_v1 = vpop.eup %4806  ;;  %4816 = vpow2.f32 %v2817_v19  ;;  %v2819_v59 = vmul.f32 1.442695, %v2798_v41  ;;  %v2453_v44 = vsub.f32 %v6166_v28, %v2430_v15 }
 0xa1f   : > { %v2432_v3 = vpop.xlane.xlu1 %2431  ;;  %2503 = vadd.xlane.f32.xlu1 %v6265_v1 }
 0xa20   : > { %v6269_v17 = vpop.eup %4808  ;;  %4818 = vpow2.f32 %v2819_v59  ;;  %v2477_v54 = vmul.f32 1.442695, %v2453_v44  ;;  %v2454_v38 = vsub.f32 %v6171_v25, %v2432_v3 }
 0xa21   : > { %v2774_v45 = vpop.xlane.xlu0 %2773  ;;  %2845 = vadd.xlane.f32.xlu0 %v6269_v17 }
 0xa22   : > { %v6273_v58 = vpop.eup %4810  ;;  %4820 = vpow2.f32 %v2477_v54  ;;  %v2479_v10 = vmul.f32 1.442695, %v2454_v38  ;;  %v2799_v60 = vsub.f32 %v6174_v53, %v2774_v45 }
 0xa23   : > { %v2776_v51 = vpop.xlane.xlu1 %2775  ;;  %2847 = vadd.xlane.f32.xlu1 %v6273_v58 }
 0xa24   : > { %v6277_v28 = vpop.eup %4812  ;;  %4822 = vpow2.f32 %v2479_v10  ;;  %v2821_v49 = vmul.f32 1.442695, %v2799_v60  ;;  %v2800_v33 = vsub.f32 %v6179_v31, %v2776_v51 }
 0xa25   : > { %v2434_v5 = vpop.xlane.xlu0 %2433  ;;  %2505 = vadd.xlane.f32.xlu0 %v6277_v28 }
 0xa26   : > { %v6281_v25 = vpop.eup %4814  ;;  %4824 = vpow2.f32 %v2821_v49  ;;  %v2823_v62 = vmul.f32 1.442695, %v2800_v33  ;;  %v2455_v4 = vsub.f32 %v6164_v50, %v2434_v5 }
 0xa27   : > { %v2436_v18 = vpop.xlane.xlu1 %2435  ;;  %2507 = vadd.xlane.f32.xlu1 %v6281_v25 }
 0xa28   : > { %v6285_v53 = vpop.eup %4816  ;;  %4826 = vpow2.f32 %v2823_v62  ;;  %v2481_v12 = vmul.f32 1.442695, %v2455_v4  ;;  %v2456_v19 = vsub.f32 %v6169_v36, %v2436_v18 }
 0xa29   : > { %v2778_v41 = vpop.xlane.xlu0 %2777  ;;  %2849 = vadd.xlane.f32.xlu0 %v6285_v53 }
 0xa2a   : > { %v6289_v31 = vpop.eup %4818  ;;  %4828 = vpow2.f32 %v2481_v12  ;;  %v2483_v15 = vmul.f32 1.442695, %v2456_v19  ;;  %v2801_v59 = vsub.f32 %v6196_v55, %v2778_v41 }
 0xa2b   : > { %v2780_v44 = vpop.xlane.xlu1 %2779  ;;  %2851 = vadd.xlane.f32.xlu1 %v6289_v31 }
 0xa2c   : > { %v6293_v50 = vpop.eup %4820  ;;  %4830 = vpow2.f32 %v2483_v15  ;;  %v2825_v3 = vmul.f32 1.442695, %v2801_v59  ;;  %v2802_v54 = vsub.f32 %v6201_v11, %v2780_v44 }
 0xa2d   : > { %2509 = vadd.xlane.f32.xlu0 %v6293_v50  ;;  %v2438_v36 = vpop.xlane.xlu0 %2437 }
 0xa2e   : > { %v6297_v38 = vpop.eup %4822  ;;  %4832 = vpow2.f32 %v2825_v3  ;;  %v2827_v45 = vmul.f32 1.442695, %v2802_v54  ;;  %v2457_v10 = vsub.f32 %v6186_v30, %v2438_v36 }
 0xa2f   : > { %2511 = vadd.xlane.f32.xlu1 %v6297_v38  ;;  %v2440_v55 = vpop.xlane.xlu1 %2439 }
 0xa30   : > { %v6301_v60 = vpop.eup %4824  ;;  %4834 = vpow2.f32 %v2827_v45  ;;  %v2485_v51 = vmul.f32 1.442695, %v2457_v10  ;;  %v2458_v49 = vsub.f32 %v6191_v40, %v2440_v55 }
 0xa31   : > { %2853 = vadd.xlane.f32.xlu0 %v6301_v60  ;;  %v2782_v11 = vpop.xlane.xlu0 %2781 }
 0xa32   : > { %v6305_v33 = vpop.eup %4826  ;;  %4836 = vpow2.f32 %v2485_v51  ;;  %v2487_v5 = vmul.f32 1.442695, %v2458_v49  ;;  %v2803_v62 = vsub.f32 %v6194_v16, %v2782_v11 }
 0xa33   : > { %2855 = vadd.xlane.f32.xlu1 %v6305_v33  ;;  %v2784_v30 = vpop.xlane.xlu1 %2783 }
 0xa34   : > { %v6309_v4 = vpop.eup %4828  ;;  %4838 = vpow2.f32 %v2487_v5  ;;  %v2829_v18 = vmul.f32 1.442695, %v2803_v62  ;;  %v2804_v12 = vsub.f32 %v6199_v42, %v2784_v30 }
 0xa35   : > { %2513 = vadd.xlane.f32.xlu0 %v6309_v4  ;;  %v2442_v40 = vpop.xlane.xlu0 %2441 }
 0xa36   : > { %v6313_v19 = vpop.eup %4830  ;;  %4840 = vpow2.f32 %v2829_v18  ;;  %v2831_v41 = vmul.f32 1.442695, %v2804_v12  ;;  %v2459_v15 = vsub.f32 %v6184_v56, %v2442_v40 }
 0xa37   : > { %2515 = vadd.xlane.f32.xlu1 %v6313_v19  ;;  %v2444_v16 = vpop.xlane.xlu1 %2443 }
 0xa38   : > { %v6317_v59 = vpop.eup %4832  ;;  %4842 = vpow2.f32 %v2831_v41  ;;  %v2489_v44 = vmul.f32 1.442695, %v2459_v15  ;;  %v2460_v3 = vsub.f32 %v6189_v61, %v2444_v16 }
 0xa39   : > { %2857 = vadd.xlane.f32.xlu0 %v6317_v59  ;;  %v2786_v42 = vpop.xlane.xlu0 %2785 }
 0xa3a   : > { %v6321_v54 = vpop.eup %4834  ;;  %4844 = vpow2.f32 %v2489_v44  ;;  %v2491_v36 = vmul.f32 1.442695, %v2460_v3  ;;  %v2805_v45 = vsub.f32 %v6208_v20, %v2786_v42  ;;  %v6924_v44 = vld [vmem:[#allocation8_spill] sm:$0xff] }
 0xa3b   : > { %2859 = vadd.xlane.f32.xlu1 %v6321_v54  ;;  %v2788_v56 = vpop.xlane.xlu1 %2787  ;;  %v6925_v3 = vpack.c.bf16 %v5297_v47, %v6924_v44  ;;  %v6926_v42 = vld [vmem:[#allocation12_spill] sm:$0xff] }
 0xa3c   : > { %v6325_v10 = vpop.eup %4836  ;;  %4846 = vpow2.f32 %v2491_v36  ;;  %v2833_v55 = vmul.f32 1.442695, %v2805_v45  ;;  %v2806_v51 = vsub.f32 %v6213_v52, %v2788_v56  ;;  %v6927_v36 = vld [vmem:[#allocation11_spill] sm:$0xff]  ;;  %v6929_v56 = vld [vmem:[#allocation10_spill] sm:$0xff] }
 0xa3d   : > { %2517 = vadd.xlane.f32.xlu0 %v6325_v10  ;;  %v2790_v61 = vpop.xlane.xlu0 %2789  ;;  %v6928_v45 = vpack.c.bf16 %v6926_v42, %v6927_v36 }
 0xa3e   : > { %v6329_v49 = vpop.eup %4838  ;;  %4848 = vpow2.f32 %v2833_v55  ;;  %v2835_v11 = vmul.f32 1.442695, %v2806_v51  ;;  %v2807_v5 = vsub.f32 %v6206_v34, %v2790_v61  ;;  %v6930_v55 = vld [vmem:[#allocation9_spill] sm:$0xff]  ;;  %v6932_v61 = vld [vmem:[#allocation14_spill] sm:$0xff] }
 0xa3f   : > { %2519 = vadd.xlane.f32.xlu1 %v6329_v49  ;;  %v2792_v20 = vpop.xlane.xlu1 %2791  ;;  %v6931_v51 = vpack.c.bf16 %v6929_v56, %v6930_v55 }
 0xa40   : > { %v6333_v62 = vpop.eup %4840  ;;  %4850 = vpow2.f32 %v2835_v11  ;;  %v2837_v30 = vmul.f32 1.442695, %v2807_v5  ;;  %v2808_v18 = vsub.f32 %v6211_v37, %v2792_v20  ;;  %v6933_v11 = vld [vmem:[#allocation13_spill] sm:$0xff] }
 0xa41   : > { %2861 = vadd.xlane.f32.xlu0 %v6333_v62  ;;  %v6934_v5 = vpack.c.bf16 %v6932_v61, %v6933_v11 }
 0xa42   : > { %v6337_v52 = vpop.eup %4842  ;;  %4852 = vpow2.f32 %v2837_v30  ;;  %v2839_v12 = vmul.f32 1.442695, %v2808_v18 }
 0xa43   : > { %2863 = vadd.xlane.f32.xlu1 %v6337_v52 }
 0xa44   : > { %v6340_v40 = vpop.eup %4844  ;;  %4854 = vpow2.f32 %v2839_v12 }
 0xa45   : > { %2521 = vadd.xlane.f32.xlu0 %v6340_v40 }
 0xa46   : > { %v6343_v34 = vpop.eup %4846 }
 0xa47   : > { %2523 = vadd.xlane.f32.xlu1 %v6343_v34 }
 0xa48   : > { %v6346_v41 = vpop.eup %4848 }
 0xa49   : > { %2865 = vadd.xlane.f32.xlu0 %v6346_v41 }
 0xa4a   : > { %v6349_v37 = vpop.eup %4850 }
 0xa4b   : > { %2867 = vadd.xlane.f32.xlu1 %v6349_v37 }
 0xa4c   : > { %v6352_v15 = vpop.eup %4852 }
 0xa4d   : > { %2869 = vadd.xlane.f32.xlu0 %v6352_v15 }
 0xa4e   : > { %v6355_v16 = vpop.eup %4854 }
 0xa4f   : > { %2871 = vadd.xlane.f32.xlu1 %v6355_v16 }
 0xa7a   : > { %2972 = vxpose.xlu0.c.b16.start [1/2] (short) %v6925_v3, 128 }
 0xa7c   : > { %3320 = vxpose.xlu1.c.b16.start [1/2] (short) %v6928_v45, 128 }
 0xa7e   : > { %2973 = vxpose.xlu0.c.b16.end [2/2] (short) %v6931_v51, 128 }
 0xa80   : > { %3321 = vxpose.xlu1.c.b16.end [2/2] (short) %v6934_v5, 128 }
 0xa9a   : > { %v2494_v20 = vpop.xlane.xlu0 %2493 }
 0xa9b   : > { %4856 = vrcp.f32 %v2494_v20 }
 0xa9c   : > { %v2496_v30 = vpop.xlane.xlu1 %2495 }
 0xa9d   : > { %4858 = vrcp.f32 %v2496_v30 }
 0xa9e   : > { %v2498_v18 = vpop.xlane.xlu0 %2497 }
 0xa9f   : > { %4860 = vrcp.f32 %v2498_v18 }
 0xaa0   : > { %v2500_v47 = vpop.xlane.xlu1 %2499 }
 0xaa1   : > { %4862 = vrcp.f32 %v2500_v47 }
 0xaa5   : > { %v4857_v12 = vpop.eup %4856 }
 0xaa6   : > { %v2842_v44 = vpop.xlane.xlu0 %2841  ;;  %v2526_v36 = vmul.f32 %v4857_v12, %v6235_v27 }
 0xaa7   : > { %v4859_v3 = vpop.eup %4858  ;;  %4864 = vrcp.f32 %v2842_v44 }
 0xaa8   : > { %v2844_v42 = vpop.xlane.xlu1 %2843  ;;  %v2528_v45 = vmul.f32 %v4859_v3, %v6239_v32 }
 0xaa9   : > { %v4861_v56 = vpop.eup %4860  ;;  %4866 = vrcp.f32 %v2844_v42 }
 0xaaa   : > { %v2502_v55 = vpop.xlane.xlu0 %2501  ;;  %v2559_v51 = vpack.c.bf16 %v2528_v45, %v2526_v36  ;;  %v2530_v5 = vmul.f32 %v4861_v56, %v6243_v9 }
 0xaab   : > { %v4863_v61 = vpop.eup %4862  ;;  %4868 = vrcp.f32 %v2502_v55 }
 0xaac   : > { %4321 = vmatprep.subr.bf16.mxu0 %v2559_v51  ;;  %v2504_v11 = vpop.xlane.xlu1 %2503  ;;  %v2532_v20 = vmul.f32 %v4863_v61, %v6247_v13 }
 0xaad   : > { %4870 = vrcp.f32 %v2504_v11  ;;  %4322 = vmatpush3.bf16.xpose.msra.mxu0 %v2559_v51 }
 0xaae   : > { %v2846_v30 = vpop.xlane.xlu0 %2845  ;;  %v2560_v18 = vpack.c.bf16 %v2532_v20, %v2530_v5 }
 0xaaf   : > { %4872 = vrcp.f32 %v2846_v30 }
 0xab0   : > { %4323 = vmatprep.subr.bf16.mxu0 %v2560_v18  ;;  %v2848_v27 = vpop.xlane.xlu1 %2847 }
 0xab1   : > { %v4865_v32 = vpop.eup %4864  ;;  %4874 = vrcp.f32 %v2848_v27 }
 0xab2   : > { %v2506_v47 = vpop.xlane.xlu0 %2505  ;;  %v2874_v3 = vmul.f32 %v4865_v32, %v6253_v22 }
 0xab3   : > { %v4867_v12 = vpop.eup %4866  ;;  %4876 = vrcp.f32 %v2506_v47 }
 0xab4   : > { %v2508_v44 = vpop.xlane.xlu1 %2507  ;;  %v2876_v42 = vmul.f32 %v4867_v12, %v6257_v63 }
 0xab5   : > { %v4869_v9 = vpop.eup %4868  ;;  %4878 = vrcp.f32 %v2508_v44  ;;  %4324 = vmatpush3.bf16.xpose.msra.mxu0 %v2560_v18 }
 0xab6   : > { %v2850_v13 = vpop.xlane.xlu0 %2849  ;;  %v2907_v36 = vpack.c.bf16 %v2876_v42, %v2874_v3  ;;  %v2534_v55 = vmul.f32 %v4869_v9, %v6261_v24 }
 0xab7   : > { %v4871_v45 = vpop.eup %4870  ;;  %4880 = vrcp.f32 %v2850_v13 }
 0xab8   : > { %4361 = vmatprep.subr.bf16.mxu1 %v2907_v36  ;;  %v2852_v56 = vpop.xlane.xlu1 %2851  ;;  %v2536_v51 = vmul.f32 %v4871_v45, %v6265_v1 }
 0xab9   : > { %v4873_v61 = vpop.eup %4872  ;;  %4882 = vrcp.f32 %v2852_v56  ;;  %4362 = vmatpush3.bf16.xpose.msra.mxu1 %v2907_v36 }
 0xaba   : > { %v2510_v11 = vpop.xlane.xlu0 %2509  ;;  %v2561_v22 = vpack.c.bf16 %v2536_v51, %v2534_v55  ;;  %v2878_v20 = vmul.f32 %v4873_v61, %v6269_v17 }
 0xabb   : > { %v4875_v5 = vpop.eup %4874  ;;  %4884 = vrcp.f32 %v2510_v11 }
 0xabc   : > { %4325 = vmatprep.subr.bf16.mxu0 %v2561_v22  ;;  %v2512_v63 = vpop.xlane.xlu1 %2511  ;;  %v2880_v30 = vmul.f32 %v4875_v5, %v6273_v58 }
 0xabd   : > { %v4877_v18 = vpop.eup %4876  ;;  %4886 = vrcp.f32 %v2512_v63  ;;  %4326 = vmatpush3.bf16.xpose.msra.mxu0 %v2561_v22 }
 0xabe   : > { %v2854_v27 = vpop.xlane.xlu0 %2853  ;;  %v2908_v24 = vpack.c.bf16 %v2880_v30, %v2878_v20  ;;  %v2538_v47 = vmul.f32 %v4877_v18, %v6277_v28 }
 0xabf   : > { %v4879_v32 = vpop.eup %4878  ;;  %4888 = vrcp.f32 %v2854_v27 }
 0xac0   : > { %4363 = vmatprep.subr.bf16.mxu1 %v2908_v24  ;;  %v2856_v1 = vpop.xlane.xlu1 %2855  ;;  %v2540_v12 = vmul.f32 %v4879_v32, %v6281_v25 }
 0xac1   : > { %v4881_v44 = vpop.eup %4880  ;;  %4890 = vrcp.f32 %v2856_v1  ;;  %4364 = vmatpush3.bf16.xpose.msra.mxu1 %v2908_v24 }
 0xac2   : > { %v2514_v3 = vpop.xlane.xlu0 %2513  ;;  %v2562_v17 = vpack.c.bf16 %v2540_v12, %v2538_v47  ;;  %v2882_v9 = vmul.f32 %v4881_v44, %v6285_v53 }
 0xac3   : > { %v4883_v42 = vpop.eup %4882  ;;  %4892 = vrcp.f32 %v2514_v3 }
 0xac4   : > { %4327 = vmatprep.subr.bf16.mxu0 %v2562_v17  ;;  %v2516_v58 = vpop.xlane.xlu1 %2515  ;;  %v2884_v13 = vmul.f32 %v4883_v42, %v6289_v31 }
 0xac5   : > { %v4885_v36 = vpop.eup %4884  ;;  %4894 = vrcp.f32 %v2516_v58  ;;  %4328 = vmatpush3.bf16.xpose.msra.mxu0 %v2562_v17 }
 0xac6   : > { %v2858_v45 = vpop.xlane.xlu0 %2857  ;;  %v2909_v28 = vpack.c.bf16 %v2884_v13, %v2882_v9  ;;  %v2542_v55 = vmul.f32 %v4885_v36, %v6293_v50 }
 0xac7   : > { %v4887_v56 = vpop.eup %4886  ;;  %4896 = vrcp.f32 %v2858_v45 }
 0xac8   : > { %4365 = vmatprep.subr.bf16.mxu1 %v2909_v28  ;;  %v2860_v25 = vpop.xlane.xlu1 %2859  ;;  %v2544_v51 = vmul.f32 %v4887_v56, %v6297_v38 }
 0xac9   : > { %v4889_v61 = vpop.eup %4888  ;;  %4898 = vrcp.f32 %v2860_v25  ;;  %4366 = vmatpush3.bf16.xpose.msra.mxu1 %v2909_v28 }
 0xaca   : > { %v2518_v11 = vpop.xlane.xlu0 %2517  ;;  %v2563_v53 = vpack.c.bf16 %v2544_v51, %v2542_v55  ;;  %v2886_v5 = vmul.f32 %v4889_v61, %v6301_v60 }
 0xacb   : > { %v4891_v22 = vpop.eup %4890  ;;  %4900 = vrcp.f32 %v2518_v11 }
 0xacc   : > { %4329 = vmatprep.subr.bf16.mxu0 %v2563_v53  ;;  %v2520_v31 = vpop.xlane.xlu1 %2519  ;;  %v2888_v63 = vmul.f32 %v4891_v22, %v6305_v33 }
 0xacd   : > { %v4893_v20 = vpop.eup %4892  ;;  %4902 = vrcp.f32 %v2520_v31  ;;  %4330 = vmatpush3.bf16.xpose.msra.mxu0 %v2563_v53 }
 0xace   : > { %v2862_v30 = vpop.xlane.xlu0 %2861  ;;  %v2910_v50 = vpack.c.bf16 %v2888_v63, %v2886_v5  ;;  %v2546_v27 = vmul.f32 %v4893_v20, %v6309_v4  ;;  %v6935_v63 = vld [vmem:[#allocation15_spill] sm:$0xff] }
 0xacf   : > { %v4895_v18 = vpop.eup %4894  ;;  %4904 = vrcp.f32 %v2862_v30 }
 0xad0   : > { %4367 = vmatprep.subr.bf16.mxu1 %v2910_v50  ;;  %v2864_v38 = vpop.xlane.xlu1 %2863  ;;  %v2548_v24 = vmul.f32 %v4895_v18, %v6313_v19 }
 0xad1   : > { %v4897_v32 = vpop.eup %4896  ;;  %4906 = vrcp.f32 %v2864_v38  ;;  %4368 = vmatpush3.bf16.xpose.msra.mxu1 %v2910_v50 }
 0xad2   : > { %v2522_v1 = vpop.xlane.xlu0 %2521  ;;  %v2564_v60 = vpack.c.bf16 %v2548_v24, %v2546_v27  ;;  %v2890_v12 = vmul.f32 %v4897_v32, %v6317_v59  ;;  %v6936_v27 = vld [vmem:[#allocation20_spill] sm:$0xff]  ;;  %v6940_v32 = vld [vmem:[#allocation17_spill] sm:$0xff] }
 0xad3   : > { %v4899_v47 = vpop.eup %4898  ;;  %4908 = vrcp.f32 %v2522_v1 }
 0xad4   : > { %4331 = vmatprep.subr.bf16.mxu0 %v2564_v60  ;;  %v2524_v33 = vpop.xlane.xlu1 %2523  ;;  %v2892_v44 = vmul.f32 %v4899_v47, %v6321_v54  ;;  %v6941_v47 = vld [vmem:[#allocation26_spill] sm:$0xff] }
 0xad5   : > { %v4901_v3 = vpop.eup %4900  ;;  %4910 = vrcp.f32 %v2524_v33  ;;  %4332 = vmatpush3.bf16.xpose.msra.mxu0 %v2564_v60  ;;  %v6942_v33 = vld [vmem:[#allocation25_spill] sm:$0xff] }
 0xad6   : > { %v2866_v17 = vpop.xlane.xlu0 %2865  ;;  %v2911_v4 = vpack.c.bf16 %v2892_v44, %v2890_v12  ;;  %v2550_v58 = vmul.f32 %v4901_v3, %v6325_v10  ;;  %v6943_v12 = vpack.c.bf16 %v6941_v47, %v6942_v33  ;;  %v6944_v44 = vld [vmem:[#allocation18_spill] sm:$0xff] }
 0xad7   : > { %v4903_v42 = vpop.eup %4902  ;;  %4912 = vrcp.f32 %v2866_v17 }
 0xad8   : > { %4369 = vmatprep.subr.bf16.mxu1 %v2911_v4  ;;  %v2868_v19 = vpop.xlane.xlu1 %2867  ;;  %v2552_v9 = vmul.f32 %v4903_v42, %v6329_v49 }
 0xad9   : > { %v4905_v13 = vpop.eup %4904  ;;  %4914 = vrcp.f32 %v2868_v19  ;;  %4370 = vmatpush3.bf16.xpose.msra.mxu1 %v2911_v4 }
 0xada   : > { %v2870_v36 = vpop.xlane.xlu0 %2869  ;;  %v2565_v59 = vpack.c.bf16 %v2552_v9, %v2550_v58  ;;  %v2894_v28 = vmul.f32 %v4905_v13, %v6333_v62  ;;  %v6945_v9 = vld [vmem:[#allocation32_spill] sm:$0xff]  ;;  %v6946_v13 = vld [vmem:[#allocation31_spill] sm:$0xff] }
 0xadb   : > { %v4907_v45 = vpop.eup %4906  ;;  %4916 = vrcp.f32 %v2870_v36  ;;  %v6947_v36 = vpack.c.bf16 %v6945_v9, %v6946_v13 }
 0xadc   : > { %4333 = vmatprep.subr.bf16.mxu0 %v2565_v59  ;;  %v2872_v54 = vpop.xlane.xlu1 %2871  ;;  %v2896_v56 = vmul.f32 %v4907_v45, %v6337_v52 }
 0xadd   : > { %v4909_v25 = vpop.eup %4908  ;;  %4918 = vrcp.f32 %v2872_v54  ;;  %4334 = vmatpush3.bf16.xpose.msra.mxu0 %v2565_v59  ;;  %v6948_v54 = vpack.c.bf16 %v6014_v39, %v6012_v43 }
 0xade   : > { %v2912_v55 = vpack.c.bf16 %v2896_v56, %v2894_v28  ;;  %v2554_v49 = vmul.f32 %v4909_v25, %v6340_v40 }
 0xadf   : > { %v4911_v10 = vpop.eup %4910 }
 0xae0   : > { %4371 = vmatprep.subr.bf16.mxu1 %v2912_v55  ;;  %v2556_v51 = vmul.f32 %v4911_v10, %v6343_v34  ;;  %v2980_v61 = vpop.trf.xlu0 }
 0xae1   : > { %v4913_v11 = vpop.eup %4912  ;;  %4372 = vmatpush3.bf16.xpose.msra.mxu1 %v2912_v55 }
 0xae2   : > { %v2566_v53 = vpack.c.bf16 %v2556_v51, %v2554_v49  ;;  %v2898_v62 = vmul.f32 %v4913_v11, %v6346_v41  ;;  %v3328_v38 = vpop.trf.xlu1  ;;  %v6937_v41 = vld [vmem:[#allocation19_spill] sm:$0xff] }
 0xae3   : > { %v4915_v22 = vpop.eup %4914  ;;  %v6938_v24 = vpack.c.bf16 %v6936_v27, %v6937_v41 }
 0xae4   : > { %4335 = vmatprep.subr.bf16.mxu0 %v2566_v53  ;;  %v2900_v52 = vmul.f32 %v4915_v22, %v6349_v37  ;;  %v2981_v5 = vpop.trf.xlu0  ;;  %v6939_v37 = vld [vmem:[#allocation16_spill] sm:$0xff] }
 0xae5   : > { %v4917_v31 = vpop.eup %4916  ;;  %4336 = vmatpush3.bf16.xpose.msra.mxu0 %v2566_v53 }
 0xae6   : > { %4381 = vmatprep.subr.bf16.mxu0 %v6935_v63  ;;  %v2913_v20 = vpack.c.bf16 %v2900_v52, %v2898_v62  ;;  %v2902_v40 = vmul.f32 %v4917_v31, %v6352_v15 }
 0xae7   : > { %v4919_v30 = vpop.eup %4918 }
 0xae8   : > { %4373 = vmatprep.subr.bf16.mxu1 %v2913_v20  ;;  %v2904_v34 = vmul.f32 %v4919_v30, %v6355_v16  ;;  %v2982_v18 = vpop.trf.xlu0  ;;  %v3329_v16 = vpop.trf.xlu1 }
 0xae9   : > { %4374 = vmatpush3.bf16.xpose.msra.mxu1 %v2913_v20 }
 0xaea   : > { %v2914_v50 = vpack.c.bf16 %v2904_v34, %v2902_v40 }
 0xaec   : > { %4338 = vmatmul.mubr.bf16.vlgmr.msra.gmra.mrb[116].mxu0 %v6938_v24  ;;  %4375 = vmatprep.subr.bf16.mxu1 %v2914_v50  ;;  %v2983_v15 = vpop.trf.xlu0  ;;  %v3330_v60 = vpop.trf.xlu1 }
 0xaed   : > { %4382 = vmatpush3.bf16.msra.mxu0 %v6935_v63  ;;  %4385 = vmatprep.mubr.msk.bf16.mxu0 %vm438_vm0, %v2980_v61 }
 0xaee   : > { %4383 = vmatprep.subr.bf16.mxu0 %v6939_v37 }
 0xaf0   : > { %v2984_v1 = vpop.trf.xlu0  ;;  %v3331_v17 = vpop.trf.xlu1 }
 0xaf1   : > { %4376 = vmatpush3.bf16.xpose.msra.mxu1 %v2914_v50  ;;  %4384 = vmatpush3.bf16.msra.mxu0 %v6939_v37 }
 0xaf2   : > { %4421 = vmatprep.subr.bf16.mxu1 %v6940_v32 }
 0xaf4   : > { %4386 = vmatmul.mubr.msk.bf16.vlgmr.msra.gmra.mrb[120].mxu0 %vm438_vm0, %v2981_v5  ;;  %v2985_v3 = vpop.trf.xlu0  ;;  %v3332_v42 = vpop.trf.xlu1 }
 0xaf5   : > { %4389 = vmatprep.mubr.msk.bf16.mxu0 %vm438_vm0, %v2982_v18 }
 0xaf8   : > { %4378 = vmatmul.mubr.bf16.vlgmr.msra.gmra.mrb[92].mxu1 %v6943_v12  ;;  %v2986_v4 = vpop.trf.xlu0  ;;  %v3333_v58 = vpop.trf.xlu1 }
 0xaf9   : > { %4422 = vmatpush3.bf16.msra.mxu1 %v6940_v32  ;;  %4425 = vmatprep.mubr.msk.bf16.mxu1 %vm438_vm0, %v3328_v38 }
 0xafa   : > { %4423 = vmatprep.subr.bf16.mxu1 %v6944_v44 }
 0xafc   : > { %4390 = vmatmul.mubr.msk.bf16.gmra.mrb[124].mxu0 %vm438_vm0, %v2983_v15  ;;  %v2987_v19 = vpop.trf.xlu0  ;;  %v3334_v59 = vpop.trf.xlu1 }
 0xafd   : > { %4424 = vmatpush3.bf16.msra.mxu1 %v6944_v44  ;;  %4393 = vmatprep.mubr.msk.bf16.mxu0 %vm438_vm0, %v2984_v1 }
 0xb00   : > { %4426 = vmatmul.mubr.msk.bf16.vlgmr.msra.gmra.mrb[96].mxu1 %vm438_vm0, %v3329_v16  ;;  %v3335_v45 = vpop.trf.xlu1 }
 0xb01   : > { %4429 = vmatprep.mubr.msk.bf16.mxu1 %vm438_vm0, %v3330_v60 }
 0xb04   : > { %4394 = vmatmul.mubr.msk.bf16.gmra.mrb[128].mxu0 %vm438_vm0, %v2985_v3 }
 0xb05   : > { %4397 = vmatprep.mubr.msk.bf16.mxu0 %vm438_vm0, %v2986_v4 }
 0xb08   : > { %4430 = vmatmul.mubr.msk.bf16.gmra.mrb[100].mxu1 %vm438_vm0, %v3331_v17 }
 0xb09   : > { %4433 = vmatprep.mubr.msk.bf16.mxu1 %vm438_vm0, %v3332_v42 }
 0xb0c   : > { %4398 = vmatmul.mubr.msk.bf16.gmra.mrb[132].mxu0 %vm438_vm0, %v2987_v19 }
 0xb0d   : > { %4417 = vmatprep.mubr.bf16.mxu0 %v6947_v36 }
 0xb10   : > { %4434 = vmatmul.mubr.msk.bf16.gmra.mrb[104].mxu1 %vm438_vm0, %v3333_v58 }
 0xb11   : > { %4437 = vmatprep.mubr.msk.bf16.mxu1 %vm438_vm0, %v3334_v59 }
 0xb18   : > { %4438 = vmatmul.mubr.msk.bf16.gmra.mrb[108].mxu1 %vm438_vm0, %v3335_v45 }
 0xb19   : > { %4457 = vmatprep.mubr.bf16.mxu1 %v6948_v54 }
 0xbbf   : > { %v6438_v28 = vpop.f32.mrb[116].mxu0 }
 0xbc0   : > { %v6440_v56 = vpop.f32.mrb[117].mxu0 }
 0xbc1   : > { %v6442_v25 = vpop.f32.mrb[118].mxu0 }
 0xbc2   : > { %v6446_v10 = vpop.f32.mrb[119].mxu0 }
 0xbc7   : > { %v6450_v51 = vpop.f32.mrb[120].mxu0 }
 0xbc8   : > { %v6452_v61 = vpop.f32.mrb[121].mxu0 }
 0xbc9   : > { %3109 = vmax.xlane.f32.xlu0 %v6452_v61  ;;  %v6455_v43 = vpop.f32.mrb[122].mxu0 }
 0xbca   : > { %v6457_v39 = vpop.f32.mrb[123].mxu0 }
 0xbcb   : > { %3111 = vmax.xlane.f32.xlu1 %v6457_v39  ;;  %v6460_v11 = vpop.f32.mrb[92].mxu1 }
 0xbcc   : > { %v6462_v53 = vpop.f32.mrb[93].mxu1 }
 0xbcd   : > { %3113 = vmax.xlane.f32.xlu0 %v6450_v51  ;;  %v6465_v22 = vpop.f32.mrb[94].mxu1 }
 0xbce   : > { %v6469_v52 = vpop.f32.mrb[95].mxu1 }
 0xbcf   : > { %3115 = vmax.xlane.f32.xlu1 %v6455_v43  ;;  %v6474_v5 = vpop.f32.mrb[124].mxu0 }
 0xbd0   : > { %v6476_v63 = vpop.f32.mrb[125].mxu0 }
 0xbd1   : > { %v6478_v20 = vpop.f32.mrb[126].mxu0 }
 0xbd2   : > { %v6480_v30 = vpop.f32.mrb[127].mxu0 }
 0xbd3   : > { %v6482_v40 = vpop.f32.mrb[96].mxu1 }
 0xbd4   : > { %v6484_v34 = vpop.f32.mrb[97].mxu1 }
 0xbd5   : > { %3457 = vmax.xlane.f32.xlu0 %v6484_v34  ;;  %v6487_v50 = vpop.f32.mrb[98].mxu1 }
 0xbd6   : > { %v6489_v18 = vpop.f32.mrb[99].mxu1 }
 0xbd7   : > { %3459 = vmax.xlane.f32.xlu1 %v6489_v18  ;;  %v6492_v38 = vpop.f32.mrb[128].mxu0 }
 0xbd8   : > { %v6494_v27 = vpop.f32.mrb[129].mxu0 }
 0xbd9   : > { %3117 = vmax.xlane.f32.xlu0 %v6476_v63  ;;  %v6497_v41 = vpop.f32.mrb[130].mxu0 }
 0xbda   : > { %v6499_v24 = vpop.f32.mrb[131].mxu0 }
 0xbdb   : > { %3119 = vmax.xlane.f32.xlu1 %v6480_v30  ;;  %v6502_v37 = vpop.f32.mrb[100].mxu1 }
 0xbdc   : > { %v6504_v15 = vpop.f32.mrb[101].mxu1 }
 0xbdd   : > { %3461 = vmax.xlane.f32.xlu0 %v6482_v40  ;;  %v6507_v16 = vpop.f32.mrb[102].mxu1 }
 0xbde   : > { %v6509_v32 = vpop.f32.mrb[103].mxu1 }
 0xbdf   : > { %3463 = vmax.xlane.f32.xlu1 %v6487_v50  ;;  %v6512_v1 = vpop.f32.mrb[132].mxu0 }
 0xbe0   : > { %v6514_v60 = vpop.f32.mrb[133].mxu0 }
 0xbe1   : > { %3121 = vmax.xlane.f32.xlu0 %v6474_v5  ;;  %v6517_v47 = vpop.f32.mrb[134].mxu0 }
 0xbe2   : > { %v6519_v33 = vpop.f32.mrb[135].mxu0 }
 0xbe3   : > { %3123 = vmax.xlane.f32.xlu1 %v6478_v20  ;;  %v6522_v12 = vpop.f32.mrb[104].mxu1 }
 0xbe4   : > { %v6524_v44 = vpop.f32.mrb[105].mxu1 }
 0xbe5   : > { %3465 = vmax.xlane.f32.xlu0 %v6504_v15  ;;  %v6527_v3 = vpop.f32.mrb[106].mxu1 }
 0xbe6   : > { %v6529_v17 = vpop.f32.mrb[107].mxu1 }
 0xbe7   : > { %3467 = vmax.xlane.f32.xlu1 %v6509_v32 }
 0xbe9   : > { %3125 = vmax.xlane.f32.xlu0 %v6494_v27 }
 0xbeb   : > { %3127 = vmax.xlane.f32.xlu1 %v6499_v24  ;;  %v6534_v4 = vpop.f32.mrb[108].mxu1 }
 0xbec   : > { %v6536_v42 = vpop.f32.mrb[109].mxu1 }
 0xbed   : > { %3469 = vmax.xlane.f32.xlu0 %v6502_v37  ;;  %v6539_v19 = vpop.f32.mrb[110].mxu1 }
 0xbee   : > { %v6541_v58 = vpop.f32.mrb[111].mxu1 }
 0xbef   : > { %3471 = vmax.xlane.f32.xlu1 %v6507_v16 }
 0xbf1   : > { %3129 = vmax.xlane.f32.xlu0 %v6492_v38 }
 0xbf3   : > { %3131 = vmax.xlane.f32.xlu1 %v6497_v41 }
 0xbf5   : > { %3473 = vmax.xlane.f32.xlu0 %v6524_v44 }
 0xbf7   : > { %3475 = vmax.xlane.f32.xlu1 %v6529_v17 }
 0xbf9   : > { %3133 = vmax.xlane.f32.xlu0 %v6514_v60 }
 0xbfb   : > { %3135 = vmax.xlane.f32.xlu1 %v6519_v33 }
 0xbfd   : > { %3477 = vmax.xlane.f32.xlu0 %v6522_v12 }
 0xbff   : > { %3479 = vmax.xlane.f32.xlu1 %v6527_v3 }
 0xc01   : > { %3137 = vmax.xlane.f32.xlu0 %v6512_v1 }
 0xc03   : > { %3139 = vmax.xlane.f32.xlu1 %v6517_v47 }
 0xc05   : > { %3481 = vmax.xlane.f32.xlu0 %v6536_v42 }
 0xc07   : > { %3483 = vmax.xlane.f32.xlu1 %v6541_v58 }
 0xc09   : > { %3485 = vmax.xlane.f32.xlu0 %v6534_v4 }
 0xc0b   : > { %3487 = vmax.xlane.f32.xlu1 %v6539_v19 }
 0xc56   : > { %v3110_v9 = vpop.xlane.xlu0 %3109 }
 0xc57   : > { %v3141_v13 = vsub.f32 %v6452_v61, %v3110_v9 }
 0xc58   : > { %v3112_v36 = vpop.xlane.xlu1 %3111 }
 0xc59   : > { %v3157_v59 = vmul.f32 1.442695, %v3141_v13  ;;  %v3142_v45 = vsub.f32 %v6457_v39, %v3112_v36 }
 0xc5a   : > { %v3114_v54 = vpop.xlane.xlu0 %3113 }
 0xc5b   : > { %4920 = vpow2.f32 %v3157_v59  ;;  %v3159_v2 = vmul.f32 1.442695, %v3142_v45  ;;  %v3143_v29 = vsub.f32 %v6450_v51, %v3114_v54 }
 0xc5c   : > { %v3116_v0 = vpop.xlane.xlu1 %3115 }
 0xc5d   : > { %4922 = vpow2.f32 %v3159_v2  ;;  %v3161_v21 = vmul.f32 1.442695, %v3143_v29  ;;  %v3144_v62 = vsub.f32 %v6455_v43, %v3116_v0 }
 0xc5f   : > { %4924 = vpow2.f32 %v3161_v21  ;;  %v3163_v31 = vmul.f32 1.442695, %v3144_v62 }
 0xc61   : > { %4926 = vpow2.f32 %v3163_v31 }
 0xc62   : > { %v3458_v55 = vpop.xlane.xlu0 %3457 }
 0xc63   : > { %v3489_v61 = vsub.f32 %v6484_v34, %v3458_v55 }
 0xc64   : > { %v3460_v9 = vpop.xlane.xlu1 %3459 }
 0xc65   : > { %v6563_v13 = vpop.eup %4920  ;;  %v3505_v39 = vmul.f32 1.442695, %v3489_v61  ;;  %v3490_v36 = vsub.f32 %v6489_v18, %v3460_v9 }
 0xc66   : > { %v3118_v59 = vpop.xlane.xlu0 %3117  ;;  %3189 = vadd.xlane.f32.xlu0 %v6563_v13 }
 0xc67   : > { %v6567_v51 = vpop.eup %4922  ;;  %4928 = vpow2.f32 %v3505_v39  ;;  %v3507_v2 = vmul.f32 1.442695, %v3490_v36  ;;  %v3145_v0 = vsub.f32 %v6476_v63, %v3118_v59 }
 0xc68   : > { %3191 = vadd.xlane.f32.xlu1 %v6567_v51  ;;  %v3120_v21 = vpop.xlane.xlu1 %3119 }
 0xc69   : > { %v6571_v29 = vpop.eup %4924  ;;  %4930 = vpow2.f32 %v3507_v2  ;;  %v3165_v55 = vmul.f32 1.442695, %v3145_v0  ;;  %v3146_v43 = vsub.f32 %v6480_v30, %v3120_v21 }
 0xc6a   : > { %v3462_v62 = vpop.xlane.xlu0 %3461  ;;  %3193 = vadd.xlane.f32.xlu0 %v6571_v29 }
 0xc6b   : > { %v6575_v31 = vpop.eup %4926  ;;  %4932 = vpow2.f32 %v3165_v55  ;;  %v3167_v34 = vmul.f32 1.442695, %v3146_v43  ;;  %v3491_v18 = vsub.f32 %v6482_v40, %v3462_v62 }
 0xc6c   : > { %3195 = vadd.xlane.f32.xlu1 %v6575_v31  ;;  %v3464_v63 = vpop.xlane.xlu1 %3463 }
 0xc6d   : > { %4934 = vpow2.f32 %v3167_v34  ;;  %v3509_v45 = vmul.f32 1.442695, %v3491_v18  ;;  %v3492_v54 = vsub.f32 %v6487_v50, %v3464_v63 }
 0xc6e   : > { %v3122_v61 = vpop.xlane.xlu0 %3121 }
 0xc6f   : > { %4936 = vpow2.f32 %v3509_v45  ;;  %v3511_v9 = vmul.f32 1.442695, %v3492_v54  ;;  %v3147_v30 = vsub.f32 %v6474_v5, %v3122_v61 }
 0xc70   : > { %v3124_v39 = vpop.xlane.xlu1 %3123 }
 0xc71   : > { %v6581_v36 = vpop.eup %4928  ;;  %4938 = vpow2.f32 %v3511_v9  ;;  %v3169_v59 = vmul.f32 1.442695, %v3147_v30  ;;  %v3148_v2 = vsub.f32 %v6478_v20, %v3124_v39 }
 0xc72   : > { %v3466_v40 = vpop.xlane.xlu0 %3465  ;;  %3537 = vadd.xlane.f32.xlu0 %v6581_v36 }
 0xc73   : > { %v6585_v0 = vpop.eup %4930  ;;  %4940 = vpow2.f32 %v3169_v59  ;;  %v3171_v21 = vmul.f32 1.442695, %v3148_v2  ;;  %v3493_v50 = vsub.f32 %v6504_v15, %v3466_v40 }
 0xc74   : > { %3539 = vadd.xlane.f32.xlu1 %v6585_v0  ;;  %v3468_v55 = vpop.xlane.xlu1 %3467 }
 0xc75   : > { %v6589_v5 = vpop.eup %4932  ;;  %4942 = vpow2.f32 %v3171_v21  ;;  %v3513_v43 = vmul.f32 1.442695, %v3493_v50  ;;  %v3494_v62 = vsub.f32 %v6509_v32, %v3468_v55 }
 0xc76   : > { %v3126_v34 = vpop.xlane.xlu0 %3125  ;;  %3197 = vadd.xlane.f32.xlu0 %v6589_v5 }
 0xc77   : > { %v6593_v20 = vpop.eup %4934  ;;  %4944 = vpow2.f32 %v3513_v43  ;;  %v3515_v18 = vmul.f32 1.442695, %v3494_v62  ;;  %v3149_v63 = vsub.f32 %v6494_v27, %v3126_v34 }
 0xc78   : > { %3199 = vadd.xlane.f32.xlu1 %v6593_v20  ;;  %v3128_v15 = vpop.xlane.xlu1 %3127 }
 0xc79   : > { %v6597_v45 = vpop.eup %4936  ;;  %4946 = vpow2.f32 %v3515_v18  ;;  %v3173_v54 = vmul.f32 1.442695, %v3149_v63  ;;  %v3150_v61 = vsub.f32 %v6499_v24, %v3128_v15 }
 0xc7a   : > { %v3470_v9 = vpop.xlane.xlu0 %3469  ;;  %3541 = vadd.xlane.f32.xlu0 %v6597_v45 }
 0xc7b   : > { %v6601_v32 = vpop.eup %4938  ;;  %4948 = vpow2.f32 %v3173_v54  ;;  %v3175_v30 = vmul.f32 1.442695, %v3150_v61  ;;  %v3495_v39 = vsub.f32 %v6502_v37, %v3470_v9 }
 0xc7c   : > { %3543 = vadd.xlane.f32.xlu1 %v6601_v32  ;;  %v3472_v27 = vpop.xlane.xlu1 %3471 }
 0xc7d   : > { %v6605_v59 = vpop.eup %4940  ;;  %4950 = vpow2.f32 %v3175_v30  ;;  %v3517_v2 = vmul.f32 1.442695, %v3495_v39  ;;  %v3496_v40 = vsub.f32 %v6507_v16, %v3472_v27 }
 0xc7e   : > { %v3130_v21 = vpop.xlane.xlu0 %3129  ;;  %3201 = vadd.xlane.f32.xlu0 %v6605_v59 }
 0xc7f   : > { %v6609_v24 = vpop.eup %4942  ;;  %4952 = vpow2.f32 %v3517_v2  ;;  %v3519_v50 = vmul.f32 1.442695, %v3496_v40  ;;  %v3151_v55 = vsub.f32 %v6492_v38, %v3130_v21 }
 0xc80   : > { %3203 = vadd.xlane.f32.xlu1 %v6609_v24  ;;  %v3132_v37 = vpop.xlane.xlu1 %3131 }
 0xc81   : > { %v6613_v43 = vpop.eup %4944  ;;  %4954 = vpow2.f32 %v3519_v50  ;;  %v3177_v62 = vmul.f32 1.442695, %v3151_v55  ;;  %v3152_v34 = vsub.f32 %v6497_v41, %v3132_v37 }
 0xc82   : > { %v3474_v18 = vpop.xlane.xlu0 %3473  ;;  %3545 = vadd.xlane.f32.xlu0 %v6613_v43 }
 0xc83   : > { %v6617_v16 = vpop.eup %4946  ;;  %4956 = vpow2.f32 %v3177_v62  ;;  %v3179_v63 = vmul.f32 1.442695, %v3152_v34  ;;  %v3497_v15 = vsub.f32 %v6524_v44, %v3474_v18 }
 0xc84   : > { %3547 = vadd.xlane.f32.xlu1 %v6617_v16  ;;  %v3476_v38 = vpop.xlane.xlu1 %3475 }
 0xc85   : > { %v6621_v54 = vpop.eup %4948  ;;  %4958 = vpow2.f32 %v3179_v63  ;;  %v3521_v61 = vmul.f32 1.442695, %v3497_v15  ;;  %v3498_v9 = vsub.f32 %v6529_v17, %v3476_v38 }
 0xc86   : > { %v3134_v30 = vpop.xlane.xlu0 %3133  ;;  %3205 = vadd.xlane.f32.xlu0 %v6621_v54 }
 0xc87   : > { %v6625_v41 = vpop.eup %4950  ;;  %4960 = vpow2.f32 %v3521_v61  ;;  %v3523_v39 = vmul.f32 1.442695, %v3498_v9  ;;  %v3153_v27 = vsub.f32 %v6514_v60, %v3134_v30 }
 0xc88   : > { %3207 = vadd.xlane.f32.xlu1 %v6625_v41  ;;  %v3136_v44 = vpop.xlane.xlu1 %3135 }
 0xc89   : > { %v6629_v2 = vpop.eup %4952  ;;  %4962 = vpow2.f32 %v3523_v39  ;;  %v3181_v40 = vmul.f32 1.442695, %v3153_v27  ;;  %v3154_v21 = vsub.f32 %v6519_v33, %v3136_v44 }
 0xc8a   : > { %v3478_v50 = vpop.xlane.xlu0 %3477  ;;  %3549 = vadd.xlane.f32.xlu0 %v6629_v2 }
 0xc8b   : > { %v6633_v17 = vpop.eup %4954  ;;  %4964 = vpow2.f32 %v3181_v40  ;;  %v3183_v55 = vmul.f32 1.442695, %v3154_v21  ;;  %v3499_v37 = vsub.f32 %v6522_v12, %v3478_v50 }
 0xc8c   : > { %3551 = vadd.xlane.f32.xlu1 %v6633_v17  ;;  %v3480_v60 = vpop.xlane.xlu1 %3479 }
 0xc8d   : > { %v6637_v62 = vpop.eup %4956  ;;  %4966 = vpow2.f32 %v3183_v55  ;;  %v3525_v34 = vmul.f32 1.442695, %v3499_v37  ;;  %v3500_v18 = vsub.f32 %v6527_v3, %v3480_v60 }
 0xc8e   : > { %v3138_v63 = vpop.xlane.xlu0 %3137  ;;  %3209 = vadd.xlane.f32.xlu0 %v6637_v62 }
 0xc8f   : > { %v6641_v33 = vpop.eup %4958  ;;  %4968 = vpow2.f32 %v3525_v34  ;;  %v3527_v15 = vmul.f32 1.442695, %v3500_v18  ;;  %v3155_v38 = vsub.f32 %v6512_v1, %v3138_v63 }
 0xc90   : > { %3211 = vadd.xlane.f32.xlu1 %v6641_v33  ;;  %v3140_v12 = vpop.xlane.xlu1 %3139 }
 0xc91   : > { %v6645_v61 = vpop.eup %4960  ;;  %4970 = vpow2.f32 %v3527_v15  ;;  %v3185_v9 = vmul.f32 1.442695, %v3155_v38  ;;  %v3156_v30 = vsub.f32 %v6517_v47, %v3140_v12 }
 0xc92   : > { %3553 = vadd.xlane.f32.xlu0 %v6645_v61  ;;  %v3482_v3 = vpop.xlane.xlu0 %3481 }
 0xc93   : > { %v6649_v39 = vpop.eup %4962  ;;  %4972 = vpow2.f32 %v3185_v9  ;;  %v3187_v27 = vmul.f32 1.442695, %v3156_v30  ;;  %v3501_v44 = vsub.f32 %v6536_v42, %v3482_v3 }
 0xc94   : > { %3555 = vadd.xlane.f32.xlu1 %v6649_v39  ;;  %v3484_v1 = vpop.xlane.xlu1 %3483 }
 0xc95   : > { %v6653_v40 = vpop.eup %4964  ;;  %4974 = vpow2.f32 %v3187_v27  ;;  %v3529_v21 = vmul.f32 1.442695, %v3501_v44  ;;  %v3502_v50 = vsub.f32 %v6541_v58, %v3484_v1 }
 0xc96   : > { %3213 = vadd.xlane.f32.xlu0 %v6653_v40  ;;  %v3486_v47 = vpop.xlane.xlu0 %3485 }
 0xc97   : > { %v6657_v55 = vpop.eup %4966  ;;  %4976 = vpow2.f32 %v3529_v21  ;;  %v3531_v37 = vmul.f32 1.442695, %v3502_v50  ;;  %v3503_v60 = vsub.f32 %v6534_v4, %v3486_v47 }
 0xc98   : > { %3215 = vadd.xlane.f32.xlu1 %v6657_v55  ;;  %v3488_v42 = vpop.xlane.xlu1 %3487 }
 0xc99   : > { %v6661_v34 = vpop.eup %4968  ;;  %4978 = vpow2.f32 %v3531_v37  ;;  %v3533_v18 = vmul.f32 1.442695, %v3503_v60  ;;  %v3504_v63 = vsub.f32 %v6539_v19, %v3488_v42 }
 0xc9a   : > { %3557 = vadd.xlane.f32.xlu0 %v6661_v34 }
 0xc9b   : > { %v6665_v58 = vpop.eup %4970  ;;  %4980 = vpow2.f32 %v3533_v18  ;;  %v3535_v15 = vmul.f32 1.442695, %v3504_v63 }
 0xc9c   : > { %3559 = vadd.xlane.f32.xlu1 %v6665_v58 }
 0xc9d   : > { %v6668_v38 = vpop.eup %4972  ;;  %4982 = vpow2.f32 %v3535_v15 }
 0xc9e   : > { %3217 = vadd.xlane.f32.xlu0 %v6668_v38 }
 0xc9f   : > { %v6671_v4 = vpop.eup %4974 }
 0xca0   : > { %3219 = vadd.xlane.f32.xlu1 %v6671_v4 }
 0xca1   : > { %v6674_v12 = vpop.eup %4976 }
 0xca2   : > { %3561 = vadd.xlane.f32.xlu0 %v6674_v12 }
 0xca3   : > { %v6677_v19 = vpop.eup %4978 }
 0xca4   : > { %3563 = vadd.xlane.f32.xlu1 %v6677_v19 }
 0xca5   : > { %v6680_v9 = vpop.eup %4980 }
 0xca6   : > { %3565 = vadd.xlane.f32.xlu0 %v6680_v9 }
 0xca7   : > { %v6683_v30 = vpop.eup %4982 }
 0xca8   : > { %3567 = vadd.xlane.f32.xlu1 %v6683_v30 }
 0xcf3   : > { %v3190_v3 = vpop.xlane.xlu0 %3189 }
 0xcf4   : > { %4984 = vrcp.f32 %v3190_v3 }
 0xcf5   : > { %v3192_v27 = vpop.xlane.xlu1 %3191 }
 0xcf6   : > { %4986 = vrcp.f32 %v3192_v27 }
 0xcf7   : > { %v3194_v44 = vpop.xlane.xlu0 %3193 }
 0xcf8   : > { %4988 = vrcp.f32 %v3194_v44 }
 0xcf9   : > { %v3196_v1 = vpop.xlane.xlu1 %3195 }
 0xcfa   : > { %4990 = vrcp.f32 %v3196_v1 }
 0xcfe   : > { %v4985_v21 = vpop.eup %4984 }
 0xcff   : > { %v3538_v50 = vpop.xlane.xlu0 %3537  ;;  %v3222_v60 = vmul.f32 %v4985_v21, %v6563_v13 }
 0xd00   : > { %v4987_v47 = vpop.eup %4986  ;;  %4992 = vrcp.f32 %v3538_v50 }
 0xd01   : > { %v3540_v37 = vpop.xlane.xlu1 %3539  ;;  %v3224_v42 = vmul.f32 %v4987_v47, %v6567_v51 }
 0xd02   : > { %v4989_v18 = vpop.eup %4988  ;;  %4994 = vrcp.f32 %v3540_v37 }
 0xd03   : > { %v3198_v63 = vpop.xlane.xlu0 %3197  ;;  %v3255_v15 = vpack.c.bf16 %v3224_v42, %v3222_v60  ;;  %v3226_v44 = vmul.f32 %v4989_v18, %v6571_v29 }
 0xd04   : > { %v4991_v3 = vpop.eup %4990  ;;  %4996 = vrcp.f32 %v3198_v63 }
 0xd05   : > { %4401 = vmatprep.subr.bf16.mxu0 %v3255_v15  ;;  %v3200_v27 = vpop.xlane.xlu1 %3199  ;;  %v3228_v1 = vmul.f32 %v4991_v3, %v6575_v31 }
 0xd06   : > { %4998 = vrcp.f32 %v3200_v27  ;;  %4402 = vmatpush3.bf16.xpose.msra.mxu0 %v3255_v15 }
 0xd07   : > { %v3542_v50 = vpop.xlane.xlu0 %3541  ;;  %v3256_v49 = vpack.c.bf16 %v3228_v1, %v3226_v44 }
 0xd08   : > { %5000 = vrcp.f32 %v3542_v50 }
 0xd09   : > { %4403 = vmatprep.subr.bf16.mxu0 %v3256_v49  ;;  %v3544_v13 = vpop.xlane.xlu1 %3543 }
 0xd0a   : > { %v4993_v51 = vpop.eup %4992  ;;  %5002 = vrcp.f32 %v3544_v13 }
 0xd0b   : > { %v3202_v21 = vpop.xlane.xlu0 %3201  ;;  %v3570_v60 = vmul.f32 %v4993_v51, %v6581_v36 }
 0xd0c   : > { %v4995_v47 = vpop.eup %4994  ;;  %5004 = vrcp.f32 %v3202_v21 }
 0xd0d   : > { %v3204_v37 = vpop.xlane.xlu1 %3203  ;;  %v3572_v42 = vmul.f32 %v4995_v47, %v6585_v0 }
 0xd0e   : > { %v4997_v29 = vpop.eup %4996  ;;  %5006 = vrcp.f32 %v3204_v37  ;;  %4404 = vmatpush3.bf16.xpose.msra.mxu0 %v3256_v49 }
 0xd0f   : > { %v3546_v31 = vpop.xlane.xlu0 %3545  ;;  %v3603_v18 = vpack.c.bf16 %v3572_v42, %v3570_v60  ;;  %v3230_v3 = vmul.f32 %v4997_v29, %v6589_v5 }
 0xd10   : > { %v4999_v63 = vpop.eup %4998  ;;  %5008 = vrcp.f32 %v3546_v31 }
 0xd11   : > { %4441 = vmatprep.subr.bf16.mxu1 %v3603_v18  ;;  %v3548_v15 = vpop.xlane.xlu1 %3547  ;;  %v3232_v27 = vmul.f32 %v4999_v63, %v6593_v20 }
 0xd12   : > { %v5001_v44 = vpop.eup %5000  ;;  %5010 = vrcp.f32 %v3548_v15  ;;  %4442 = vmatpush3.bf16.xpose.msra.mxu1 %v3603_v18 }
 0xd13   : > { %v3206_v1 = vpop.xlane.xlu0 %3205  ;;  %v3257_v36 = vpack.c.bf16 %v3232_v27, %v3230_v3  ;;  %v3574_v49 = vmul.f32 %v5001_v44, %v6597_v45 }
 0xd14   : > { %v5003_v50 = vpop.eup %5002  ;;  %5012 = vrcp.f32 %v3206_v1 }
 0xd15   : > { %4405 = vmatprep.subr.bf16.mxu0 %v3257_v36  ;;  %v3208_v0 = vpop.xlane.xlu1 %3207  ;;  %v3576_v13 = vmul.f32 %v5003_v50, %v6601_v32 }
 0xd16   : > { %v5005_v51 = vpop.eup %5004  ;;  %5014 = vrcp.f32 %v3208_v0  ;;  %4406 = vmatpush3.bf16.xpose.msra.mxu0 %v3257_v36 }
 0xd17   : > { %v3550_v21 = vpop.xlane.xlu0 %3549  ;;  %v3604_v5 = vpack.c.bf16 %v3576_v13, %v3574_v49  ;;  %v3234_v37 = vmul.f32 %v5005_v51, %v6605_v59 }
 0xd18   : > { %v5007_v47 = vpop.eup %5006  ;;  %5016 = vrcp.f32 %v3550_v21 }
 0xd19   : > { %4443 = vmatprep.subr.bf16.mxu1 %v3604_v5  ;;  %v3552_v20 = vpop.xlane.xlu1 %3551  ;;  %v3236_v60 = vmul.f32 %v5007_v47, %v6609_v24 }
 0xd1a   : > { %v5009_v42 = vpop.eup %5008  ;;  %5018 = vrcp.f32 %v3552_v20  ;;  %4444 = vmatpush3.bf16.xpose.msra.mxu1 %v3604_v5 }
 0xd1b   : > { %v3210_v29 = vpop.xlane.xlu0 %3209  ;;  %v3258_v45 = vpack.c.bf16 %v3236_v60, %v3234_v37  ;;  %v3578_v18 = vmul.f32 %v5009_v42, %v6613_v43 }
 0xd1c   : > { %v5011_v31 = vpop.eup %5010  ;;  %5020 = vrcp.f32 %v3210_v29 }
 0xd1d   : > { %4407 = vmatprep.subr.bf16.mxu0 %v3258_v45  ;;  %v3212_v32 = vpop.xlane.xlu1 %3211  ;;  %v3580_v63 = vmul.f32 %v5011_v31, %v6617_v16 }
 0xd1e   : > { %v5013_v15 = vpop.eup %5012  ;;  %5022 = vrcp.f32 %v3212_v32  ;;  %4408 = vmatpush3.bf16.xpose.msra.mxu0 %v3258_v45 }
 0xd1f   : > { %v3554_v3 = vpop.xlane.xlu0 %3553  ;;  %v3605_v59 = vpack.c.bf16 %v3580_v63, %v3578_v18  ;;  %v3238_v44 = vmul.f32 %v5013_v15, %v6621_v54 }
 0xd20   : > { %v5015_v27 = vpop.eup %5014  ;;  %5024 = vrcp.f32 %v3554_v3 }
 0xd21   : > { %4445 = vmatprep.subr.bf16.mxu1 %v3605_v59  ;;  %v3556_v24 = vpop.xlane.xlu1 %3555  ;;  %v3240_v1 = vmul.f32 %v5015_v27, %v6625_v41 }
 0xd22   : > { %v5017_v36 = vpop.eup %5016  ;;  %5026 = vrcp.f32 %v3556_v24  ;;  %4446 = vmatpush3.bf16.xpose.msra.mxu1 %v3605_v59 }
 0xd23   : > { %v3214_v50 = vpop.xlane.xlu0 %3213  ;;  %v3259_v43 = vpack.c.bf16 %v3240_v1, %v3238_v44  ;;  %v3582_v49 = vmul.f32 %v5017_v36, %v6629_v2 }
 0xd24   : > { %v5019_v0 = vpop.eup %5018  ;;  %5028 = vrcp.f32 %v3214_v50 }
 0xd25   : > { %4409 = vmatprep.subr.bf16.mxu0 %v3259_v43  ;;  %v3216_v16 = vpop.xlane.xlu1 %3215  ;;  %v3584_v13 = vmul.f32 %v5019_v0, %v6633_v17 }
 0xd26   : > { %v5021_v51 = vpop.eup %5020  ;;  %5030 = vrcp.f32 %v3216_v16  ;;  %4410 = vmatpush3.bf16.xpose.msra.mxu0 %v3259_v43 }
 0xd27   : > { %v3558_v21 = vpop.xlane.xlu0 %3557  ;;  %v3606_v54 = vpack.c.bf16 %v3584_v13, %v3582_v49  ;;  %v3242_v47 = vmul.f32 %v5021_v51, %v6637_v62  ;;  %v6949_v13 = vpack.c.bf16 %v6446_v10, %v6440_v56  ;;  %v6956_v56 = vmov 0  }
 0xd28   : > { %v5023_v5 = vpop.eup %5022  ;;  %5032 = vrcp.f32 %v3558_v21  ;;  %v6957_v10 = vpack.c.bf16 %v6442_v25, %v6438_v28  ;;  %v6966_v28 = vpack.c.bf16 %v6026_v7, %v6020_v6  ;;  %v6967_v25 = vld [vmem:[#allocation29_spill] sm:$0xff]  ;;  %v6971_v6 = vpack.c.bf16 %v6114_v8, %v6110_v14 }
 0xd29   : > { %4447 = vmatprep.subr.bf16.mxu1 %v3606_v54  ;;  %v3560_v41 = vpop.xlane.xlu1 %3559  ;;  %v3244_v20 = vmul.f32 %v5023_v5, %v6641_v33  ;;  %v6950_v5 = vld [vmem:[#allocation34_spill] sm:$0xff]  ;;  %v6973_v14 = vpack.c.bf16 %v6137_v46, %v6132_v35  ;;  %v4535_v8 = vld [vmem:[%s6846_s2 + $0x8] sm:$0xff]  }
 0xd2a   : > { %v5025_v37 = vpop.eup %5024  ;;  %5034 = vrcp.f32 %v3560_v41  ;;  %4448 = vmatpush3.bf16.xpose.msra.mxu1 %v3606_v54  ;;  %v6951_v41 = vld [vmem:[#allocation33_spill] sm:$0xff]  ;;  %v3686_v35 = vld [vmem:[%s6847_s3 + $0x10] sm:$0xff] }
 0xd2b   : > { %v3218_v60 = vpop.xlane.xlu0 %3217  ;;  %v3260_v2 = vpack.c.bf16 %v3244_v20, %v3242_v47  ;;  %v3586_v29 = vmul.f32 %v5025_v37, %v6645_v61  ;;  %v6954_v47 = vld [vmem:[#allocation22_spill] sm:$0xff] }
 0xd2c   : > { %v5027_v42 = vpop.eup %5026  ;;  %5036 = vrcp.f32 %v3218_v60  ;;  %v6961_v60 = vpack.c.bf16 %v6469_v52, %v6462_v53 }
 0xd2d   : > { %4411 = vmatprep.subr.bf16.mxu0 %v3260_v2  ;;  %v3220_v17 = vpop.xlane.xlu1 %3219  ;;  %v3588_v45 = vmul.f32 %v5027_v42, %v6649_v39  ;;  %v6963_v42 = vld [vmem:[#allocation28_spill] sm:$0xff] }
 0xd2e   : > { %v5029_v31 = vpop.eup %5028  ;;  %5038 = vrcp.f32 %v3220_v17  ;;  %4412 = vmatpush3.bf16.xpose.msra.mxu0 %v3260_v2  ;;  %v6962_v2 = vld [vmem:[#allocation30_spill] sm:$0xff] }
 0xd2f   : > { %v3562_v32 = vpop.xlane.xlu0 %3561  ;;  %v3607_v62 = vpack.c.bf16 %v3588_v45, %v3586_v29  ;;  %v3246_v63 = vmul.f32 %v5029_v31, %v6653_v40  ;;  %v6964_v17 = vpack.c.bf16 %v6962_v2, %v6963_v42  ;;  %v6965_v29 = vpack.c.bf16 %v6465_v22, %v6460_v11  ;;  %v6968_v45 = vld [vmem:[#allocation27_spill] sm:$0xff] }
 0xd30   : > { %v5031_v18 = vpop.eup %5030  ;;  %5040 = vrcp.f32 %v3562_v32  ;;  %v6969_v31 = vpack.c.bf16 %v6967_v25, %v6968_v45 }
 0xd31   : > { %4449 = vmatprep.subr.bf16.mxu1 %v3607_v62  ;;  %v3564_v33 = vpop.xlane.xlu1 %3563  ;;  %v3248_v15 = vmul.f32 %v5031_v18, %v6657_v55 }
 0xd32   : > { %v5033_v3 = vpop.eup %5032  ;;  %5042 = vrcp.f32 %v3564_v33  ;;  %4450 = vmatpush3.bf16.xpose.msra.mxu1 %v3607_v62 }
 0xd33   : > { %v3566_v59 = vpop.xlane.xlu0 %3565  ;;  %v3261_v61 = vpack.c.bf16 %v3248_v15, %v3246_v63  ;;  %v3590_v24 = vmul.f32 %v5033_v3, %v6661_v34  ;;  %v6970_v63 = vpack.c.bf16 %v6118_v48, %v6112_v23  ;;  %v4534_v23 = vld [vmem:[%s6846_s2] sm:$0xff]  }
 0xd34   : > { %v5035_v27 = vpop.eup %5034  ;;  %5044 = vrcp.f32 %v3566_v59  ;;  %v3684_v48 = vld [vmem:[%s6847_s3] sm:$0xff] }
 0xd35   : > { %4413 = vmatprep.subr.bf16.mxu0 %v3261_v61  ;;  %v3568_v39 = vpop.xlane.xlu1 %3567  ;;  %v3592_v44 = vmul.f32 %v5035_v27, %v6665_v58 }
 0xd36   : > { %v5037_v1 = vpop.eup %5036  ;;  %5046 = vrcp.f32 %v3568_v39  ;;  %4414 = vmatpush3.bf16.xpose.msra.mxu0 %v3261_v61  ;;  %v6972_v61 = vpack.c.bf16 %v6141_v26, %v6134_v57  ;;  %v3685_v57 = vld [vmem:[%s6847_s3 + $0x8] sm:$0xff]  ;;  %v3687_v39 = vld [vmem:[%s6847_s3 + $0x18] sm:$0xff] }
 0xd37   : > { %v3608_v36 = vpack.c.bf16 %v3592_v44, %v3590_v24  ;;  %v3250_v55 = vmul.f32 %v5037_v1, %v6668_v38 }
 0xd38   : > { %v5039_v40 = vpop.eup %5038 }
 0xd39   : > { %4451 = vmatprep.subr.bf16.mxu1 %v3608_v36  ;;  %v3252_v50 = vmul.f32 %v5039_v40, %v6671_v4 }
 0xd3a   : > { %v5041_v43 = vpop.eup %5040  ;;  %4452 = vmatpush3.bf16.xpose.msra.mxu1 %v3608_v36 }
 0xd3b   : > { %v3262_v0 = vpack.c.bf16 %v3252_v50, %v3250_v55  ;;  %v3594_v49 = vmul.f32 %v5041_v43, %v6674_v12  ;;  %v6952_v12 = vpack.c.bf16 %v6950_v5, %v6951_v41  ;;  %v3688_v55 = vld [vmem:[%s6847_s3 + $0x20] sm:$0xff]  ;;  %v3689_v50 = vld [vmem:[%s6847_s3 + $0x28] sm:$0xff] }
 0xd3c   : > { %v5043_v16 = vpop.eup %5042 }
 0xd3d   : > { %4415 = vmatprep.subr.bf16.mxu0 %v3262_v0  ;;  %v3596_v34 = vmul.f32 %v5043_v16, %v6677_v19  ;;  %v6953_v19 = vld [vmem:[#allocation24_spill] sm:$0xff] }
 0xd3e   : > { %v5045_v58 = vpop.eup %5044  ;;  %4416 = vmatpush3.bf16.xpose.msra.mxu0 %v3262_v0  ;;  %v6955_v20 = vpack.c.bf16 %v6953_v19, %v6954_v47  ;;  %v3690_v0 = vld [vmem:[%s6847_s3 + $0x30] sm:$0xff] }
 0xd3f   : > { %3704 = vmatprep.subr.bf16.mxu0 %v6949_v13  ;;  %v3609_v51 = vpack.c.bf16 %v3596_v34, %v3594_v49  ;;  %v3598_v38 = vmul.f32 %v5045_v58, %v6680_v9  ;;  %v6958_v9 = vld [vmem:[#allocation23_spill] sm:$0xff] }
 0xd40   : > { %v5047_v21 = vpop.eup %5046  ;;  %v3691_v34 = vld [vmem:[%s6847_s3 + $0x38] sm:$0xff] }
 0xd41   : > { %4453 = vmatprep.subr.bf16.mxu1 %v3609_v51  ;;  %v3600_v4 = vmul.f32 %v5047_v21, %v6683_v30  ;;  %v6959_v30 = vld [vmem:[#allocation21_spill] sm:$0xff] }
 0xd42   : > { %4454 = vmatpush3.bf16.xpose.msra.mxu1 %v3609_v51  ;;  %v6960_v37 = vpack.c.bf16 %v6958_v9, %v6959_v30 }
 0xd43   : > { %v3610_v54 = vpack.c.bf16 %v3600_v4, %v3598_v38 }
 0xd45   : > { %4418 = vmatmul.mubr.bf16.vlgmr.msra.gmra.mrb[136].mxu0 %v6952_v12  ;;  %4455 = vmatprep.subr.bf16.mxu1 %v3610_v54 }
 0xd46   : > { %3705 = vmatpush1.bf16.msra.mxu0 %v6955_v20  ;;  %3736 = vmatprep.mubr.bf16.mxu0 %v6956_v56 }
 0xd47   : > { %3706 = vmatprep.subr.bf16.mxu0 %v6957_v10 }
 0xd4a   : > { %4456 = vmatpush3.bf16.xpose.msra.mxu1 %v3610_v54  ;;  %3707 = vmatpush1.bf16.msra.mxu0 %v6960_v37 }
 0xd4b   : > { %3708 = vmatprep.subr.bf16.mxu0 %v6961_v60 }
 0xd4e   : > { %3709 = vmatpush1.bf16.msra.mxu0 %v6964_v17 }
 0xd4f   : > { %3710 = vmatprep.subr.bf16.mxu0 %v6965_v29 }
 0xd51   : > { %4458 = vmatmul.mubr.bf16.vlgmr.msra.gmra.mrb[112].mxu1 %v6966_v28 }
 0xd52   : > { %3711 = vmatpush1.bf16.msra.mxu0 %v6969_v31 }
 0xe18   : > { %v4419_v32 = vpop.f32.mrb[136].mxu0 }
 0xe19   : > { %v3297_v62 = vpop.f32.mrb[137].mxu0 }
 0xe1a   : > { %v4420_v53 = vpop.f32.mrb[138].mxu0 }
 0xe1b   : > { %v3313_v52 = vpack.c.bf16 %v4420_v53, %v4419_v32  ;;  %v3300_v18 = vpop.f32.mrb[139].mxu0 }
 0xe1c   : > { %v3312_v33 = vpack.c.bf16 %v3300_v18, %v3297_v62 }
 0xe1e   : > { %3712 = vmatprep.subr.bf16.mxu0 %v3312_v33 }
 0xe1f   : > { %3713 = vmatpush1.bf16.msra.mxu0 %v6970_v63 }
 0xe20   : > { %3714 = vmatprep.subr.bf16.mxu0 %v3313_v52 }
 0xe23   : > { %3715 = vmatpush1.bf16.msra.mxu0 %v6971_v6 }
 0xe24   : > { %v4459_v7 = vpop.f32.mrb[112].mxu1 }
 0xe25   : > { %v3645_v11 = vpop.f32.mrb[113].mxu1 }
 0xe26   : > { %v4460_v22 = vpop.f32.mrb[114].mxu1 }
 0xe27   : > { %v3661_v15 = vpack.c.bf16 %v4460_v22, %v4459_v7  ;;  %v3648_v3 = vpop.f32.mrb[115].mxu1 }
 0xe28   : > { %v3660_v59 = vpack.c.bf16 %v3648_v3, %v3645_v11 }
 0xe2a   : > { %3716 = vmatprep.subr.bf16.mxu0 %v3660_v59 }
 0xe2b   : > { %3717 = vmatpush1.bf16.msra.mxu0 %v6972_v61 }
 0xe2c   : > { %3718 = vmatprep.subr.bf16.mxu0 %v3661_v15 }
 0xe2f   : > { %3719 = vmatpush1.bf16.msra.mxu0 %v6973_v14 }
 0xe32   : > { %3737 = vmatmul.mubr.bf16.vlgmr.msra.gmra.mrb[140].mxu0 %v4534_v23 }
 0xe33   : > { %3746 = vmatprep.mubr.bf16.mxu0 %v6956_v56 }
 0xe3a   : > { %3747 = vmatmul.mubr.bf16.gmra.mrb[144].mxu0 %v4535_v8 }
 0xf05   : > { %v3738_v26 = vpop.f32.mrb[140].mxu0 }
 0xf06   : > { %v3739_v46 = vadd.f32 %v3738_v26, %v3684_v48  ;;  %v3740_v27 = vpop.f32.mrb[141].mxu0 }
 0xf07   : > { %v3741_v24 = vadd.f32 %v3740_v27, %v3685_v57  ;;  %v3742_v44 = vpop.f32.mrb[142].mxu0 }
 0xf08   : > { %3757 = vst [vmem:[%s242_s7] sm:$0xff] %v3739_v46  ;;  %v3743_v1 = vadd.f32 %v3742_v44, %v3686_v35  ;;  %v3744_v36 = vpop.f32.mrb[143].mxu0 }
 0xf09   : > { %3758 = vst [vmem:[%s242_s7 + $0x8] sm:$0xff] %v3741_v24  ;;  %v3745_v40 = vadd.f32 %v3744_v36, %v3687_v39 }
 0xf0a   : > { %3759 = vst [vmem:[%s242_s7 + $0x10] sm:$0xff] %v3743_v1 }
 0xf0b   : > { %3760 = vst [vmem:[%s242_s7 + $0x18] sm:$0xff] %v3745_v40 }
 0xf0d   : > { %v3748_v43 = vpop.f32.mrb[144].mxu0 }
 0xf0e   : > { %v3749_v16 = vadd.f32 %v3748_v43, %v3688_v55  ;;  %v3750_v49 = vpop.f32.mrb[145].mxu0 }
 0xf0f   : > { %v3751_v58 = vadd.f32 %v3750_v49, %v3689_v50  ;;  %v3752_v13 = vpop.f32.mrb[146].mxu0 }
 0xf10   : > { %3761 = vst [vmem:[%s242_s7 + $0x20] sm:$0xff] %v3749_v16  ;;  %v3753_v51 = vadd.f32 %v3752_v13, %v3690_v0  ;;  %v3754_v21 = vpop.f32.mrb[147].mxu0 }
 0xf11   : > { %3762 = vst [vmem:[%s242_s7 + $0x28] sm:$0xff] %v3751_v58  ;;  %v3755_v38 = vadd.f32 %v3754_v21, %v3691_v34 }
 0xf12   : > { %3763 = vst [vmem:[%s242_s7 + $0x30] sm:$0xff] %v3753_v51 }
 0xf13   : > { %3764 = vst [vmem:[%s242_s7 + $0x38] sm:$0xff] %v3755_v38 }
 0xf14   : > { %5061 = shalt.err (!%p5058_p5)
}
 0xf15   : > { %s5062_s7 = scalar_lea.hbm %s6800_s19, 1024  ;;  %s5066_s14 = scalar_lea.hbm %s6848_s4, 2048 }
 0xf16   : > { %p5063_p7 = scmp.ne.s32.totalorder %s6800_s19, %s5062_s7  ;;  %p5067_p12 = scmp.lt.u32.totalorder %s6800_s19, %s6848_s4 }
 0xf17   : > { %p5068_p13 = scmp.lt.u32.totalorder %s5066_s14, %s5062_s7  ;;  %p5070_p1 = scmp.lt.u32.totalorder %s5062_s7, %s6800_s19 }
 0xf18   : > { %p5064_p10 = pnand %p5063_p7, %p5180_p6 }
 0xf19   : > { %p5069_p0 = por %p5068_p13, %p5067_p12 }
 0xf1a   : > { %p5065_p11 = pneg %p5064_p10 }
 0xf1b   : > { %p5071_p2 = por %p5070_p1, %p5069_p0 }
 0xf1d   : > { %p5072_p3 = pnand %p5071_p2, %p5065_p11 }
 0xf1f   : > { %5075 = shalt.err (!%p5072_p3)
}
 0xf20   : > { %s5114_s23 = smov 256   ;;  %s5115_s27 = smov 512  }
 0xf21   : > { %s5116_s28 = smov 16  }
 0xf22   : > { %4461 = dma.vmem_to_hbm [thread:$0]  (%p5180_p6), %s6795_s11, 1024, %s6800_s19, %s3766_s30, %s5114_s23, %s5115_s27, %s5116_s28  }
 0xf23 PF: > { %s3794_s29 = sand.u32 1, %s5098_s15   ;;  %p4464_p4 = pnand %p3849_p9, %p5184_p8 }
 0xf24   : > { %s3795_s5 = scalar_lea.sflag [#allocation6], %s3794_s29 }
 0xf25   : > { %5093 = dma.done.wait (!%p4464_p4), %s3795_s5, 1024  }
 0xf26   : > { %5095 = vsyncadd (!%p4464_p4), %s3795_s5, 4294966272  ;;  %p14_p5 = scmp.ge.s32.totalorder %s5165_s21, 4   ;;  %s6974_s15 = smov %s5102_s16 }
 0xf27   : > { %s6975_s16 = smov %s5106_s17  ;;  %s6976_s17 = smov %s5178_s24 }
 0xf28   : > { %s6977_s18 = smov %s5165_s21  ;;  %16 = sbr.rel (!%p14_p5) target bundleno = 3 (0x3), region = 114 }
 0xf2f   :  { %3800 = vsyncpa [#allocation6], 1 }
 0xf30   :  { %3802 = vsyncpa [#allocation6 + $0x1], 1 }

</bundles_post_ra>
